<compile_context>
chip_gen: v5e
topology: v5e:2x2
jax: 0.10.0
libtpu: 0.0.40
codegen_flags: <defaults>
</compile_context>

<pallas_src>
import functools

import numpy as np
import jax
import jax.numpy as jnp
from jax.experimental import pallas as pl
from jax.experimental.pallas import tpu as pltpu

_BN_EPS = 1e-5
_SQRT_2_OVER_PI = 0.7978845608028654


def _gelu(x):
    # tanh-approximate GELU: tanh goes to the EUP (separate bundle slot).
    # Max abs deviation from exact erf-GELU ~3e-4.
    return 0.5 * x * (1.0 + jnp.tanh(_SQRT_2_OVER_PI * (x + 0.044715 * x * x * x)))


def _bn_gelu(x, gamma, beta):
    # Training-mode BatchNorm3d (biased variance).  Channels are sublane rows,
    # so the statistics are lane-axis reductions.  Var = E[x^2] - mean^2 saves
    # a full (C, N) subtract+square pass and decouples the two reductions.
    mean = jnp.mean(x, axis=1, keepdims=True)
    ex2 = jnp.mean(x * x, axis=1, keepdims=True)
    var = jnp.maximum(ex2 - mean * mean, 0.0)
    xhat = (x - mean) * jax.lax.rsqrt(var + _BN_EPS)
    return _gelu(xhat * gamma + beta)


def _residual_kernel(x_ref, bits_ref, w1_ref, b1_ref, w2_ref, b2_ref,
                     w3_ref, b3_ref, g1_ref, be1_ref, g2_ref, be2_ref,
                     g3_ref, be3_ref, g4_ref, be4_ref, o_ref, *, W, HW):
    B, C, DHW = x_ref.shape
    N = B * DHW

    # Fuse batch onto lanes (lane-aligned concat, DHW % 128 == 0).  Channels
    # stay on sublanes: every f32 intermediate is fully packed vregs, 1x1x1
    # convs are (C,C)@(C,N) MXU matmuls, BN stats are lane reductions.
    x = jnp.concatenate([x_ref[b] for b in range(B)], axis=1)        # (C, N)

    # ---- f[0:3]: BN + GELU + Conv3d(n, n, 1) --------------------------------
    h = _bn_gelu(x, g1_ref[...], be1_ref[...])
    h = jnp.dot(w1_ref[...], h, preferred_element_type=jnp.float32) + b1_ref[...]

    # ---- f[3:6]: BN + GELU + Conv3d(n, n, 3, padding=1) ---------------------
    h = _bn_gelu(h, g2_ref[...], be2_ref[...])

    # Grouped im2col accumulation: 9 groups of 3 taps (K=24 each), no patch
    # scratch.  Per tap: one static lane-roll (XLU) + one multiply by the
    # precomputed validity bit (shift/and/convert on the (1, N) bitmask).
    bits = bits_ref[...]                                             # (1, N) i32
    taps = [(od, oh, ow) for od in (-1, 0, 1) for oh in (-1, 0, 1)
            for ow in (-1, 0, 1)]
    acc = None
    for g in range(9):
        rows = []
        for j in range(3):
            t = 3 * g + j
            od, oh, ow = taps[t]
            off = od * HW + oh * W + ow                 # flat-index shift of tap
            shifted = h if off == 0 else pltpu.roll(h, shift=(-off) % N, axis=1)
            if off == 0:
                rows.append(shifted)                    # center tap always valid
            else:
                maskf = ((bits >> t) & 1).astype(jnp.float32)   # (1, N) splat
                rows.append(shifted * maskf)
        grp = jnp.concatenate(rows, axis=0)                          # (3C, N)
        part = jnp.dot(w2_ref[g], grp, preferred_element_type=jnp.float32)
        acc = part if acc is None else acc + part
    h = acc + b2_ref[...]

    # ---- f[6:9]: BN + GELU + Conv3d(n, n, 1) --------------------------------
    h = _bn_gelu(h, g3_ref[...], be3_ref[...])
    h = jnp.dot(w3_ref[...], h, preferred_element_type=jnp.float32) + b3_ref[...]

    # ---- residual add + final BN + GELU -------------------------------------
    y = _bn_gelu(h + x, g4_ref[...], be4_ref[...])

    # Emit batch-major (B, C, DHW) output directly (lane-aligned static
    # slices): no NCDHW transpose needed in the wrapper.
    for b in range(B):
        o_ref[b, :, :] = y[:, b * DHW:(b + 1) * DHW].astype(o_ref.dtype)


def pixel_shuffle_3d(x, r):
    # 3-D generalization of torch.nn.PixelShuffle:
    # (B, C, D, H, W) -> (B, C // r**3, D*r, H*r, W*r)
    B, C, D, H, W = x.shape
    n = C // (r ** 3)
    x = x.reshape(B, n, r, r, r, D, H, W)
    x = jnp.transpose(x, (0, 1, 5, 2, 6, 3, 7, 4))     # B, n, D, r, H, r, W, r
    return x.reshape(B, n, D * r, H * r, W * r)


def _tap_bitmask(B, D, H, W):
    # Trace-time (static) per-lane validity bitmask: bit t of lane n is set iff
    # tap t's neighbour of voxel n lies inside the same-batch volume.
    n = np.arange(B * D * H * W)
    d = (n // (H * W)) % D
    h = (n // W) % H
    w = n % W
    bits = np.zeros(n.shape, np.int32)
    t = 0
    for od in (-1, 0, 1):
        for oh in (-1, 0, 1):
            for ow in (-1, 0, 1):
                ok = ((d + od >= 0) & (d + od < D) &
                      (h + oh >= 0) & (h + oh < H) &
                      (w + ow >= 0) & (w + ow < W))
                bits |= ok.astype(np.int32) << t
                t += 1
    return jnp.asarray(bits.reshape(1, -1))


def _full_spec(shape):
    nd = len(shape)
    return pl.BlockSpec(shape, lambda i, _nd=nd: (0,) * _nd)


@jax.jit
def residual_forward(X, params):
    # X: (B, C_in, D, H, W) — NCDHW, like the PyTorch module.
    # TODO(synk): the pixel-shuffle interleave is still one XLA transpose pass
    # in HBM; folding it into the kernel needs even/odd lane interleaving and
    # is not worth it at these shapes.
    x = pixel_shuffle_3d(X, 2)                          # (B, n, 2D, 2H, 2W)
    B, C, D, H, W = x.shape
    DHW = D * H * W

    x3 = x.reshape(B, C, DHW).astype(jnp.float32)       # free reshape, no transpose
    bits = _tap_bitmask(B, D, H, W)

    # Kernel weight layouts (derived from torch-layout params; tiny, jit-fused):
    #   1x1 convs:  (Cout, Cin)
    #   3x3 conv:   (9, Cout, 3*Cin)  -- group-major im2col blocks, tap-major cols
    #   biases/BN:  (C, 1) lane-splat
    w1 = params["w1"][:, :, 0, 0, 0]
    w2 = (jnp.transpose(params["w2"], (0, 2, 3, 4, 1)).reshape(C, 9, 3 * C)
          .transpose(1, 0, 2))
    w3 = params["w3"][:, :, 0, 0, 0]
    col = lambda v: v.reshape(C, 1)

    args = (x3, bits,
            w1, col(params["b1"]), w2, col(params["b2"]), w3, col(params["b3"]),
            col(params["g1"]), col(params["be1"]),
            col(params["g2"]), col(params["be2"]),
            col(params["g3"]), col(params["be3"]),
            col(params["g4"]), col(params["be4"]))

    kernel = functools.partial(_residual_kernel, W=W, HW=H * W)

    out = pl.pallas_call(
        kernel,
        out_shape=jax.ShapeDtypeStruct((B, C, DHW), jnp.float32),
        grid=(1,),
        in_specs=[_full_spec(a.shape) for a in args],
        out_specs=_full_spec((B, C, DHW)),
        compiler_params=pltpu.CompilerParams(
            dimension_semantics=("arbitrary",)),
    )(*args)

    return out.reshape(B, C, D, H, W)


def init_params(key, in_channels):
    # PyTorch-default-style init, torch layouts:
    # Conv3d weight (out, in, kd, kh, kw): U(-1/sqrt(fan_in), 1/sqrt(fan_in));
    # BatchNorm3d: weight=1, bias=0.
    n = in_channels // 8
    ks = jax.random.split(key, 6)

    def conv_w(k, ksize):
        bound = 1.0 / np.sqrt(n * ksize ** 3)
        return jax.random.uniform(k, (n, n, ksize, ksize, ksize),
                                  jnp.float32, -bound, bound)

    def conv_b(k, ksize):
        bound = 1.0 / np.sqrt(n * ksize ** 3)
        return jax.random.uniform(k, (n,), jnp.float32, -bound, bound)

    ones = jnp.ones((n,), jnp.float32)
    zeros = jnp.zeros((n,), jnp.float32)

    return {
        "w1": conv_w(ks[0], 1), "b1": conv_b(ks[1], 1),
        "w2": conv_w(ks[2], 3), "b2": conv_b(ks[3], 3),
        "w3": conv_w(ks[4], 1), "b3": conv_b(ks[5], 1),
        "g1": ones, "be1": zeros, "g2": ones, "be2": zeros,
        "g3": ones, "be3": zeros, "g4": ones, "be4": zeros,
    }


def _reference(X, params):
    # Pure-JAX reference (same training-mode BN and tanh-GELU as the kernel).
    x = pixel_shuffle_3d(X, 2).astype(jnp.float32)

    def bn(v, g, b):
        mean = jnp.mean(v, axis=(0, 2, 3, 4), keepdims=True)
        var = jnp.mean(jnp.square(v - mean), axis=(0, 2, 3, 4), keepdims=True)
        vhat = (v - mean) * jax.lax.rsqrt(var + _BN_EPS)
        return vhat * g.reshape(1, -1, 1, 1, 1) + b.reshape(1, -1, 1, 1, 1)

    def conv1(v, w5, b):
        y = jnp.einsum('oi,bidhw->bodhw', w5[:, :, 0, 0, 0], v,
                       precision=jax.lax.Precision.HIGHEST)
        return y + b.reshape(1, -1, 1, 1, 1)

    def conv3(v, w5, b):
        y = jax.lax.conv_general_dilated(
            v, w5, window_strides=(1, 1, 1),
            padding=((1, 1), (1, 1), (1, 1)),
            dimension_numbers=('NCDHW', 'OIDHW', 'NCDHW'),
            precision=jax.lax.Precision.HIGHEST)
        return y + b.reshape(1, -1, 1, 1, 1)

    h = conv1(_gelu(bn(x, params["g1"], params["be1"])), params["w1"], params["b1"])
    h = conv3(_gelu(bn(h, params["g2"], params["be2"])), params["w2"], params["b2"])
    h = conv1(_gelu(bn(h, params["g3"], params["be3"])), params["w3"], params["b3"])
    h = h + x
    return _gelu(bn(h, params["g4"], params["be4"]))


if __name__ == "__main__":
    key = jax.random.PRNGKey(0)
    k_x, k_p = jax.random.split(key)

    B, in_channels, D, H, W = 2, 64, 4, 4, 4            # n = 64 // 8 = 8
    X = jax.random.normal(k_x, (B, in_channels, D, H, W), jnp.float32)
    params = init_params(k_p, in_channels)

    out = residual_forward(X, params)
    jax.block_until_ready(out)
    assert out.shape == (B, in_channels // 8, 2 * D, 2 * H, 2 * W)
    assert bool(jnp.all(jnp.isfinite(out)))

    # Numerical check against a pure-JAX reference (catches roll-direction /
    # im2col-ordering / mask bugs; tolerance covers matmul-precision and
    # variance-formula differences only).
    ref = jax.jit(_reference)(X, params)
    np.testing.assert_allclose(np.asarray(out), np.asarray(ref),
                               rtol=3e-2, atol=3e-2)

    print("KERNEL_OK")
</pallas_src>

<mosaic_0001>
module attributes {stable_mosaic.version = 11 : i64} {
  func.func @_residual_kernel(%arg0: i32, %arg1: memref<2x8x512xf32, #tpu.memory_space<vmem>>, %arg2: memref<1x1024xi32, #tpu.memory_space<vmem>>, %arg3: memref<8x8xf32, #tpu.memory_space<vmem>>, %arg4: memref<8x1xf32, #tpu.memory_space<vmem>>, %arg5: memref<9x8x24xf32, #tpu.memory_space<vmem>>, %arg6: memref<8x1xf32, #tpu.memory_space<vmem>>, %arg7: memref<8x8xf32, #tpu.memory_space<vmem>>, %arg8: memref<8x1xf32, #tpu.memory_space<vmem>>, %arg9: memref<8x1xf32, #tpu.memory_space<vmem>>, %arg10: memref<8x1xf32, #tpu.memory_space<vmem>>, %arg11: memref<8x1xf32, #tpu.memory_space<vmem>>, %arg12: memref<8x1xf32, #tpu.memory_space<vmem>>, %arg13: memref<8x1xf32, #tpu.memory_space<vmem>>, %arg14: memref<8x1xf32, #tpu.memory_space<vmem>>, %arg15: memref<8x1xf32, #tpu.memory_space<vmem>>, %arg16: memref<8x1xf32, #tpu.memory_space<vmem>>, %arg17: memref<2x8x512xf32, #tpu.memory_space<vmem>>) attributes {dimension_semantics = [#tpu.dimension_semantics<arbitrary>], iteration_bounds = array<i64: 1>, scalar_prefetch = 0 : i64, scratch_operands = 0 : i64, tpu.core_type = #tpu.core_type<tc>, window_params = [{pipeline_mode = #tpu.pipeline_mode<synchronous>, transform_indices = @transform_0, window_bounds = array<i64: 2, 8, 512>}, {pipeline_mode = #tpu.pipeline_mode<synchronous>, transform_indices = @transform_1, window_bounds = array<i64: 1, 1024>}, {pipeline_mode = #tpu.pipeline_mode<synchronous>, transform_indices = @transform_2, window_bounds = array<i64: 8, 8>}, {pipeline_mode = #tpu.pipeline_mode<synchronous>, transform_indices = @transform_3, window_bounds = array<i64: 8, 1>}, {pipeline_mode = #tpu.pipeline_mode<synchronous>, transform_indices = @transform_4, window_bounds = array<i64: 9, 8, 24>}, {pipeline_mode = #tpu.pipeline_mode<synchronous>, transform_indices = @transform_5, window_bounds = array<i64: 8, 1>}, {pipeline_mode = #tpu.pipeline_mode<synchronous>, transform_indices = @transform_6, window_bounds = array<i64: 8, 8>}, {pipeline_mode = #tpu.pipeline_mode<synchronous>, transform_indices = @transform_7, window_bounds = array<i64: 8, 1>}, {pipeline_mode = #tpu.pipeline_mode<synchronous>, transform_indices = @transform_8, window_bounds = array<i64: 8, 1>}, {pipeline_mode = #tpu.pipeline_mode<synchronous>, transform_indices = @transform_9, window_bounds = array<i64: 8, 1>}, {pipeline_mode = #tpu.pipeline_mode<synchronous>, transform_indices = @transform_10, window_bounds = array<i64: 8, 1>}, {pipeline_mode = #tpu.pipeline_mode<synchronous>, transform_indices = @transform_11, window_bounds = array<i64: 8, 1>}, {pipeline_mode = #tpu.pipeline_mode<synchronous>, transform_indices = @transform_12, window_bounds = array<i64: 8, 1>}, {pipeline_mode = #tpu.pipeline_mode<synchronous>, transform_indices = @transform_13, window_bounds = array<i64: 8, 1>}, {pipeline_mode = #tpu.pipeline_mode<synchronous>, transform_indices = @transform_14, window_bounds = array<i64: 8, 1>}, {pipeline_mode = #tpu.pipeline_mode<synchronous>, transform_indices = @transform_15, window_bounds = array<i64: 8, 1>}, {pipeline_mode = #tpu.pipeline_mode<synchronous>, transform_indices = @transform_16, window_bounds = array<i64: 2, 8, 512>}]} {
    %c0 = arith.constant 0 : index
    %c0_0 = arith.constant 0 : index
    %c0_1 = arith.constant 0 : index
    %0 = vector.load %arg1[%c0, %c0_0, %c0_1] : memref<2x8x512xf32, #tpu.memory_space<vmem>>, vector<1x8x512xf32>
    %1 = vector.shape_cast %0 : vector<1x8x512xf32> to vector<8x512xf32>
    %c1 = arith.constant 1 : index
    %c0_2 = arith.constant 0 : index
    %c0_3 = arith.constant 0 : index
    %2 = vector.load %arg1[%c1, %c0_2, %c0_3] : memref<2x8x512xf32, #tpu.memory_space<vmem>>, vector<1x8x512xf32>
    %3 = vector.shape_cast %2 : vector<1x8x512xf32> to vector<8x512xf32>
    %4 = tpu.concatenate %1, %3 in 1 : vector<8x512xf32>, vector<8x512xf32> -> vector<8x1024xf32>
    %c0_4 = arith.constant 0 : index
    %c0_5 = arith.constant 0 : index
    %5 = vector.load %arg9[%c0_4, %c0_5] : memref<8x1xf32, #tpu.memory_space<vmem>>, vector<8x1xf32>
    %c0_6 = arith.constant 0 : index
    %c0_7 = arith.constant 0 : index
    %6 = vector.load %arg10[%c0_6, %c0_7] : memref<8x1xf32, #tpu.memory_space<vmem>>, vector<8x1xf32>
    %cst = arith.constant dense<0.000000e+00> : vector<8xf32>
    %7 = vector.multi_reduction <add>, %4, %cst [1] : vector<8x1024xf32> to vector<8xf32>
    %8 = vector.shape_cast %7 : vector<8xf32> to vector<8x1xf32>
    %cst_8 = arith.constant 1.024000e+03 : f32
    %9 = vector.broadcast %cst_8 : f32 to vector<8x1xf32>
    %10 = arith.divf %8, %9 : vector<8x1xf32>
    %11 = arith.mulf %4, %4 : vector<8x1024xf32>
    %cst_9 = arith.constant dense<0.000000e+00> : vector<8xf32>
    %12 = vector.multi_reduction <add>, %11, %cst_9 [1] : vector<8x1024xf32> to vector<8xf32>
    %13 = vector.shape_cast %12 : vector<8xf32> to vector<8x1xf32>
    %cst_10 = arith.constant 1.024000e+03 : f32
    %14 = vector.broadcast %cst_10 : f32 to vector<8x1xf32>
    %15 = arith.divf %13, %14 : vector<8x1xf32>
    %16 = arith.mulf %10, %10 : vector<8x1xf32>
    %17 = arith.subf %15, %16 : vector<8x1xf32>
    %cst_11 = arith.constant 0.000000e+00 : f32
    %18 = vector.broadcast %cst_11 : f32 to vector<8x1xf32>
    %19 = arith.maximumf %17, %18 : vector<8x1xf32>
    %20 = vector.broadcast %10 : vector<8x1xf32> to vector<8x1024xf32>
    %21 = arith.subf %4, %20 : vector<8x1024xf32>
    %cst_12 = arith.constant 9.99999974E-6 : f32
    %22 = vector.broadcast %cst_12 : f32 to vector<8x1xf32>
    %23 = arith.addf %19, %22 : vector<8x1xf32>
    %24 = math.rsqrt %23 : vector<8x1xf32>
    %25 = vector.broadcast %24 : vector<8x1xf32> to vector<8x1024xf32>
    %26 = arith.mulf %21, %25 : vector<8x1024xf32>
    %27 = vector.broadcast %5 : vector<8x1xf32> to vector<8x1024xf32>
    %28 = arith.mulf %26, %27 : vector<8x1024xf32>
    %29 = vector.broadcast %6 : vector<8x1xf32> to vector<8x1024xf32>
    %30 = arith.addf %28, %29 : vector<8x1024xf32>
    %cst_13 = arith.constant 5.000000e-01 : f32
    %31 = vector.broadcast %cst_13 : f32 to vector<8x1024xf32>
    %32 = arith.mulf %31, %30 : vector<8x1024xf32>
    %cst_14 = arith.constant 4.471500e-02 : f32
    %33 = vector.broadcast %cst_14 : f32 to vector<8x1024xf32>
    %34 = arith.mulf %33, %30 : vector<8x1024xf32>
    %35 = arith.mulf %34, %30 : vector<8x1024xf32>
    %36 = arith.mulf %35, %30 : vector<8x1024xf32>
    %37 = arith.addf %30, %36 : vector<8x1024xf32>
    %cst_15 = arith.constant 0.797884583 : f32
    %38 = vector.broadcast %cst_15 : f32 to vector<8x1024xf32>
    %39 = arith.mulf %38, %37 : vector<8x1024xf32>
    %40 = math.tanh %39 : vector<8x1024xf32>
    %cst_16 = arith.constant 1.000000e+00 : f32
    %41 = vector.broadcast %cst_16 : f32 to vector<8x1024xf32>
    %42 = arith.addf %41, %40 : vector<8x1024xf32>
    %43 = arith.mulf %32, %42 : vector<8x1024xf32>
    %c0_17 = arith.constant 0 : index
    %c0_18 = arith.constant 0 : index
    %44 = vector.load %arg3[%c0_17, %c0_18] : memref<8x8xf32, #tpu.memory_space<vmem>>, vector<8x8xf32>
    %cst_19 = arith.constant dense<0.000000e+00> : vector<8x1024xf32>
    %45 = tpu.matmul %44, %43, %cst_19 {dimension_numbers = #tpu.dot_dimension_numbers<[1], [0], [0], [1], [0, 0, 1, 1], [], []>} : vector<8x8xf32>, vector<8x1024xf32>, vector<8x1024xf32> -> vector<8x1024xf32>
    %c0_20 = arith.constant 0 : index
    %c0_21 = arith.constant 0 : index
    %46 = vector.load %arg4[%c0_20, %c0_21] : memref<8x1xf32, #tpu.memory_space<vmem>>, vector<8x1xf32>
    %47 = vector.broadcast %46 : vector<8x1xf32> to vector<8x1024xf32>
    %48 = arith.addf %45, %47 : vector<8x1024xf32>
    %c0_22 = arith.constant 0 : index
    %c0_23 = arith.constant 0 : index
    %49 = vector.load %arg11[%c0_22, %c0_23] : memref<8x1xf32, #tpu.memory_space<vmem>>, vector<8x1xf32>
    %c0_24 = arith.constant 0 : index
    %c0_25 = arith.constant 0 : index
    %50 = vector.load %arg12[%c0_24, %c0_25] : memref<8x1xf32, #tpu.memory_space<vmem>>, vector<8x1xf32>
    %cst_26 = arith.constant dense<0.000000e+00> : vector<8xf32>
    %51 = vector.multi_reduction <add>, %48, %cst_26 [1] : vector<8x1024xf32> to vector<8xf32>
    %52 = vector.shape_cast %51 : vector<8xf32> to vector<8x1xf32>
    %cst_27 = arith.constant 1.024000e+03 : f32
    %53 = vector.broadcast %cst_27 : f32 to vector<8x1xf32>
    %54 = arith.divf %52, %53 : vector<8x1xf32>
    %55 = arith.mulf %48, %48 : vector<8x1024xf32>
    %cst_28 = arith.constant dense<0.000000e+00> : vector<8xf32>
    %56 = vector.multi_reduction <add>, %55, %cst_28 [1] : vector<8x1024xf32> to vector<8xf32>
    %57 = vector.shape_cast %56 : vector<8xf32> to vector<8x1xf32>
    %cst_29 = arith.constant 1.024000e+03 : f32
    %58 = vector.broadcast %cst_29 : f32 to vector<8x1xf32>
    %59 = arith.divf %57, %58 : vector<8x1xf32>
    %60 = arith.mulf %54, %54 : vector<8x1xf32>
    %61 = arith.subf %59, %60 : vector<8x1xf32>
    %cst_30 = arith.constant 0.000000e+00 : f32
    %62 = vector.broadcast %cst_30 : f32 to vector<8x1xf32>
    %63 = arith.maximumf %61, %62 : vector<8x1xf32>
    %64 = vector.broadcast %54 : vector<8x1xf32> to vector<8x1024xf32>
    %65 = arith.subf %48, %64 : vector<8x1024xf32>
    %cst_31 = arith.constant 9.99999974E-6 : f32
    %66 = vector.broadcast %cst_31 : f32 to vector<8x1xf32>
    %67 = arith.addf %63, %66 : vector<8x1xf32>
    %68 = math.rsqrt %67 : vector<8x1xf32>
    %69 = vector.broadcast %68 : vector<8x1xf32> to vector<8x1024xf32>
    %70 = arith.mulf %65, %69 : vector<8x1024xf32>
    %71 = vector.broadcast %49 : vector<8x1xf32> to vector<8x1024xf32>
    %72 = arith.mulf %70, %71 : vector<8x1024xf32>
    %73 = vector.broadcast %50 : vector<8x1xf32> to vector<8x1024xf32>
    %74 = arith.addf %72, %73 : vector<8x1024xf32>
    %cst_32 = arith.constant 5.000000e-01 : f32
    %75 = vector.broadcast %cst_32 : f32 to vector<8x1024xf32>
    %76 = arith.mulf %75, %74 : vector<8x1024xf32>
    %cst_33 = arith.constant 4.471500e-02 : f32
    %77 = vector.broadcast %cst_33 : f32 to vector<8x1024xf32>
    %78 = arith.mulf %77, %74 : vector<8x1024xf32>
    %79 = arith.mulf %78, %74 : vector<8x1024xf32>
    %80 = arith.mulf %79, %74 : vector<8x1024xf32>
    %81 = arith.addf %74, %80 : vector<8x1024xf32>
    %cst_34 = arith.constant 0.797884583 : f32
    %82 = vector.broadcast %cst_34 : f32 to vector<8x1024xf32>
    %83 = arith.mulf %82, %81 : vector<8x1024xf32>
    %84 = math.tanh %83 : vector<8x1024xf32>
    %cst_35 = arith.constant 1.000000e+00 : f32
    %85 = vector.broadcast %cst_35 : f32 to vector<8x1024xf32>
    %86 = arith.addf %85, %84 : vector<8x1024xf32>
    %87 = arith.mulf %76, %86 : vector<8x1024xf32>
    %c0_36 = arith.constant 0 : index
    %c0_37 = arith.constant 0 : index
    %88 = vector.load %arg2[%c0_36, %c0_37] : memref<1x1024xi32, #tpu.memory_space<vmem>>, vector<1x1024xi32>
    %c73_i32 = arith.constant 73 : i32
    %89 = tpu.dynamic_rotate %87 by %c73_i32 dim 1 : vector<8x1024xf32>, i32 -> vector<8x1024xf32>
    %c0_i32 = arith.constant 0 : i32
    %90 = vector.broadcast %c0_i32 : i32 to vector<1x1024xi32>
    %91 = arith.shrsi %88, %90 : vector<1x1024xi32>
    %c1_i32 = arith.constant 1 : i32
    %92 = vector.broadcast %c1_i32 : i32 to vector<1x1024xi32>
    %93 = arith.andi %91, %92 : vector<1x1024xi32>
    %94 = arith.sitofp %93 : vector<1x1024xi32> to vector<1x1024xf32>
    %95 = vector.broadcast %94 : vector<1x1024xf32> to vector<8x1024xf32>
    %96 = arith.mulf %89, %95 : vector<8x1024xf32>
    %c72_i32 = arith.constant 72 : i32
    %97 = tpu.dynamic_rotate %87 by %c72_i32 dim 1 : vector<8x1024xf32>, i32 -> vector<8x1024xf32>
    %c1_i32_38 = arith.constant 1 : i32
    %98 = vector.broadcast %c1_i32_38 : i32 to vector<1x1024xi32>
    %99 = arith.shrsi %88, %98 : vector<1x1024xi32>
    %c1_i32_39 = arith.constant 1 : i32
    %100 = vector.broadcast %c1_i32_39 : i32 to vector<1x1024xi32>
    %101 = arith.andi %99, %100 : vector<1x1024xi32>
    %102 = arith.sitofp %101 : vector<1x1024xi32> to vector<1x1024xf32>
    %103 = vector.broadcast %102 : vector<1x1024xf32> to vector<8x1024xf32>
    %104 = arith.mulf %97, %103 : vector<8x1024xf32>
    %c71_i32 = arith.constant 71 : i32
    %105 = tpu.dynamic_rotate %87 by %c71_i32 dim 1 : vector<8x1024xf32>, i32 -> vector<8x1024xf32>
    %c2_i32 = arith.constant 2 : i32
    %106 = vector.broadcast %c2_i32 : i32 to vector<1x1024xi32>
    %107 = arith.shrsi %88, %106 : vector<1x1024xi32>
    %c1_i32_40 = arith.constant 1 : i32
    %108 = vector.broadcast %c1_i32_40 : i32 to vector<1x1024xi32>
    %109 = arith.andi %107, %108 : vector<1x1024xi32>
    %110 = arith.sitofp %109 : vector<1x1024xi32> to vector<1x1024xf32>
    %111 = vector.broadcast %110 : vector<1x1024xf32> to vector<8x1024xf32>
    %112 = arith.mulf %105, %111 : vector<8x1024xf32>
    %113 = tpu.concatenate %96, %104, %112 in 0 : vector<8x1024xf32>, vector<8x1024xf32>, vector<8x1024xf32> -> vector<24x1024xf32>
    %c0_41 = arith.constant 0 : index
    %c0_42 = arith.constant 0 : index
    %c0_43 = arith.constant 0 : index
    %114 = vector.load %arg5[%c0_41, %c0_42, %c0_43] : memref<9x8x24xf32, #tpu.memory_space<vmem>>, vector<1x8x24xf32>
    %115 = vector.shape_cast %114 : vector<1x8x24xf32> to vector<8x24xf32>
    %cst_44 = arith.constant dense<0.000000e+00> : vector<8x1024xf32>
    %116 = tpu.matmul %115, %113, %cst_44 {dimension_numbers = #tpu.dot_dimension_numbers<[1], [0], [0], [1], [0, 0, 1, 1], [], []>} : vector<8x24xf32>, vector<24x1024xf32>, vector<8x1024xf32> -> vector<8x1024xf32>
    %c65_i32 = arith.constant 65 : i32
    %117 = tpu.dynamic_rotate %87 by %c65_i32 dim 1 : vector<8x1024xf32>, i32 -> vector<8x1024xf32>
    %c3_i32 = arith.constant 3 : i32
    %118 = vector.broadcast %c3_i32 : i32 to vector<1x1024xi32>
    %119 = arith.shrsi %88, %118 : vector<1x1024xi32>
    %c1_i32_45 = arith.constant 1 : i32
    %120 = vector.broadcast %c1_i32_45 : i32 to vector<1x1024xi32>
    %121 = arith.andi %119, %120 : vector<1x1024xi32>
    %122 = arith.sitofp %121 : vector<1x1024xi32> to vector<1x1024xf32>
    %123 = vector.broadcast %122 : vector<1x1024xf32> to vector<8x1024xf32>
    %124 = arith.mulf %117, %123 : vector<8x1024xf32>
    %c64_i32 = arith.constant 64 : i32
    %125 = tpu.dynamic_rotate %87 by %c64_i32 dim 1 : vector<8x1024xf32>, i32 -> vector<8x1024xf32>
    %c4_i32 = arith.constant 4 : i32
    %126 = vector.broadcast %c4_i32 : i32 to vector<1x1024xi32>
    %127 = arith.shrsi %88, %126 : vector<1x1024xi32>
    %c1_i32_46 = arith.constant 1 : i32
    %128 = vector.broadcast %c1_i32_46 : i32 to vector<1x1024xi32>
    %129 = arith.andi %127, %128 : vector<1x1024xi32>
    %130 = arith.sitofp %129 : vector<1x1024xi32> to vector<1x1024xf32>
    %131 = vector.broadcast %130 : vector<1x1024xf32> to vector<8x1024xf32>
    %132 = arith.mulf %125, %131 : vector<8x1024xf32>
    %c63_i32 = arith.constant 63 : i32
    %133 = tpu.dynamic_rotate %87 by %c63_i32 dim 1 : vector<8x1024xf32>, i32 -> vector<8x1024xf32>
    %c5_i32 = arith.constant 5 : i32
    %134 = vector.broadcast %c5_i32 : i32 to vector<1x1024xi32>
    %135 = arith.shrsi %88, %134 : vector<1x1024xi32>
    %c1_i32_47 = arith.constant 1 : i32
    %136 = vector.broadcast %c1_i32_47 : i32 to vector<1x1024xi32>
    %137 = arith.andi %135, %136 : vector<1x1024xi32>
    %138 = arith.sitofp %137 : vector<1x1024xi32> to vector<1x1024xf32>
    %139 = vector.broadcast %138 : vector<1x1024xf32> to vector<8x1024xf32>
    %140 = arith.mulf %133, %139 : vector<8x1024xf32>
    %141 = tpu.concatenate %124, %132, %140 in 0 : vector<8x1024xf32>, vector<8x1024xf32>, vector<8x1024xf32> -> vector<24x1024xf32>
    %c1_48 = arith.constant 1 : index
    %c0_49 = arith.constant 0 : index
    %c0_50 = arith.constant 0 : index
    %142 = vector.load %arg5[%c1_48, %c0_49, %c0_50] : memref<9x8x24xf32, #tpu.memory_space<vmem>>, vector<1x8x24xf32>
    %143 = vector.shape_cast %142 : vector<1x8x24xf32> to vector<8x24xf32>
    %cst_51 = arith.constant dense<0.000000e+00> : vector<8x1024xf32>
    %144 = tpu.matmul %143, %141, %cst_51 {dimension_numbers = #tpu.dot_dimension_numbers<[1], [0], [0], [1], [0, 0, 1, 1], [], []>} : vector<8x24xf32>, vector<24x1024xf32>, vector<8x1024xf32> -> vector<8x1024xf32>
    %145 = arith.addf %116, %144 : vector<8x1024xf32>
    %c57_i32 = arith.constant 57 : i32
    %146 = tpu.dynamic_rotate %87 by %c57_i32 dim 1 : vector<8x1024xf32>, i32 -> vector<8x1024xf32>
    %c6_i32 = arith.constant 6 : i32
    %147 = vector.broadcast %c6_i32 : i32 to vector<1x1024xi32>
    %148 = arith.shrsi %88, %147 : vector<1x1024xi32>
    %c1_i32_52 = arith.constant 1 : i32
    %149 = vector.broadcast %c1_i32_52 : i32 to vector<1x1024xi32>
    %150 = arith.andi %148, %149 : vector<1x1024xi32>
    %151 = arith.sitofp %150 : vector<1x1024xi32> to vector<1x1024xf32>
    %152 = vector.broadcast %151 : vector<1x1024xf32> to vector<8x1024xf32>
    %153 = arith.mulf %146, %152 : vector<8x1024xf32>
    %c56_i32 = arith.constant 56 : i32
    %154 = tpu.dynamic_rotate %87 by %c56_i32 dim 1 : vector<8x1024xf32>, i32 -> vector<8x1024xf32>
    %c7_i32 = arith.constant 7 : i32
    %155 = vector.broadcast %c7_i32 : i32 to vector<1x1024xi32>
    %156 = arith.shrsi %88, %155 : vector<1x1024xi32>
    %c1_i32_53 = arith.constant 1 : i32
    %157 = vector.broadcast %c1_i32_53 : i32 to vector<1x1024xi32>
    %158 = arith.andi %156, %157 : vector<1x1024xi32>
    %159 = arith.sitofp %158 : vector<1x1024xi32> to vector<1x1024xf32>
    %160 = vector.broadcast %159 : vector<1x1024xf32> to vector<8x1024xf32>
    %161 = arith.mulf %154, %160 : vector<8x1024xf32>
    %c55_i32 = arith.constant 55 : i32
    %162 = tpu.dynamic_rotate %87 by %c55_i32 dim 1 : vector<8x1024xf32>, i32 -> vector<8x1024xf32>
    %c8_i32 = arith.constant 8 : i32
    %163 = vector.broadcast %c8_i32 : i32 to vector<1x1024xi32>
    %164 = arith.shrsi %88, %163 : vector<1x1024xi32>
    %c1_i32_54 = arith.constant 1 : i32
    %165 = vector.broadcast %c1_i32_54 : i32 to vector<1x1024xi32>
    %166 = arith.andi %164, %165 : vector<1x1024xi32>
    %167 = arith.sitofp %166 : vector<1x1024xi32> to vector<1x1024xf32>
    %168 = vector.broadcast %167 : vector<1x1024xf32> to vector<8x1024xf32>
    %169 = arith.mulf %162, %168 : vector<8x1024xf32>
    %170 = tpu.concatenate %153, %161, %169 in 0 : vector<8x1024xf32>, vector<8x1024xf32>, vector<8x1024xf32> -> vector<24x1024xf32>
    %c2 = arith.constant 2 : index
    %c0_55 = arith.constant 0 : index
    %c0_56 = arith.constant 0 : index
    %171 = vector.load %arg5[%c2, %c0_55, %c0_56] : memref<9x8x24xf32, #tpu.memory_space<vmem>>, vector<1x8x24xf32>
    %172 = vector.shape_cast %171 : vector<1x8x24xf32> to vector<8x24xf32>
    %cst_57 = arith.constant dense<0.000000e+00> : vector<8x1024xf32>
    %173 = tpu.matmul %172, %170, %cst_57 {dimension_numbers = #tpu.dot_dimension_numbers<[1], [0], [0], [1], [0, 0, 1, 1], [], []>} : vector<8x24xf32>, vector<24x1024xf32>, vector<8x1024xf32> -> vector<8x1024xf32>
    %174 = arith.addf %145, %173 : vector<8x1024xf32>
    %c9_i32 = arith.constant 9 : i32
    %175 = tpu.dynamic_rotate %87 by %c9_i32 dim 1 : vector<8x1024xf32>, i32 -> vector<8x1024xf32>
    %c9_i32_58 = arith.constant 9 : i32
    %176 = vector.broadcast %c9_i32_58 : i32 to vector<1x1024xi32>
    %177 = arith.shrsi %88, %176 : vector<1x1024xi32>
    %c1_i32_59 = arith.constant 1 : i32
    %178 = vector.broadcast %c1_i32_59 : i32 to vector<1x1024xi32>
    %179 = arith.andi %177, %178 : vector<1x1024xi32>
    %180 = arith.sitofp %179 : vector<1x1024xi32> to vector<1x1024xf32>
    %181 = vector.broadcast %180 : vector<1x1024xf32> to vector<8x1024xf32>
    %182 = arith.mulf %175, %181 : vector<8x1024xf32>
    %c8_i32_60 = arith.constant 8 : i32
    %183 = tpu.dynamic_rotate %87 by %c8_i32_60 dim 1 : vector<8x1024xf32>, i32 -> vector<8x1024xf32>
    %c10_i32 = arith.constant 10 : i32
    %184 = vector.broadcast %c10_i32 : i32 to vector<1x1024xi32>
    %185 = arith.shrsi %88, %184 : vector<1x1024xi32>
    %c1_i32_61 = arith.constant 1 : i32
    %186 = vector.broadcast %c1_i32_61 : i32 to vector<1x1024xi32>
    %187 = arith.andi %185, %186 : vector<1x1024xi32>
    %188 = arith.sitofp %187 : vector<1x1024xi32> to vector<1x1024xf32>
    %189 = vector.broadcast %188 : vector<1x1024xf32> to vector<8x1024xf32>
    %190 = arith.mulf %183, %189 : vector<8x1024xf32>
    %c7_i32_62 = arith.constant 7 : i32
    %191 = tpu.dynamic_rotate %87 by %c7_i32_62 dim 1 : vector<8x1024xf32>, i32 -> vector<8x1024xf32>
    %c11_i32 = arith.constant 11 : i32
    %192 = vector.broadcast %c11_i32 : i32 to vector<1x1024xi32>
    %193 = arith.shrsi %88, %192 : vector<1x1024xi32>
    %c1_i32_63 = arith.constant 1 : i32
    %194 = vector.broadcast %c1_i32_63 : i32 to vector<1x1024xi32>
    %195 = arith.andi %193, %194 : vector<1x1024xi32>
    %196 = arith.sitofp %195 : vector<1x1024xi32> to vector<1x1024xf32>
    %197 = vector.broadcast %196 : vector<1x1024xf32> to vector<8x1024xf32>
    %198 = arith.mulf %191, %197 : vector<8x1024xf32>
    %199 = tpu.concatenate %182, %190, %198 in 0 : vector<8x1024xf32>, vector<8x1024xf32>, vector<8x1024xf32> -> vector<24x1024xf32>
    %c3 = arith.constant 3 : index
    %c0_64 = arith.constant 0 : index
    %c0_65 = arith.constant 0 : index
    %200 = vector.load %arg5[%c3, %c0_64, %c0_65] : memref<9x8x24xf32, #tpu.memory_space<vmem>>, vector<1x8x24xf32>
    %201 = vector.shape_cast %200 : vector<1x8x24xf32> to vector<8x24xf32>
    %cst_66 = arith.constant dense<0.000000e+00> : vector<8x1024xf32>
    %202 = tpu.matmul %201, %199, %cst_66 {dimension_numbers = #tpu.dot_dimension_numbers<[1], [0], [0], [1], [0, 0, 1, 1], [], []>} : vector<8x24xf32>, vector<24x1024xf32>, vector<8x1024xf32> -> vector<8x1024xf32>
    %203 = arith.addf %174, %202 : vector<8x1024xf32>
    %c1_i32_67 = arith.constant 1 : i32
    %204 = tpu.dynamic_rotate %87 by %c1_i32_67 dim 1 : vector<8x1024xf32>, i32 -> vector<8x1024xf32>
    %c12_i32 = arith.constant 12 : i32
    %205 = vector.broadcast %c12_i32 : i32 to vector<1x1024xi32>
    %206 = arith.shrsi %88, %205 : vector<1x1024xi32>
    %c1_i32_68 = arith.constant 1 : i32
    %207 = vector.broadcast %c1_i32_68 : i32 to vector<1x1024xi32>
    %208 = arith.andi %206, %207 : vector<1x1024xi32>
    %209 = arith.sitofp %208 : vector<1x1024xi32> to vector<1x1024xf32>
    %210 = vector.broadcast %209 : vector<1x1024xf32> to vector<8x1024xf32>
    %211 = arith.mulf %204, %210 : vector<8x1024xf32>
    %c1023_i32 = arith.constant 1023 : i32
    %212 = tpu.dynamic_rotate %87 by %c1023_i32 dim 1 : vector<8x1024xf32>, i32 -> vector<8x1024xf32>
    %c14_i32 = arith.constant 14 : i32
    %213 = vector.broadcast %c14_i32 : i32 to vector<1x1024xi32>
    %214 = arith.shrsi %88, %213 : vector<1x1024xi32>
    %c1_i32_69 = arith.constant 1 : i32
    %215 = vector.broadcast %c1_i32_69 : i32 to vector<1x1024xi32>
    %216 = arith.andi %214, %215 : vector<1x1024xi32>
    %217 = arith.sitofp %216 : vector<1x1024xi32> to vector<1x1024xf32>
    %218 = vector.broadcast %217 : vector<1x1024xf32> to vector<8x1024xf32>
    %219 = arith.mulf %212, %218 : vector<8x1024xf32>
    %220 = tpu.concatenate %211, %87, %219 in 0 : vector<8x1024xf32>, vector<8x1024xf32>, vector<8x1024xf32> -> vector<24x1024xf32>
    %c4 = arith.constant 4 : index
    %c0_70 = arith.constant 0 : index
    %c0_71 = arith.constant 0 : index
    %221 = vector.load %arg5[%c4, %c0_70, %c0_71] : memref<9x8x24xf32, #tpu.memory_space<vmem>>, vector<1x8x24xf32>
    %222 = vector.shape_cast %221 : vector<1x8x24xf32> to vector<8x24xf32>
    %cst_72 = arith.constant dense<0.000000e+00> : vector<8x1024xf32>
    %223 = tpu.matmul %222, %220, %cst_72 {dimension_numbers = #tpu.dot_dimension_numbers<[1], [0], [0], [1], [0, 0, 1, 1], [], []>} : vector<8x24xf32>, vector<24x1024xf32>, vector<8x1024xf32> -> vector<8x1024xf32>
    %224 = arith.addf %203, %223 : vector<8x1024xf32>
    %c1017_i32 = arith.constant 1017 : i32
    %225 = tpu.dynamic_rotate %87 by %c1017_i32 dim 1 : vector<8x1024xf32>, i32 -> vector<8x1024xf32>
    %c15_i32 = arith.constant 15 : i32
    %226 = vector.broadcast %c15_i32 : i32 to vector<1x1024xi32>
    %227 = arith.shrsi %88, %226 : vector<1x1024xi32>
    %c1_i32_73 = arith.constant 1 : i32
    %228 = vector.broadcast %c1_i32_73 : i32 to vector<1x1024xi32>
    %229 = arith.andi %227, %228 : vector<1x1024xi32>
    %230 = arith.sitofp %229 : vector<1x1024xi32> to vector<1x1024xf32>
    %231 = vector.broadcast %230 : vector<1x1024xf32> to vector<8x1024xf32>
    %232 = arith.mulf %225, %231 : vector<8x1024xf32>
    %c1016_i32 = arith.constant 1016 : i32
    %233 = tpu.dynamic_rotate %87 by %c1016_i32 dim 1 : vector<8x1024xf32>, i32 -> vector<8x1024xf32>
    %c16_i32 = arith.constant 16 : i32
    %234 = vector.broadcast %c16_i32 : i32 to vector<1x1024xi32>
    %235 = arith.shrsi %88, %234 : vector<1x1024xi32>
    %c1_i32_74 = arith.constant 1 : i32
    %236 = vector.broadcast %c1_i32_74 : i32 to vector<1x1024xi32>
    %237 = arith.andi %235, %236 : vector<1x1024xi32>
    %238 = arith.sitofp %237 : vector<1x1024xi32> to vector<1x1024xf32>
    %239 = vector.broadcast %238 : vector<1x1024xf32> to vector<8x1024xf32>
    %240 = arith.mulf %233, %239 : vector<8x1024xf32>
    %c1015_i32 = arith.constant 1015 : i32
    %241 = tpu.dynamic_rotate %87 by %c1015_i32 dim 1 : vector<8x1024xf32>, i32 -> vector<8x1024xf32>
    %c17_i32 = arith.constant 17 : i32
    %242 = vector.broadcast %c17_i32 : i32 to vector<1x1024xi32>
    %243 = arith.shrsi %88, %242 : vector<1x1024xi32>
    %c1_i32_75 = arith.constant 1 : i32
    %244 = vector.broadcast %c1_i32_75 : i32 to vector<1x1024xi32>
    %245 = arith.andi %243, %244 : vector<1x1024xi32>
    %246 = arith.sitofp %245 : vector<1x1024xi32> to vector<1x1024xf32>
    %247 = vector.broadcast %246 : vector<1x1024xf32> to vector<8x1024xf32>
    %248 = arith.mulf %241, %247 : vector<8x1024xf32>
    %249 = tpu.concatenate %232, %240, %248 in 0 : vector<8x1024xf32>, vector<8x1024xf32>, vector<8x1024xf32> -> vector<24x1024xf32>
    %c5 = arith.constant 5 : index
    %c0_76 = arith.constant 0 : index
    %c0_77 = arith.constant 0 : index
    %250 = vector.load %arg5[%c5, %c0_76, %c0_77] : memref<9x8x24xf32, #tpu.memory_space<vmem>>, vector<1x8x24xf32>
    %251 = vector.shape_cast %250 : vector<1x8x24xf32> to vector<8x24xf32>
    %cst_78 = arith.constant dense<0.000000e+00> : vector<8x1024xf32>
    %252 = tpu.matmul %251, %249, %cst_78 {dimension_numbers = #tpu.dot_dimension_numbers<[1], [0], [0], [1], [0, 0, 1, 1], [], []>} : vector<8x24xf32>, vector<24x1024xf32>, vector<8x1024xf32> -> vector<8x1024xf32>
    %253 = arith.addf %224, %252 : vector<8x1024xf32>
    %c969_i32 = arith.constant 969 : i32
    %254 = tpu.dynamic_rotate %87 by %c969_i32 dim 1 : vector<8x1024xf32>, i32 -> vector<8x1024xf32>
    %c18_i32 = arith.constant 18 : i32
    %255 = vector.broadcast %c18_i32 : i32 to vector<1x1024xi32>
    %256 = arith.shrsi %88, %255 : vector<1x1024xi32>
    %c1_i32_79 = arith.constant 1 : i32
    %257 = vector.broadcast %c1_i32_79 : i32 to vector<1x1024xi32>
    %258 = arith.andi %256, %257 : vector<1x1024xi32>
    %259 = arith.sitofp %258 : vector<1x1024xi32> to vector<1x1024xf32>
    %260 = vector.broadcast %259 : vector<1x1024xf32> to vector<8x1024xf32>
    %261 = arith.mulf %254, %260 : vector<8x1024xf32>
    %c968_i32 = arith.constant 968 : i32
    %262 = tpu.dynamic_rotate %87 by %c968_i32 dim 1 : vector<8x1024xf32>, i32 -> vector<8x1024xf32>
    %c19_i32 = arith.constant 19 : i32
    %263 = vector.broadcast %c19_i32 : i32 to vector<1x1024xi32>
    %264 = arith.shrsi %88, %263 : vector<1x1024xi32>
    %c1_i32_80 = arith.constant 1 : i32
    %265 = vector.broadcast %c1_i32_80 : i32 to vector<1x1024xi32>
    %266 = arith.andi %264, %265 : vector<1x1024xi32>
    %267 = arith.sitofp %266 : vector<1x1024xi32> to vector<1x1024xf32>
    %268 = vector.broadcast %267 : vector<1x1024xf32> to vector<8x1024xf32>
    %269 = arith.mulf %262, %268 : vector<8x1024xf32>
    %c967_i32 = arith.constant 967 : i32
    %270 = tpu.dynamic_rotate %87 by %c967_i32 dim 1 : vector<8x1024xf32>, i32 -> vector<8x1024xf32>
    %c20_i32 = arith.constant 20 : i32
    %271 = vector.broadcast %c20_i32 : i32 to vector<1x1024xi32>
    %272 = arith.shrsi %88, %271 : vector<1x1024xi32>
    %c1_i32_81 = arith.constant 1 : i32
    %273 = vector.broadcast %c1_i32_81 : i32 to vector<1x1024xi32>
    %274 = arith.andi %272, %273 : vector<1x1024xi32>
    %275 = arith.sitofp %274 : vector<1x1024xi32> to vector<1x1024xf32>
    %276 = vector.broadcast %275 : vector<1x1024xf32> to vector<8x1024xf32>
    %277 = arith.mulf %270, %276 : vector<8x1024xf32>
    %278 = tpu.concatenate %261, %269, %277 in 0 : vector<8x1024xf32>, vector<8x1024xf32>, vector<8x1024xf32> -> vector<24x1024xf32>
    %c6 = arith.constant 6 : index
    %c0_82 = arith.constant 0 : index
    %c0_83 = arith.constant 0 : index
    %279 = vector.load %arg5[%c6, %c0_82, %c0_83] : memref<9x8x24xf32, #tpu.memory_space<vmem>>, vector<1x8x24xf32>
    %280 = vector.shape_cast %279 : vector<1x8x24xf32> to vector<8x24xf32>
    %cst_84 = arith.constant dense<0.000000e+00> : vector<8x1024xf32>
    %281 = tpu.matmul %280, %278, %cst_84 {dimension_numbers = #tpu.dot_dimension_numbers<[1], [0], [0], [1], [0, 0, 1, 1], [], []>} : vector<8x24xf32>, vector<24x1024xf32>, vector<8x1024xf32> -> vector<8x1024xf32>
    %282 = arith.addf %253, %281 : vector<8x1024xf32>
    %c961_i32 = arith.constant 961 : i32
    %283 = tpu.dynamic_rotate %87 by %c961_i32 dim 1 : vector<8x1024xf32>, i32 -> vector<8x1024xf32>
    %c21_i32 = arith.constant 21 : i32
    %284 = vector.broadcast %c21_i32 : i32 to vector<1x1024xi32>
    %285 = arith.shrsi %88, %284 : vector<1x1024xi32>
    %c1_i32_85 = arith.constant 1 : i32
    %286 = vector.broadcast %c1_i32_85 : i32 to vector<1x1024xi32>
    %287 = arith.andi %285, %286 : vector<1x1024xi32>
    %288 = arith.sitofp %287 : vector<1x1024xi32> to vector<1x1024xf32>
    %289 = vector.broadcast %288 : vector<1x1024xf32> to vector<8x1024xf32>
    %290 = arith.mulf %283, %289 : vector<8x1024xf32>
    %c960_i32 = arith.constant 960 : i32
    %291 = tpu.dynamic_rotate %87 by %c960_i32 dim 1 : vector<8x1024xf32>, i32 -> vector<8x1024xf32>
    %c22_i32 = arith.constant 22 : i32
    %292 = vector.broadcast %c22_i32 : i32 to vector<1x1024xi32>
    %293 = arith.shrsi %88, %292 : vector<1x1024xi32>
    %c1_i32_86 = arith.constant 1 : i32
    %294 = vector.broadcast %c1_i32_86 : i32 to vector<1x1024xi32>
    %295 = arith.andi %293, %294 : vector<1x1024xi32>
    %296 = arith.sitofp %295 : vector<1x1024xi32> to vector<1x1024xf32>
    %297 = vector.broadcast %296 : vector<1x1024xf32> to vector<8x1024xf32>
    %298 = arith.mulf %291, %297 : vector<8x1024xf32>
    %c959_i32 = arith.constant 959 : i32
    %299 = tpu.dynamic_rotate %87 by %c959_i32 dim 1 : vector<8x1024xf32>, i32 -> vector<8x1024xf32>
    %c23_i32 = arith.constant 23 : i32
    %300 = vector.broadcast %c23_i32 : i32 to vector<1x1024xi32>
    %301 = arith.shrsi %88, %300 : vector<1x1024xi32>
    %c1_i32_87 = arith.constant 1 : i32
    %302 = vector.broadcast %c1_i32_87 : i32 to vector<1x1024xi32>
    %303 = arith.andi %301, %302 : vector<1x1024xi32>
    %304 = arith.sitofp %303 : vector<1x1024xi32> to vector<1x1024xf32>
    %305 = vector.broadcast %304 : vector<1x1024xf32> to vector<8x1024xf32>
    %306 = arith.mulf %299, %305 : vector<8x1024xf32>
    %307 = tpu.concatenate %290, %298, %306 in 0 : vector<8x1024xf32>, vector<8x1024xf32>, vector<8x1024xf32> -> vector<24x1024xf32>
    %c7 = arith.constant 7 : index
    %c0_88 = arith.constant 0 : index
    %c0_89 = arith.constant 0 : index
    %308 = vector.load %arg5[%c7, %c0_88, %c0_89] : memref<9x8x24xf32, #tpu.memory_space<vmem>>, vector<1x8x24xf32>
    %309 = vector.shape_cast %308 : vector<1x8x24xf32> to vector<8x24xf32>
    %cst_90 = arith.constant dense<0.000000e+00> : vector<8x1024xf32>
    %310 = tpu.matmul %309, %307, %cst_90 {dimension_numbers = #tpu.dot_dimension_numbers<[1], [0], [0], [1], [0, 0, 1, 1], [], []>} : vector<8x24xf32>, vector<24x1024xf32>, vector<8x1024xf32> -> vector<8x1024xf32>
    %311 = arith.addf %282, %310 : vector<8x1024xf32>
    %c953_i32 = arith.constant 953 : i32
    %312 = tpu.dynamic_rotate %87 by %c953_i32 dim 1 : vector<8x1024xf32>, i32 -> vector<8x1024xf32>
    %c24_i32 = arith.constant 24 : i32
    %313 = vector.broadcast %c24_i32 : i32 to vector<1x1024xi32>
    %314 = arith.shrsi %88, %313 : vector<1x1024xi32>
    %c1_i32_91 = arith.constant 1 : i32
    %315 = vector.broadcast %c1_i32_91 : i32 to vector<1x1024xi32>
    %316 = arith.andi %314, %315 : vector<1x1024xi32>
    %317 = arith.sitofp %316 : vector<1x1024xi32> to vector<1x1024xf32>
    %318 = vector.broadcast %317 : vector<1x1024xf32> to vector<8x1024xf32>
    %319 = arith.mulf %312, %318 : vector<8x1024xf32>
    %c952_i32 = arith.constant 952 : i32
    %320 = tpu.dynamic_rotate %87 by %c952_i32 dim 1 : vector<8x1024xf32>, i32 -> vector<8x1024xf32>
    %c25_i32 = arith.constant 25 : i32
    %321 = vector.broadcast %c25_i32 : i32 to vector<1x1024xi32>
    %322 = arith.shrsi %88, %321 : vector<1x1024xi32>
    %c1_i32_92 = arith.constant 1 : i32
    %323 = vector.broadcast %c1_i32_92 : i32 to vector<1x1024xi32>
    %324 = arith.andi %322, %323 : vector<1x1024xi32>
    %325 = arith.sitofp %324 : vector<1x1024xi32> to vector<1x1024xf32>
    %326 = vector.broadcast %325 : vector<1x1024xf32> to vector<8x1024xf32>
    %327 = arith.mulf %320, %326 : vector<8x1024xf32>
    %c951_i32 = arith.constant 951 : i32
    %328 = tpu.dynamic_rotate %87 by %c951_i32 dim 1 : vector<8x1024xf32>, i32 -> vector<8x1024xf32>
    %c26_i32 = arith.constant 26 : i32
    %329 = vector.broadcast %c26_i32 : i32 to vector<1x1024xi32>
    %330 = arith.shrsi %88, %329 : vector<1x1024xi32>
    %c1_i32_93 = arith.constant 1 : i32
    %331 = vector.broadcast %c1_i32_93 : i32 to vector<1x1024xi32>
    %332 = arith.andi %330, %331 : vector<1x1024xi32>
    %333 = arith.sitofp %332 : vector<1x1024xi32> to vector<1x1024xf32>
    %334 = vector.broadcast %333 : vector<1x1024xf32> to vector<8x1024xf32>
    %335 = arith.mulf %328, %334 : vector<8x1024xf32>
    %336 = tpu.concatenate %319, %327, %335 in 0 : vector<8x1024xf32>, vector<8x1024xf32>, vector<8x1024xf32> -> vector<24x1024xf32>
    %c8 = arith.constant 8 : index
    %c0_94 = arith.constant 0 : index
    %c0_95 = arith.constant 0 : index
    %337 = vector.load %arg5[%c8, %c0_94, %c0_95] : memref<9x8x24xf32, #tpu.memory_space<vmem>>, vector<1x8x24xf32>
    %338 = vector.shape_cast %337 : vector<1x8x24xf32> to vector<8x24xf32>
    %cst_96 = arith.constant dense<0.000000e+00> : vector<8x1024xf32>
    %339 = tpu.matmul %338, %336, %cst_96 {dimension_numbers = #tpu.dot_dimension_numbers<[1], [0], [0], [1], [0, 0, 1, 1], [], []>} : vector<8x24xf32>, vector<24x1024xf32>, vector<8x1024xf32> -> vector<8x1024xf32>
    %340 = arith.addf %311, %339 : vector<8x1024xf32>
    %c0_97 = arith.constant 0 : index
    %c0_98 = arith.constant 0 : index
    %341 = vector.load %arg6[%c0_97, %c0_98] : memref<8x1xf32, #tpu.memory_space<vmem>>, vector<8x1xf32>
    %342 = vector.broadcast %341 : vector<8x1xf32> to vector<8x1024xf32>
    %343 = arith.addf %340, %342 : vector<8x1024xf32>
    %c0_99 = arith.constant 0 : index
    %c0_100 = arith.constant 0 : index
    %344 = vector.load %arg13[%c0_99, %c0_100] : memref<8x1xf32, #tpu.memory_space<vmem>>, vector<8x1xf32>
    %c0_101 = arith.constant 0 : index
    %c0_102 = arith.constant 0 : index
    %345 = vector.load %arg14[%c0_101, %c0_102] : memref<8x1xf32, #tpu.memory_space<vmem>>, vector<8x1xf32>
    %cst_103 = arith.constant dense<0.000000e+00> : vector<8xf32>
    %346 = vector.multi_reduction <add>, %343, %cst_103 [1] : vector<8x1024xf32> to vector<8xf32>
    %347 = vector.shape_cast %346 : vector<8xf32> to vector<8x1xf32>
    %cst_104 = arith.constant 1.024000e+03 : f32
    %348 = vector.broadcast %cst_104 : f32 to vector<8x1xf32>
    %349 = arith.divf %347, %348 : vector<8x1xf32>
    %350 = arith.mulf %343, %343 : vector<8x1024xf32>
    %cst_105 = arith.constant dense<0.000000e+00> : vector<8xf32>
    %351 = vector.multi_reduction <add>, %350, %cst_105 [1] : vector<8x1024xf32> to vector<8xf32>
    %352 = vector.shape_cast %351 : vector<8xf32> to vector<8x1xf32>
    %cst_106 = arith.constant 1.024000e+03 : f32
    %353 = vector.broadcast %cst_106 : f32 to vector<8x1xf32>
    %354 = arith.divf %352, %353 : vector<8x1xf32>
    %355 = arith.mulf %349, %349 : vector<8x1xf32>
    %356 = arith.subf %354, %355 : vector<8x1xf32>
    %cst_107 = arith.constant 0.000000e+00 : f32
    %357 = vector.broadcast %cst_107 : f32 to vector<8x1xf32>
    %358 = arith.maximumf %356, %357 : vector<8x1xf32>
    %359 = vector.broadcast %349 : vector<8x1xf32> to vector<8x1024xf32>
    %360 = arith.subf %343, %359 : vector<8x1024xf32>
    %cst_108 = arith.constant 9.99999974E-6 : f32
    %361 = vector.broadcast %cst_108 : f32 to vector<8x1xf32>
    %362 = arith.addf %358, %361 : vector<8x1xf32>
    %363 = math.rsqrt %362 : vector<8x1xf32>
    %364 = vector.broadcast %363 : vector<8x1xf32> to vector<8x1024xf32>
    %365 = arith.mulf %360, %364 : vector<8x1024xf32>
    %366 = vector.broadcast %344 : vector<8x1xf32> to vector<8x1024xf32>
    %367 = arith.mulf %365, %366 : vector<8x1024xf32>
    %368 = vector.broadcast %345 : vector<8x1xf32> to vector<8x1024xf32>
    %369 = arith.addf %367, %368 : vector<8x1024xf32>
    %cst_109 = arith.constant 5.000000e-01 : f32
    %370 = vector.broadcast %cst_109 : f32 to vector<8x1024xf32>
    %371 = arith.mulf %370, %369 : vector<8x1024xf32>
    %cst_110 = arith.constant 4.471500e-02 : f32
    %372 = vector.broadcast %cst_110 : f32 to vector<8x1024xf32>
    %373 = arith.mulf %372, %369 : vector<8x1024xf32>
    %374 = arith.mulf %373, %369 : vector<8x1024xf32>
    %375 = arith.mulf %374, %369 : vector<8x1024xf32>
    %376 = arith.addf %369, %375 : vector<8x1024xf32>
    %cst_111 = arith.constant 0.797884583 : f32
    %377 = vector.broadcast %cst_111 : f32 to vector<8x1024xf32>
    %378 = arith.mulf %377, %376 : vector<8x1024xf32>
    %379 = math.tanh %378 : vector<8x1024xf32>
    %cst_112 = arith.constant 1.000000e+00 : f32
    %380 = vector.broadcast %cst_112 : f32 to vector<8x1024xf32>
    %381 = arith.addf %380, %379 : vector<8x1024xf32>
    %382 = arith.mulf %371, %381 : vector<8x1024xf32>
    %c0_113 = arith.constant 0 : index
    %c0_114 = arith.constant 0 : index
    %383 = vector.load %arg7[%c0_113, %c0_114] : memref<8x8xf32, #tpu.memory_space<vmem>>, vector<8x8xf32>
    %cst_115 = arith.constant dense<0.000000e+00> : vector<8x1024xf32>
    %384 = tpu.matmul %383, %382, %cst_115 {dimension_numbers = #tpu.dot_dimension_numbers<[1], [0], [0], [1], [0, 0, 1, 1], [], []>} : vector<8x8xf32>, vector<8x1024xf32>, vector<8x1024xf32> -> vector<8x1024xf32>
    %c0_116 = arith.constant 0 : index
    %c0_117 = arith.constant 0 : index
    %385 = vector.load %arg8[%c0_116, %c0_117] : memref<8x1xf32, #tpu.memory_space<vmem>>, vector<8x1xf32>
    %386 = vector.broadcast %385 : vector<8x1xf32> to vector<8x1024xf32>
    %387 = arith.addf %384, %386 : vector<8x1024xf32>
    %388 = arith.addf %387, %4 : vector<8x1024xf32>
    %c0_118 = arith.constant 0 : index
    %c0_119 = arith.constant 0 : index
    %389 = vector.load %arg15[%c0_118, %c0_119] : memref<8x1xf32, #tpu.memory_space<vmem>>, vector<8x1xf32>
    %c0_120 = arith.constant 0 : index
    %c0_121 = arith.constant 0 : index
    %390 = vector.load %arg16[%c0_120, %c0_121] : memref<8x1xf32, #tpu.memory_space<vmem>>, vector<8x1xf32>
    %cst_122 = arith.constant dense<0.000000e+00> : vector<8xf32>
    %391 = vector.multi_reduction <add>, %388, %cst_122 [1] : vector<8x1024xf32> to vector<8xf32>
    %392 = vector.shape_cast %391 : vector<8xf32> to vector<8x1xf32>
    %cst_123 = arith.constant 1.024000e+03 : f32
    %393 = vector.broadcast %cst_123 : f32 to vector<8x1xf32>
    %394 = arith.divf %392, %393 : vector<8x1xf32>
    %395 = arith.mulf %388, %388 : vector<8x1024xf32>
    %cst_124 = arith.constant dense<0.000000e+00> : vector<8xf32>
    %396 = vector.multi_reduction <add>, %395, %cst_124 [1] : vector<8x1024xf32> to vector<8xf32>
    %397 = vector.shape_cast %396 : vector<8xf32> to vector<8x1xf32>
    %cst_125 = arith.constant 1.024000e+03 : f32
    %398 = vector.broadcast %cst_125 : f32 to vector<8x1xf32>
    %399 = arith.divf %397, %398 : vector<8x1xf32>
    %400 = arith.mulf %394, %394 : vector<8x1xf32>
    %401 = arith.subf %399, %400 : vector<8x1xf32>
    %cst_126 = arith.constant 0.000000e+00 : f32
    %402 = vector.broadcast %cst_126 : f32 to vector<8x1xf32>
    %403 = arith.maximumf %401, %402 : vector<8x1xf32>
    %404 = vector.broadcast %394 : vector<8x1xf32> to vector<8x1024xf32>
    %405 = arith.subf %388, %404 : vector<8x1024xf32>
    %cst_127 = arith.constant 9.99999974E-6 : f32
    %406 = vector.broadcast %cst_127 : f32 to vector<8x1xf32>
    %407 = arith.addf %403, %406 : vector<8x1xf32>
    %408 = math.rsqrt %407 : vector<8x1xf32>
    %409 = vector.broadcast %408 : vector<8x1xf32> to vector<8x1024xf32>
    %410 = arith.mulf %405, %409 : vector<8x1024xf32>
    %411 = vector.broadcast %389 : vector<8x1xf32> to vector<8x1024xf32>
    %412 = arith.mulf %410, %411 : vector<8x1024xf32>
    %413 = vector.broadcast %390 : vector<8x1xf32> to vector<8x1024xf32>
    %414 = arith.addf %412, %413 : vector<8x1024xf32>
    %cst_128 = arith.constant 5.000000e-01 : f32
    %415 = vector.broadcast %cst_128 : f32 to vector<8x1024xf32>
    %416 = arith.mulf %415, %414 : vector<8x1024xf32>
    %cst_129 = arith.constant 4.471500e-02 : f32
    %417 = vector.broadcast %cst_129 : f32 to vector<8x1024xf32>
    %418 = arith.mulf %417, %414 : vector<8x1024xf32>
    %419 = arith.mulf %418, %414 : vector<8x1024xf32>
    %420 = arith.mulf %419, %414 : vector<8x1024xf32>
    %421 = arith.addf %414, %420 : vector<8x1024xf32>
    %cst_130 = arith.constant 0.797884583 : f32
    %422 = vector.broadcast %cst_130 : f32 to vector<8x1024xf32>
    %423 = arith.mulf %422, %421 : vector<8x1024xf32>
    %424 = math.tanh %423 : vector<8x1024xf32>
    %cst_131 = arith.constant 1.000000e+00 : f32
    %425 = vector.broadcast %cst_131 : f32 to vector<8x1024xf32>
    %426 = arith.addf %425, %424 : vector<8x1024xf32>
    %427 = arith.mulf %416, %426 : vector<8x1024xf32>
    %428 = vector.extract_strided_slice %427 {offsets = [0, 0], sizes = [8, 512], strides = [1, 1]} : vector<8x1024xf32> to vector<8x512xf32>
    %c0_132 = arith.constant 0 : index
    %c0_133 = arith.constant 0 : index
    %c0_134 = arith.constant 0 : index
    %429 = vector.load %arg17[%c0_132, %c0_133, %c0_134] : memref<2x8x512xf32, #tpu.memory_space<vmem>>, vector<1x8x512xf32>
    %430 = vector.shape_cast %429 : vector<1x8x512xf32> to vector<8x512xf32>
    %431 = vector.shape_cast %428 : vector<8x512xf32> to vector<1x8x512xf32>
    tpu.vector_store %arg17[%c0_132, %c0_133, %c0_134], %431 {strides = array<i32>} : memref<2x8x512xf32, #tpu.memory_space<vmem>>, vector<1x8x512xf32>,
    %432 = vector.extract_strided_slice %427 {offsets = [0, 512], sizes = [8, 512], strides = [1, 1]} : vector<8x1024xf32> to vector<8x512xf32>
    %c1_135 = arith.constant 1 : index
    %c0_136 = arith.constant 0 : index
    %c0_137 = arith.constant 0 : index
    %433 = vector.load %arg17[%c1_135, %c0_136, %c0_137] : memref<2x8x512xf32, #tpu.memory_space<vmem>>, vector<1x8x512xf32>
    %434 = vector.shape_cast %433 : vector<1x8x512xf32> to vector<8x512xf32>
    %435 = vector.shape_cast %432 : vector<8x512xf32> to vector<1x8x512xf32>
    tpu.vector_store %arg17[%c1_135, %c0_136, %c0_137], %435 {strides = array<i32>} : memref<2x8x512xf32, #tpu.memory_space<vmem>>, vector<1x8x512xf32>,
    return
  }
  func.func @transform_0(%arg0: i32) -> (i32, i32, i32) {
    %c0_i32 = arith.constant 0 : i32
    %c0_i32_0 = arith.constant 0 : i32
    %c0_i32_1 = arith.constant 0 : i32
    %c0_i32_2 = arith.constant 0 : i32
    return %c0_i32, %c0_i32_0, %c0_i32_1 : i32, i32, i32
  }
  func.func @transform_1(%arg0: i32) -> (i32, i32) {
    %c0_i32 = arith.constant 0 : i32
    %c0_i32_0 = arith.constant 0 : i32
    %c0_i32_1 = arith.constant 0 : i32
    return %c0_i32, %c0_i32_0 : i32, i32
  }
  func.func @transform_2(%arg0: i32) -> (i32, i32) {
    %c0_i32 = arith.constant 0 : i32
    %c0_i32_0 = arith.constant 0 : i32
    %c0_i32_1 = arith.constant 0 : i32
    return %c0_i32, %c0_i32_0 : i32, i32
  }
  func.func @transform_3(%arg0: i32) -> (i32, i32) {
    %c0_i32 = arith.constant 0 : i32
    %c0_i32_0 = arith.constant 0 : i32
    %c0_i32_1 = arith.constant 0 : i32
    return %c0_i32, %c0_i32_0 : i32, i32
  }
  func.func @transform_4(%arg0: i32) -> (i32, i32, i32) {
    %c0_i32 = arith.constant 0 : i32
    %c0_i32_0 = arith.constant 0 : i32
    %c0_i32_1 = arith.constant 0 : i32
    %c0_i32_2 = arith.constant 0 : i32
    return %c0_i32, %c0_i32_0, %c0_i32_1 : i32, i32, i32
  }
  func.func @transform_5(%arg0: i32) -> (i32, i32) {
    %c0_i32 = arith.constant 0 : i32
    %c0_i32_0 = arith.constant 0 : i32
    %c0_i32_1 = arith.constant 0 : i32
    return %c0_i32, %c0_i32_0 : i32, i32
  }
  func.func @transform_6(%arg0: i32) -> (i32, i32) {
    %c0_i32 = arith.constant 0 : i32
    %c0_i32_0 = arith.constant 0 : i32
    %c0_i32_1 = arith.constant 0 : i32
    return %c0_i32, %c0_i32_0 : i32, i32
  }
  func.func @transform_7(%arg0: i32) -> (i32, i32) {
    %c0_i32 = arith.constant 0 : i32
    %c0_i32_0 = arith.constant 0 : i32
    %c0_i32_1 = arith.constant 0 : i32
    return %c0_i32, %c0_i32_0 : i32, i32
  }
  func.func @transform_8(%arg0: i32) -> (i32, i32) {
    %c0_i32 = arith.constant 0 : i32
    %c0_i32_0 = arith.constant 0 : i32
    %c0_i32_1 = arith.constant 0 : i32
    return %c0_i32, %c0_i32_0 : i32, i32
  }
  func.func @transform_9(%arg0: i32) -> (i32, i32) {
    %c0_i32 = arith.constant 0 : i32
    %c0_i32_0 = arith.constant 0 : i32
    %c0_i32_1 = arith.constant 0 : i32
    return %c0_i32, %c0_i32_0 : i32, i32
  }
  func.func @transform_10(%arg0: i32) -> (i32, i32) {
    %c0_i32 = arith.constant 0 : i32
    %c0_i32_0 = arith.constant 0 : i32
    %c0_i32_1 = arith.constant 0 : i32
    return %c0_i32, %c0_i32_0 : i32, i32
  }
  func.func @transform_11(%arg0: i32) -> (i32, i32) {
    %c0_i32 = arith.constant 0 : i32
    %c0_i32_0 = arith.constant 0 : i32
    %c0_i32_1 = arith.constant 0 : i32
    return %c0_i32, %c0_i32_0 : i32, i32
  }
  func.func @transform_12(%arg0: i32) -> (i32, i32) {
    %c0_i32 = arith.constant 0 : i32
    %c0_i32_0 = arith.constant 0 : i32
    %c0_i32_1 = arith.constant 0 : i32
    return %c0_i32, %c0_i32_0 : i32, i32
  }
  func.func @transform_13(%arg0: i32) -> (i32, i32) {
    %c0_i32 = arith.constant 0 : i32
    %c0_i32_0 = arith.constant 0 : i32
    %c0_i32_1 = arith.constant 0 : i32
    return %c0_i32, %c0_i32_0 : i32, i32
  }
  func.func @transform_14(%arg0: i32) -> (i32, i32) {
    %c0_i32 = arith.constant 0 : i32
    %c0_i32_0 = arith.constant 0 : i32
    %c0_i32_1 = arith.constant 0 : i32
    return %c0_i32, %c0_i32_0 : i32, i32
  }
  func.func @transform_15(%arg0: i32) -> (i32, i32) {
    %c0_i32 = arith.constant 0 : i32
    %c0_i32_0 = arith.constant 0 : i32
    %c0_i32_1 = arith.constant 0 : i32
    return %c0_i32, %c0_i32_0 : i32, i32
  }
  func.func @transform_16(%arg0: i32) -> (i32, i32, i32) {
    %c0_i32 = arith.constant 0 : i32
    %c0_i32_0 = arith.constant 0 : i32
    %c0_i32_1 = arith.constant 0 : i32
    %c0_i32_2 = arith.constant 0 : i32
    return %c0_i32, %c0_i32_0, %c0_i32_1 : i32, i32, i32
  }
}

</mosaic_0001>

<bundles_post_ra>
// kernel: residual_forward.1
= control target key start
LH: loop header
LB: loop body
LE: loop exit
PB: predicated region body
PF: predicated region fallthrough
CT: control target
= control target key end

     0   :  { %v3983_v3 = vmov 0   ;;  %v3984_v34 = vmov 1024.0   ;;  %vm234_vm4 = vcmask 64512   ;;  %s3987_s17 = smov 65   ;;  %s3988_s18 = smov 71   ;;  %vm879_vm11 = vcmask 195584   ;;  %s6210_s0 = inlined_call_operand.vmem [shape: f32[2,8,512], index: 0, kind: input, shape index: {}]   ;;  %s6211_s8 = inlined_call_operand.vmem [shape: f32[8,1], index: 8, kind: input, shape index: {}]   ;;  %s6212_s9 = inlined_call_operand.vmem [shape: f32[8,1], index: 9, kind: input, shape index: {}]   ;;  %s6213_s10 = inlined_call_operand.vmem [shape: f32[8,1], index: 10, kind: input, shape index: {}]   ;;  %s6214_s3 = inlined_call_operand.vmem [shape: f32[8,1], index: 3, kind: input, shape index: {}]   ;;  %s6215_s11 = inlined_call_operand.vmem [shape: f32[8,1], index: 11, kind: input, shape index: {}]   ;;  %s6216_s2 = inlined_call_operand.vmem [shape: f32[8,8], index: 2, kind: input, shape index: {}]   ;;  %s6217_s1 = inlined_call_operand.vmem [shape: s32[1,1024], index: 1, kind: input, shape index: {}]   ;;  %s6218_s4 = inlined_call_operand.vmem [shape: f32[9,8,24], index: 4, kind: input, shape index: {}]   ;;  %s6219_s5 = inlined_call_operand.vmem [shape: f32[8,1], index: 5, kind: input, shape index: {}]   ;;  %s6220_s12 = inlined_call_operand.vmem [shape: f32[8,1], index: 12, kind: input, shape index: {}]   ;;  %s6221_s13 = inlined_call_operand.vmem [shape: f32[8,1], index: 13, kind: input, shape index: {}]   ;;  %s6222_s7 = inlined_call_operand.vmem [shape: f32[8,1], index: 7, kind: input, shape index: {}]   ;;  %s6223_s14 = inlined_call_operand.vmem [shape: f32[8,1], index: 14, kind: input, shape index: {}]   ;;  %s6224_s6 = inlined_call_operand.vmem [shape: f32[8,8], index: 6, kind: input, shape index: {}]   ;;  %s6225_s15 = inlined_call_operand.vmem [shape: f32[8,1], index: 15, kind: input, shape index: {}]   ;;  %s6226_s16 = inlined_call_operand.vmem [shape: f32[2,8,512], index: 16, kind: output, shape index: {}]  }
   0x1   :  { %6280 = sst [smem:[#allocation53_spill]] %s6210_s0  ;;  %3896 = vset.pattern.permute.xlu1 %v3983_v3  ;;  %3897 = vset.pattern.permute.xlu2 %v3983_v3  ;;  %v62_v9 = vld [vmem:[%s6211_s8] sm:$0xff]  ;;  %3899 = vrcp.f32 %v3984_v34  ;;  %s3986_s0 = smov 64  }
   0x2   :  { %s6281_s23 = sld [smem:[#allocation53_spill]]  ;;  %3898 = vset.pattern.permute.xlu0 %v3983_v3  ;;  %131 = vperm.xlu1 %3896, %v62_v9   ;;  %v63_v22 = vld [vmem:[%s6212_s9] sm:$0xff]  ;;  %s3989_s19 = smov 72  }
   0x3   :  { %v398_v32 = vld [vmem:[%s6213_s10] sm:$0xff]  ;;  %s3990_s8 = smov 73   ;;  %s3991_s22 = smov 55  }
   0x4   :  { %s3992_s24 = smov 56   ;;  %s3993_s25 = smov 57  }
   0x5   :  { %s3994_s28 = smov 7   ;;  %s3995_s9 = smov 8  }
   0x6   :  { %s3996_s10 = smov 9  }
   0x7   :  { %v3900_v35 = vpop.eup %3899 }
   0x8   :  { %v4090_v0 = vld [vmem:[%s6281_s23] sm:$0xff]  ;;  %v4095_v1 = vld [vmem:[%s6281_s23 + $0x8] sm:$0xff]  ;;  %v4100_v2 = vld [vmem:[%s6281_s23 + $0x10] sm:$0xff]  ;;  %v74_v36 = vmul.f32 1024.0, %v3900_v35  ;;  %vm78_vm0 = vweird.f32 %v3900_v35 }
   0x9   :  { %v64_v4 = vadd.f32 %v4095_v1, %v4090_v0  ;;  %v81_v5 = vmul.f32 %v4090_v0, %v4090_v0  ;;  %v82_v6 = vmul.f32 %v4095_v1, %v4095_v1  ;;  %v83_v7 = vmul.f32 %v4100_v2, %v4100_v2  ;;  %v4113_v8 = vld [vmem:[%s6281_s23 + $0x18] sm:$0xff]  ;;  %v4124_v13 = vld [vmem:[%s6281_s23 + $0x20] sm:$0xff]  ;;  %v4132_v17 = vld [vmem:[%s6281_s23 + $0x28] sm:$0xff] }
   0xa   :  { %v84_v11 = vmul.f32 %v4113_v8, %v4113_v8  ;;  %v85_v15 = vmul.f32 %v4124_v13, %v4124_v13  ;;  %v86_v19 = vmul.f32 %v4132_v17, %v4132_v17  ;;  %v3775_v21 = vld [vmem:[%s6281_s23 + $0x30] sm:$0xff]  ;;  %v3776_v25 = vld [vmem:[%s6281_s23 + $0x38] sm:$0xff]  ;;  %144 = vperm.xlu1 %3896, %v63_v22   ;;  %v75_v37 = vsub.f32 1.0, %v74_v36 }
   0xb   :  { %v65_v10 = vadd.f32 %v64_v4, %v4100_v2  ;;  %v89_v12 = vadd.f32 %v82_v6, %v81_v5  ;;  %v87_v27 = vmul.f32 %v3775_v21, %v3775_v21  ;;  %v88_v30 = vmul.f32 %v3776_v25, %v3776_v25 }
   0xc   :  { %v76_v38 = vmul.f32 %v3900_v35, %v75_v37 }
   0xd   :  { %v66_v14 = vadd.f32 %v65_v10, %v4113_v8  ;;  %v90_v16 = vadd.f32 %v89_v12, %v83_v7 }
   0xe   :  { %v77_v39 = vadd.f32 %v3900_v35, %v76_v38 }
   0xf   :  { %v67_v18 = vadd.f32 %v4124_v13, %v66_v14  ;;  %v91_v20 = vadd.f32 %v90_v16, %v84_v11 }
  0x10   :  { %v4150_v41 = vsel %vm78_vm0, %v3900_v35, %v77_v39 }
  0x11   :  { %v68_v23 = vadd.f32 %v4132_v17, %v67_v18  ;;  %v92_v24 = vadd.f32 %v91_v20, %v85_v15  ;;  %6282 = vst [vmem:[#allocation2_spill] sm:$0xff] %v4150_v41 }
  0x12   :  { %460 = vperm.xlu1 %3896, %v398_v32   ;;  %v228_v32 = vld [vmem:[%s6214_s3] sm:$0xff]  ;;  %s3997_s3 = smov 127  }
  0x13   :  { %v69_v26 = vadd.f32 %v3775_v21, %v68_v23  ;;  %v93_v28 = vadd.f32 %v92_v24, %v86_v19  ;;  %231 = vperm.xlu2 %3897, %v228_v32  }
  0x15   :  { %v70_v29 = vadd.f32 %v3776_v25, %v69_v26  ;;  %v94_v31 = vadd.f32 %v93_v28, %v87_v27 }
  0x17   :  { %71 = vadd.xlane.f32.xlu0 %v70_v29  ;;  %v95_v33 = vadd.f32 %v94_v31, %v88_v30 }
  0x1f   :  { %96 = vadd.xlane.f32.xlu0 %v95_v33  ;;  %v399_v33 = vld [vmem:[%s6215_s11] sm:$0xff]  ;;  %s3998_s11 = smov 1  }
  0x33   :  { %473 = vperm.xlu0 %3898, %v399_v33  }
  0x74   :  { %v132_v53 = vpop.permute.xlu1 %131 }
  0x8a   :  { %v72_v40 = vpop.xlane.xlu0 %71 }
  0x8b   :  { %v80_v42 = vmul.f32 %v4150_v41, %v72_v40 }
  0x8d   :  { %v99_v44 = vmul.f32 %v80_v42, %v80_v42  ;;  %v102_v56 = vsub.f32 %v4090_v0, %v80_v42  ;;  %v103_v57 = vsub.f32 %v4095_v1, %v80_v42  ;;  %v104_v58 = vsub.f32 %v4100_v2, %v80_v42 }
  0x8e   :  { %v105_v59 = vsub.f32 %v4113_v8, %v80_v42  ;;  %v106_v60 = vsub.f32 %v4124_v13, %v80_v42  ;;  %v107_v62 = vsub.f32 %v4132_v17, %v80_v42  ;;  %v108_v63 = vsub.f32 %v3775_v21, %v80_v42  ;;  %v145_v8 = vpop.permute.xlu1 %144 }
  0x8f   :  { %v109_v3 = vsub.f32 %v3776_v25, %v80_v42 }
  0x92   :  { %v97_v43 = vpop.xlane.xlu0 %96 }
  0x93   :  { %v98_v45 = vmul.f32 %v97_v43, %v4150_v41 }
  0x95   :  { %v100_v46 = vsub.f32 %v98_v45, %v99_v44 }
  0x97   :  { %v101_v47 = vmax.f32 %v100_v46, 0.0 }
  0x99   :  { %v110_v48 = vadd.f32 1e-05, %v101_v47 }
  0x9b   :  { %3901 = vrsqrt.f32 %v110_v48  ;;  %vm117_vm2 = vweird.f32 %v110_v48 }
  0xa1   :  { %v3902_v49 = vpop.eup %3901 }
  0xa2   :  { %v112_v50 = vmul.f32 %v3902_v49, %v110_v48  ;;  %vm118_vm1 = vweird.f32 %v3902_v49 }
  0xa3   :  { %vm119_vm3 = vmor %vm117_vm2, %vm118_vm1 }
  0xa4   :  { %v113_v51 = vmul.f32 %v3902_v49, %v112_v50 }
  0xa6   :  { %v114_v52 = vmul.f32 0.5, %v113_v51 }
  0xa8   :  { %v115_v54 = vsub.f32 1.5, %v114_v52 }
  0xaa   :  { %v116_v55 = vmul.f32 %v3902_v49, %v115_v54 }
  0xac   :  { %v120_v61 = vsel %vm119_vm3, %v3902_v49, %v116_v55 }
  0xad   :  { %v121_v4 = vmul.f32 %v120_v61, %v102_v56  ;;  %v122_v5 = vmul.f32 %v120_v61, %v103_v57  ;;  %v123_v6 = vmul.f32 %v120_v61, %v104_v58  ;;  %v124_v7 = vmul.f32 %v120_v61, %v105_v59 }
  0xae   :  { %v125_v9 = vmul.f32 %v120_v61, %v106_v60  ;;  %v126_v0 = vmul.f32 %v120_v61, %v107_v62  ;;  %v127_v10 = vmul.f32 %v120_v61, %v108_v63  ;;  %v128_v11 = vmul.f32 %v120_v61, %v109_v3 }
  0xaf   :  { %v134_v1 = vmul.f32 %v132_v53, %v121_v4  ;;  %v135_v12 = vmul.f32 %v132_v53, %v122_v5  ;;  %v136_v2 = vmul.f32 %v132_v53, %v123_v6  ;;  %v137_v14 = vmul.f32 %v132_v53, %v124_v7 }
  0xb0   :  { %v138_v15 = vmul.f32 %v132_v53, %v125_v9  ;;  %v139_v13 = vmul.f32 %v132_v53, %v126_v0  ;;  %v140_v16 = vmul.f32 %v132_v53, %v127_v10  ;;  %v141_v25 = vmul.f32 %v132_v53, %v128_v11 }
  0xb1   :  { %v4160_v18 = vadd.f32 %v145_v8, %v134_v1  ;;  %v4162_v17 = vadd.f32 %v145_v8, %v135_v12  ;;  %v4164_v19 = vadd.f32 %v145_v8, %v136_v2  ;;  %v4166_v20 = vadd.f32 %v145_v8, %v137_v14 }
  0xb2   :  { %v4168_v21 = vadd.f32 %v145_v8, %v138_v15  ;;  %v4170_v22 = vadd.f32 %v145_v8, %v139_v13  ;;  %v4176_v28 = vadd.f32 %v145_v8, %v140_v16  ;;  %v4193_v40 = vadd.f32 %v145_v8, %v141_v25  ;;  %v227_v16 = vld [vmem:[%s6216_s2] sm:$0xff]  ;;  %s3985_s2 = smov 63  }
  0xb3   :  { %v163_v23 = vmul.f32 0.044715, %v4160_v18  ;;  %v164_v24 = vmul.f32 0.044715, %v4162_v17  ;;  %v165_v26 = vmul.f32 0.044715, %v4164_v19 }
  0xb4   :  { %v166_v27 = vmul.f32 0.044715, %v4166_v20  ;;  %v167_v31 = vmul.f32 0.044715, %v4168_v21  ;;  %v168_v36 = vmul.f32 0.044715, %v4170_v22 }
  0xb5   :  { %v171_v29 = vmul.f32 %v163_v23, %v4160_v18  ;;  %v172_v30 = vmul.f32 %v164_v24, %v4162_v17  ;;  %v173_v34 = vmul.f32 %v165_v26, %v4164_v19  ;;  %v169_v45 = vmul.f32 0.044715, %v4176_v28 }
  0xb6   :  { %v174_v35 = vmul.f32 %v166_v27, %v4166_v20  ;;  %v175_v39 = vmul.f32 %v167_v31, %v4168_v21  ;;  %v176_v44 = vmul.f32 %v168_v36, %v4170_v22  ;;  %v170_v56 = vmul.f32 0.044715, %v4193_v40 }
  0xb7   :  { %v179_v37 = vmul.f32 %v171_v29, %v4160_v18  ;;  %v180_v38 = vmul.f32 %v172_v30, %v4162_v17  ;;  %v181_v42 = vmul.f32 %v173_v34, %v4164_v19  ;;  %v177_v52 = vmul.f32 %v169_v45, %v4176_v28 }
  0xb8   :  { %v182_v43 = vmul.f32 %v174_v35, %v4166_v20  ;;  %v183_v48 = vmul.f32 %v175_v39, %v4168_v21  ;;  %v184_v51 = vmul.f32 %v176_v44, %v4170_v22  ;;  %v178_v62 = vmul.f32 %v170_v56, %v4193_v40  ;;  %v232_v39 = vpop.permute.xlu2 %231 }
  0xb9   :  { %v187_v46 = vadd.f32 %v179_v37, %v4160_v18  ;;  %v188_v47 = vadd.f32 %v180_v38, %v4162_v17  ;;  %v189_v49 = vadd.f32 %v181_v42, %v4164_v19  ;;  %v185_v60 = vmul.f32 %v177_v52, %v4176_v28 }
  0xba   :  { %v190_v50 = vadd.f32 %v182_v43, %v4166_v20  ;;  %v191_v55 = vadd.f32 %v183_v48, %v4168_v21  ;;  %v192_v59 = vadd.f32 %v184_v51, %v4170_v22  ;;  %v186_v4 = vmul.f32 %v178_v62, %v4193_v40 }
  0xbb   :  { %v195_v53 = vmul.f32 0.7978846, %v187_v46  ;;  %v196_v54 = vmul.f32 0.7978846, %v188_v47  ;;  %v197_v57 = vmul.f32 0.7978846, %v189_v49  ;;  %v193_v3 = vadd.f32 %v185_v60, %v4176_v28 }
  0xbc   :  { %v198_v58 = vmul.f32 0.7978846, %v190_v50  ;;  %v199_v61 = vmul.f32 0.7978846, %v191_v55  ;;  %v200_v63 = vmul.f32 0.7978846, %v192_v59  ;;  %v194_v6 = vadd.f32 %v186_v4, %v4193_v40 }
  0xbd   :  { %3903 = vtanh.f32 %v195_v53  ;;  %v201_v5 = vmul.f32 0.7978846, %v193_v3  ;;  %v155_v10 = vmul.f32 0.5, %v4160_v18  ;;  %v156_v12 = vmul.f32 0.5, %v4162_v17 }
  0xbe   :  { %3905 = vtanh.f32 %v196_v54  ;;  %v202_v9 = vmul.f32 0.7978846, %v194_v6  ;;  %v157_v15 = vmul.f32 0.5, %v4164_v19  ;;  %v158_v18 = vmul.f32 0.5, %v4166_v20 }
  0xbf   :  { %3907 = vtanh.f32 %v197_v57  ;;  %v159_v27 = vmul.f32 0.5, %v4168_v21  ;;  %v160_v31 = vmul.f32 0.5, %v4170_v22  ;;  %v161_v20 = vmul.f32 0.5, %v4176_v28 }
  0xc0   :  { %3909 = vtanh.f32 %v198_v58  ;;  %v162_v37 = vmul.f32 0.5, %v4193_v40 }
  0xc1   :  { %3911 = vtanh.f32 %v199_v61 }
  0xc2   :  { %3913 = vtanh.f32 %v200_v63 }
  0xc3   :  { %v3904_v7 = vpop.eup %3903  ;;  %3915 = vtanh.f32 %v201_v5 }
  0xc4   :  { %v3906_v0 = vpop.eup %3905  ;;  %v211_v11 = vadd.f32 1.0, %v3904_v7  ;;  %3917 = vtanh.f32 %v202_v9 }
  0xc5   :  { %v3908_v1 = vpop.eup %3907  ;;  %v212_v2 = vadd.f32 1.0, %v3906_v0 }
  0xc6   :  { %v3910_v14 = vpop.eup %3909  ;;  %v219_v8 = vmul.f32 %v211_v11, %v155_v10  ;;  %v213_v13 = vadd.f32 1.0, %v3908_v1 }
  0xc7   :  { %v3912_v23 = vpop.eup %3911  ;;  %v220_v24 = vmul.f32 %v212_v2, %v156_v12  ;;  %v214_v25 = vadd.f32 1.0, %v3910_v14 }
  0xc8   :  { %v3914_v26 = vpop.eup %3913  ;;  %253 = vmatpush.msra.mxu0 %v219_v8  ;;  %v221_v17 = vmul.f32 %v213_v13, %v157_v15  ;;  %v215_v29 = vadd.f32 1.0, %v3912_v23  ;;  %v4248_v15 = vpop.permute.xlu0 %473 }
  0xc9   :  { %v3916_v30 = vpop.eup %3915  ;;  %273 = vmatpush.msra.mxu1 %v220_v24  ;;  %v222_v19 = vmul.f32 %v214_v25, %v158_v18  ;;  %3777 = vmatmul.msk.f32.vlgmr.msra.gmra.mxu0 %vm234_vm4, %v227_v16  ;;  %v216_v32 = vadd.f32 1.0, %v3914_v26 }
  0xca   :  { %293 = vmatpush.msra.mxu2 %v221_v17  ;;  %3778 = vmatmul.msk.f32.vlgmr.msra.gmra.mxu1 %vm234_vm4, %v227_v16  ;;  %v223_v33 = vmul.f32 %v215_v29, %v159_v27  ;;  %v217_v34 = vadd.f32 1.0, %v3916_v30  ;;  %v3918_v35 = vpop.eup %3917 }
  0xcb   :  { %313 = vmatpush.msra.mxu3 %v222_v19  ;;  %3779 = vmatmul.msk.f32.vlgmr.msra.gmra.mxu2 %vm234_vm4, %v227_v16  ;;  %v224_v21 = vmul.f32 %v216_v32, %v160_v31  ;;  %v218_v22 = vadd.f32 1.0, %v3918_v35 }
  0xcc   :  { %3780 = vmatmul.msk.f32.vlgmr.msra.gmra.mxu3 %vm234_vm4, %v227_v16  ;;  %333 = vmatpush.msrb.mxu0 %v223_v33  ;;  %v225_v36 = vmul.f32 %v217_v34, %v161_v20 }
  0xcd   :  { %353 = vmatpush.msrb.mxu1 %v224_v21  ;;  %v226_v38 = vmul.f32 %v218_v22, %v162_v37 }
  0xce   :  { %373 = vmatpush.msrb.mxu2 %v225_v36 }
  0xcf   :  { %393 = vmatpush.msrb.mxu3 %v226_v38 }
  0xd1   :  { %3781 = vmatmul.msk.f32.vlgmr.msrb.gmra.mxu0 %vm234_vm4, %v227_v16 }
  0xd2   :  { %3782 = vmatmul.msk.f32.vlgmr.msrb.gmra.mxu1 %vm234_vm4, %v227_v16 }
  0xd3   :  { %3783 = vmatmul.msk.f32.vlgmr.msrb.gmra.mxu2 %vm234_vm4, %v227_v16 }
  0xd4   :  { %3784 = vmatmul.msk.f32.vlgmr.msrb.gmra.mxu3 %vm234_vm4, %v227_v16 }
 0x146   :  { %v255_v28 = vpop.f32.mrf.mxu0 }
 0x147   :  { %v275_v42 = vpop.f32.mrf.mxu1  ;;  %v4233_v43 = vadd.f32 %v255_v28, %v232_v39 }
 0x148   :  { %v4235_v44 = vadd.f32 %v275_v42, %v232_v39  ;;  %v461_v42 = vpop.permute.xlu1 %460 }
 0x149   :  { %v410_v40 = vmul.f32 %v4233_v43, %v4233_v43 }
 0x14a   :  { %v411_v45 = vmul.f32 %v4235_v44, %v4235_v44  ;;  %v400_v49 = vadd.f32 %v4235_v44, %v4233_v43 }
 0x14c   :  { %v418_v55 = vadd.f32 %v411_v45, %v410_v40 }
 0x14e   :  { %v295_v46 = vpop.f32.mrf.mxu2  ;;  %v335_v47 = vpop.f32.mrf.mxu0 }
 0x14f   :  { %v296_v48 = vadd.f32 %v295_v46, %v232_v39  ;;  %v315_v50 = vpop.f32.mrf.mxu3  ;;  %v355_v52 = vpop.f32.mrf.mxu1  ;;  %v4243_v56 = vadd.f32 %v335_v47, %v232_v39 }
 0x150   :  { %v316_v51 = vadd.f32 %v315_v50, %v232_v39  ;;  %v356_v60 = vadd.f32 %v355_v52, %v232_v39 }
 0x151   :  { %v401_v53 = vadd.f32 %v400_v49, %v296_v48  ;;  %v412_v54 = vmul.f32 %v296_v48, %v296_v48  ;;  %v414_v63 = vmul.f32 %v4243_v56, %v4243_v56 }
 0x152   :  { %v413_v59 = vmul.f32 %v316_v51, %v316_v51  ;;  %v415_v6 = vmul.f32 %v356_v60, %v356_v60 }
 0x153   :  { %v419_v57 = vadd.f32 %v418_v55, %v412_v54  ;;  %v402_v58 = vadd.f32 %v401_v53, %v316_v51 }
 0x155   :  { %v420_v61 = vadd.f32 %v419_v57, %v413_v59  ;;  %v403_v62 = vadd.f32 %v402_v58, %v4243_v56 }
 0x156   :  { %v375_v3 = vpop.f32.mrf.mxu2 }
 0x157   :  { %v421_v4 = vadd.f32 %v420_v61, %v414_v63  ;;  %v404_v5 = vadd.f32 %v403_v62, %v356_v60  ;;  %v376_v7 = vadd.f32 %v375_v3, %v232_v39  ;;  %v395_v9 = vpop.f32.mrf.mxu3 }
 0x158   :  { %v396_v0 = vadd.f32 %v395_v9, %v232_v39 }
 0x159   :  { %v416_v10 = vmul.f32 %v376_v7, %v376_v7  ;;  %v405_v11 = vadd.f32 %v404_v5, %v376_v7  ;;  %v422_v1 = vadd.f32 %v421_v4, %v415_v6 }
 0x15a   :  { %v417_v2 = vmul.f32 %v396_v0, %v396_v0 }
 0x15b   :  { %v406_v12 = vadd.f32 %v405_v11, %v396_v0  ;;  %v423_v14 = vadd.f32 %v422_v1, %v416_v10 }
 0x15d   :  { %407 = vadd.xlane.f32.xlu2 %v406_v12  ;;  %v424_v8 = vadd.f32 %v423_v14, %v417_v2 }
 0x15f   :  { %425 = vadd.xlane.f32.xlu0 %v424_v8 }
 0x1d0   :  { %v408_v13 = vpop.xlane.xlu2 %407 }
 0x1d1   :  { %v409_v16 = vmul.f32 %v408_v13, %v4150_v41 }
 0x1d2   :  { %v426_v23 = vpop.xlane.xlu0 %425 }
 0x1d3   :  { %v428_v24 = vmul.f32 %v409_v16, %v409_v16  ;;  %v427_v18 = vmul.f32 %v426_v23, %v4150_v41  ;;  %v431_v33 = vsub.f32 %v4233_v43, %v409_v16  ;;  %v432_v20 = vsub.f32 %v4235_v44, %v409_v16 }
 0x1d4   :  { %v433_v34 = vsub.f32 %v296_v48, %v409_v16  ;;  %v434_v35 = vsub.f32 %v316_v51, %v409_v16  ;;  %v436_v21 = vsub.f32 %v356_v60, %v409_v16  ;;  %v438_v36 = vsub.f32 %v396_v0, %v409_v16 }
 0x1d5   :  { %v429_v25 = vsub.f32 %v427_v18, %v428_v24  ;;  %v437_v44 = vsub.f32 %v376_v7, %v409_v16  ;;  %v435_v6 = vsub.f32 %v4243_v56, %v409_v16 }
 0x1d7   :  { %v430_v26 = vmax.f32 %v429_v25, 0.0 }
 0x1d9   :  { %v439_v17 = vadd.f32 1e-05, %v430_v26 }
 0x1db   :  { %3919 = vrsqrt.f32 %v439_v17  ;;  %vm446_vm6 = vweird.f32 %v439_v17 }
 0x1e1   :  { %v3920_v27 = vpop.eup %3919 }
 0x1e2   :  { %v441_v29 = vmul.f32 %v3920_v27, %v439_v17  ;;  %vm447_vm5 = vweird.f32 %v3920_v27 }
 0x1e3   :  { %vm448_vm7 = vmor %vm446_vm6, %vm447_vm5 }
 0x1e4   :  { %v442_v30 = vmul.f32 %v3920_v27, %v441_v29 }
 0x1e6   :  { %v443_v19 = vmul.f32 0.5, %v442_v30 }
 0x1e8   :  { %v444_v31 = vsub.f32 1.5, %v443_v19 }
 0x1ea   :  { %v445_v32 = vmul.f32 %v3920_v27, %v444_v31 }
 0x1ec   :  { %v449_v37 = vsel %vm448_vm7, %v3920_v27, %v445_v32 }
 0x1ed   :  { %v450_v22 = vmul.f32 %v449_v37, %v431_v33  ;;  %v451_v38 = vmul.f32 %v449_v37, %v432_v20  ;;  %v452_v28 = vmul.f32 %v449_v37, %v433_v34  ;;  %v453_v39 = vmul.f32 %v449_v37, %v434_v35 }
 0x1ee   :  { %v455_v40 = vmul.f32 %v449_v37, %v436_v21  ;;  %v457_v45 = vmul.f32 %v449_v37, %v438_v36  ;;  %v456_v57 = vmul.f32 %v449_v37, %v437_v44  ;;  %v454_v1 = vmul.f32 %v449_v37, %v435_v6 }
 0x1ef   :  { %v463_v46 = vmul.f32 %v461_v42, %v450_v22  ;;  %v464_v47 = vmul.f32 %v461_v42, %v451_v38  ;;  %v465_v49 = vmul.f32 %v461_v42, %v452_v28  ;;  %v466_v50 = vmul.f32 %v461_v42, %v453_v39 }
 0x1f0   :  { %v468_v43 = vmul.f32 %v461_v42, %v455_v40  ;;  %v470_v52 = vmul.f32 %v461_v42, %v457_v45  ;;  %v469_v63 = vmul.f32 %v461_v42, %v456_v57  ;;  %v467_v26 = vmul.f32 %v461_v42, %v454_v1 }
 0x1f1   :  { %v476_v48 = vadd.f32 %v4248_v15, %v463_v46  ;;  %v477_v51 = vadd.f32 %v4248_v15, %v464_v47  ;;  %v4257_v53 = vadd.f32 %v4248_v15, %v465_v49  ;;  %v4260_v54 = vadd.f32 %v4248_v15, %v466_v50 }
 0x1f2   :  { %v4263_v55 = vadd.f32 %v4248_v15, %v468_v43  ;;  %v483_v58 = vadd.f32 %v4248_v15, %v470_v52  ;;  %v4274_v14 = vadd.f32 %v4248_v15, %v469_v63  ;;  %v480_v19 = vadd.f32 %v4248_v15, %v467_v26 }
 0x1f3   :  { %v492_v59 = vmul.f32 0.044715, %v476_v48  ;;  %v493_v60 = vmul.f32 0.044715, %v477_v51  ;;  %v494_v61 = vmul.f32 0.044715, %v4257_v53 }
 0x1f4   :  { %v495_v62 = vmul.f32 0.044715, %v4260_v54  ;;  %v499_v3 = vmul.f32 0.044715, %v483_v58  ;;  %v498_v17 = vmul.f32 0.044715, %v4274_v14 }
 0x1f5   :  { %v500_v4 = vmul.f32 %v492_v59, %v476_v48  ;;  %v501_v5 = vmul.f32 %v493_v60, %v477_v51  ;;  %v502_v7 = vmul.f32 %v494_v61, %v4257_v53  ;;  %v484_v20 = vmul.f32 0.5, %v476_v48 }
 0x1f6   :  { %v503_v9 = vmul.f32 %v495_v62, %v4260_v54  ;;  %v507_v0 = vmul.f32 %v499_v3, %v483_v58  ;;  %v506_v31 = vmul.f32 %v498_v17, %v4274_v14  ;;  %v485_v35 = vmul.f32 0.5, %v477_v51 }
 0x1f7   :  { %v508_v10 = vmul.f32 %v500_v4, %v476_v48  ;;  %v509_v11 = vmul.f32 %v501_v5, %v477_v51  ;;  %v510_v12 = vmul.f32 %v502_v7, %v4257_v53  ;;  %v496_v21 = vmul.f32 0.044715, %v480_v19 }
 0x1f8   :  { %v511_v2 = vmul.f32 %v503_v9, %v4260_v54  ;;  %v515_v8 = vmul.f32 %v507_v0, %v483_v58  ;;  %v514_v36 = vmul.f32 %v506_v31, %v4274_v14  ;;  %v491_v46 = vmul.f32 0.5, %v483_v58 }
 0x1f9   :  { %v516_v13 = vadd.f32 %v508_v10, %v476_v48  ;;  %v517_v23 = vadd.f32 %v509_v11, %v477_v51  ;;  %v518_v56 = vadd.f32 %v510_v12, %v4257_v53  ;;  %v504_v39 = vmul.f32 %v496_v21, %v480_v19 }
 0x1fa   :  { %v519_v16 = vadd.f32 %v511_v2, %v4260_v54  ;;  %v523_v25 = vadd.f32 %v515_v8, %v483_v58  ;;  %v522_v42 = vadd.f32 %v514_v36, %v4274_v14  ;;  %v487_v50 = vmul.f32 0.5, %v4260_v54 }
 0x1fb   :  { %v524_v24 = vmul.f32 0.7978846, %v516_v13  ;;  %v525_v18 = vmul.f32 0.7978846, %v517_v23  ;;  %v526_v29 = vmul.f32 0.7978846, %v518_v56  ;;  %v512_v44 = vmul.f32 %v504_v39, %v480_v19 }
 0x1fc   :  { %v527_v27 = vmul.f32 0.7978846, %v519_v16  ;;  %v531_v30 = vmul.f32 0.7978846, %v523_v25  ;;  %v497_v43 = vmul.f32 0.044715, %v4263_v55  ;;  %v573_v13 = vlaneseq }
 0x1fd   :  { %3921 = vtanh.f32 %v524_v24  ;;  %v486_v52 = vmul.f32 0.5, %v4257_v53  ;;  %v530_v48 = vmul.f32 0.7978846, %v522_v42  ;;  %v520_v54 = vadd.f32 %v512_v44, %v480_v19 }
 0x1fe   :  { %3923 = vtanh.f32 %v525_v18  ;;  %v505_v58 = vmul.f32 %v497_v43, %v4263_v55  ;;  %v490_v3 = vmul.f32 0.5, %v4274_v14  ;;  %v488_v9 = vmul.f32 0.5, %v480_v19  ;;  %v4388_v14 = vld [vmem:[%s6217_s1] sm:$0xff] }
 0x1ff   :  { %3925 = vtanh.f32 %v527_v27  ;;  %v528_v60 = vmul.f32 0.7978846, %v520_v54  ;;  %v489_v1 = vmul.f32 0.5, %v4263_v55  ;;  %v849_v8 = vshra.s32 %v4388_v14, 5 }
 0x200   :  { %3927 = vtanh.f32 %v526_v29  ;;  %v513_v53 = vmul.f32 %v505_v58, %v4263_v55  ;;  %v4399_v16 = vand.u32 127, %v573_v13  ;;  %v796_v21 = vshra.s32 %v4388_v14, 4 }
 0x201   :  { %3929 = vtanh.f32 %v531_v30  ;;  %v850_v23 = vand.u32 1, %v849_v8  ;;  %v743_v42 = vshra.s32 %v4388_v14, 3 }
 0x202   :  { %3931 = vtanh.f32 %v530_v48  ;;  %v521_v62 = vadd.f32 %v513_v53, %v4263_v55  ;;  %vm840_vm8 = vcmp.lt.s32.totalorder %v4399_v16, 63  ;;  %vm787_vm9 = vcmp.lt.s32.totalorder %v4399_v16, 64 }
 0x203   :  { %v3922_v32 = vpop.eup %3921  ;;  %3933 = vtanh.f32 %v528_v60  ;;  %v4401_v24 = vcvt.s32.f32 %v850_v23  ;;  %vm734_vm10 = vcmp.lt.s32.totalorder %v4399_v16, 65  ;;  %vm680_vm12 = vcmp.lt.s32.totalorder %v4399_v16, 71 }
 0x204   :  { %v3924_v33 = vpop.eup %3923  ;;  %v540_v34 = vadd.f32 1.0, %v3922_v32  ;;  %v529_v4 = vmul.f32 0.7978846, %v521_v62  ;;  %vm575_vm13 = vcmp.lt.s32.totalorder %v4399_v16, 73  ;;  %vm627_vm14 = vcmp.lt.s32.totalorder %v4399_v16, 72 }
 0x205   :  { %v541_v37 = vadd.f32 1.0, %v3924_v33  ;;  %v3926_v38 = vpop.eup %3925  ;;  %v854_v18 = vperm.slane %v4401_v24, 1  ;;  %v853_v29 = vperm.slane %v4401_v24, 0  ;;  %v855_v19 = vperm.slane %v4401_v24, 2 }
 0x206   :  { %v4282_v22 = vmul.f32 %v540_v34, %v484_v20  ;;  %v3928_v15 = vpop.eup %3927  ;;  %v543_v45 = vadd.f32 1.0, %v3926_v38  ;;  %3935 = vtanh.f32 %v529_v4  ;;  %v856_v48 = vperm.slane %v4401_v24, 3 }
 0x207   :  { %v4284_v28 = vmul.f32 %v541_v37, %v485_v35  ;;  %v3930_v40 = vpop.eup %3929  ;;  %v542_v47 = vadd.f32 1.0, %v3928_v15  ;;  %v797_v15 = vand.u32 1, %v796_v21  ;;  %vm1328_vm15 = vcmp.lt.s32.totalorder %v4399_v16, 55 }
 0x208   :  { %824 = vrot.lane.b32.xlu2 %v4282_v22, %s3985_s2  ;;  %v547_v49 = vadd.f32 1.0, %v3930_v40  ;;  %v4296_v57 = vmul.f32 %v543_v45, %v487_v50  ;;  %v3932_v61 = vpop.eup %3931  ;;  %v744_v50 = vand.u32 1, %v743_v42  ;;  %vm1222_vm0 = vcmp.lt.s32.totalorder %v4399_v16, 57 }
 0x209   :  { %826 = vrot.lane.b32.xlu1 %v4284_v28, %s3985_s2  ;;  %v4298_v59 = vmul.f32 %v542_v47, %v486_v52  ;;  %v546_v63 = vadd.f32 1.0, %v3932_v61  ;;  %v3934_v6 = vpop.eup %3933  ;;  %v4449_v39 = vcvt.s32.f32 %v797_v15  ;;  %v857_v15 = vperm.slane %v4401_v24, 4 }
 0x20a   :  { %v4294_v51 = vmul.f32 %v547_v49, %v491_v46  ;;  %v544_v7 = vadd.f32 1.0, %v3934_v6  ;;  %v4471_v52 = vcvt.s32.f32 %v744_v50  ;;  %vm1275_vm1 = vcmp.lt.s32.totalorder %v4399_v16, 56 }
 0x20b   :  { %v4316_v5 = vmul.f32 %v546_v63, %v490_v3  ;;  %v802_v45 = vperm.slane %v4449_v39, 2  ;;  %v803_v54 = vperm.slane %v4449_v39, 3  ;;  %v860_v3 = vperm.slane %v4401_v24, 7 }
 0x20c   :  { %838 = vrot.lane.b32.xlu0 %v4294_v51, %s3985_s2  ;;  %v3936_v0 = vpop.eup %3935  ;;  %v4324_v10 = vmul.f32 %v544_v7, %v488_v9  ;;  %v750_v62 = vperm.slane %v4471_v52, 3  ;;  %vm1660_vm2 = vcmp.lt.s32.totalorder %v4399_v16, 7  ;;  %vm1554_vm3 = vcmp.lt.s32.totalorder %v4399_v16, 9 }
 0x20d   :  { %v545_v11 = vadd.f32 1.0, %v3936_v0  ;;  %vm1607_vm5 = vcmp.lt.s32.totalorder %v4399_v16, 8  ;;  %vm1939_vm6 = vcmp.lt.s32.totalorder %v4399_v16, 127  ;;  %vm1886_vm7 = vcmp.lt.s32.totalorder %v4399_v16, 1 }
 0x20f   :  { %v4333_v12 = vmul.f32 %v545_v11, %v489_v1  ;;  %v749_v11 = vperm.slane %v4471_v52, 2 }
 0x210   :  { %777 = vrot.lane.b32.xlu2 %v4296_v57, %s3986_s0 }
 0x211   :  { %828 = vrot.lane.b32.xlu1 %v4298_v59, %s3985_s2 }
 0x214   :  { %722 = vrot.lane.b32.xlu0 %v4298_v59, %s3987_s17 }
 0x218   :  { %724 = vrot.lane.b32.xlu2 %v4296_v57, %s3987_s17 }
 0x219   :  { %773 = vrot.lane.b32.xlu1 %v4284_v28, %s3986_s0 }
 0x21c   :  { %785 = vrot.lane.b32.xlu0 %v4294_v51, %s3986_s0 }
 0x220   :  { %836 = vrot.lane.b32.xlu2 %v4316_v5, %s3985_s2 }
 0x221   :  { %775 = vrot.lane.b32.xlu1 %v4298_v59, %s3986_s0 }
 0x224   :  { %732 = vrot.lane.b32.xlu0 %v4294_v51, %s3987_s17 }
 0x228   :  { %832 = vrot.lane.b32.xlu2 %v4324_v10, %s3985_s2 }
 0x229   :  { %830 = vrot.lane.b32.xlu1 %v4296_v57, %s3985_s2 }
 0x22c   :  { %781 = vrot.lane.b32.xlu0 %v4333_v12, %s3986_s0 }
 0x230   :  { %779 = vrot.lane.b32.xlu2 %v4324_v10, %s3986_s0 }
 0x231   :  { %720 = vrot.lane.b32.xlu1 %v4284_v28, %s3987_s17 }
 0x234   :  { %728 = vrot.lane.b32.xlu0 %v4333_v12, %s3987_s17 }
 0x238   :  { %668 = vrot.lane.b32.xlu2 %v4298_v59, %s3988_s18 }
 0x239   :  { %771 = vrot.lane.b32.xlu1 %v4282_v22, %s3986_s0 }
 0x23c   :  { %726 = vrot.lane.b32.xlu0 %v4324_v10, %s3987_s17 }
 0x240   :  { %664 = vrot.lane.b32.xlu2 %v4282_v22, %s3988_s18 }
 0x241   :  { %718 = vrot.lane.b32.xlu1 %v4282_v22, %s3987_s17 }
 0x244   :  { %613 = vrot.lane.b32.xlu0 %v4284_v28, %s3989_s19 }
 0x248   :  { %559 = vrot.lane.b32.xlu2 %v4284_v28, %s3990_s8 }
 0x249   :  { %834 = vrot.lane.b32.xlu1 %v4333_v12, %s3985_s2  ;;  %s3999_s2 = smov 119  }
 0x24c   :  { %670 = vrot.lane.b32.xlu0 %v4296_v57, %s3988_s18 }
 0x250   :  { %617 = vrot.lane.b32.xlu2 %v4296_v57, %s3989_s19 }
 0x251   :  { %783 = vrot.lane.b32.xlu1 %v4316_v5, %s3986_s0  ;;  %s4000_s0 = smov 120  }
 0x254   :  { %561 = vrot.lane.b32.xlu0 %v4298_v59, %s3990_s8 }
 0x258   :  { %563 = vrot.lane.b32.xlu2 %v4296_v57, %s3990_s8 }
 0x259   :  { %730 = vrot.lane.b32.xlu1 %v4316_v5, %s3987_s17 }
 0x25c   :  { %625 = vrot.lane.b32.xlu0 %v4294_v51, %s3989_s19 }
 0x260   :  { %676 = vrot.lane.b32.xlu2 %v4316_v5, %s3988_s18 }
 0x261   :  { %666 = vrot.lane.b32.xlu1 %v4284_v28, %s3988_s18 }
 0x262   :  { %v825_v55 = vpop.permute.xlu2 %824 }
 0x264   :  { %571 = vrot.lane.b32.xlu0 %v4294_v51, %s3990_s8 }
 0x268   :  { %672 = vrot.lane.b32.xlu2 %v4324_v10, %s3988_s18 }
 0x269   :  { %615 = vrot.lane.b32.xlu1 %v4298_v59, %s3989_s19 }
 0x26a   :  { %v4383_v2 = vpop.permute.xlu2 %777 }
 0x26c   :  { %621 = vrot.lane.b32.xlu0 %v4333_v12, %s3989_s19 }
 0x270   :  { %619 = vrot.lane.b32.xlu2 %v4324_v10, %s3989_s19 }
 0x271   :  { %678 = vrot.lane.b32.xlu1 %v4294_v51, %s3988_s18 }
 0x272   :  { %v4397_v56 = vpop.permute.xlu2 %724 }
 0x274   :  { %567 = vrot.lane.b32.xlu0 %v4333_v12, %s3990_s8 }
 0x278   :  { %1316 = vrot.lane.b32.xlu2 %v4298_v59, %s3991_s22 }
 0x279   :  { %611 = vrot.lane.b32.xlu1 %v4282_v22, %s3989_s19 }
 0x27a   :  { %v4411_v25 = vpop.permute.xlu2 %836 }
 0x27b   :  { %v827_v26 = vpop.permute.xlu1 %826 }
 0x27c   :  { %v4415_v17 = vsel %vm840_vm8, %v825_v55, %v827_v26  ;;  %565 = vrot.lane.b32.xlu0 %v4324_v10, %s3990_s8 }
 0x27d   :  { %6283 = vst [vmem:[#allocation3_spill] sm:$0xff] %v4415_v17  ;;  %v870_v27 = vmul.f32 %v854_v18, %v4415_v17 }
 0x27e   :  { %v839_v30 = vpop.permute.xlu0 %838 }
 0x27f   :  { %916 = vmatpush.msra.mxu1 %v870_v27  ;;  %v4428_v31 = vsel %vm840_vm8, %v839_v30, %v825_v55  ;;  %v4502_v6 = vsel %vm840_vm8, %v4411_v25, %v839_v30  ;;  %v801_v27 = vperm.slane %v4449_v39, 1 }
 0x280   :  { %1312 = vrot.lane.b32.xlu2 %v4282_v22, %s3991_s22  ;;  %v869_v33 = vmul.f32 %v853_v29, %v4428_v31  ;;  %6287 = vst [vmem:[#allocation7_spill] sm:$0xff] %v4502_v6  ;;  %v876_v1 = vmul.f32 %v860_v3, %v4502_v6 }
 0x281   :  { %557 = vrot.lane.b32.xlu1 %v4282_v22, %s3990_s8 }
 0x282   :  { %v4430_v32 = vpop.permute.xlu2 %832  ;;  %896 = vmatpush.msra.mxu0 %v869_v33 }
 0x283   :  { %v829_v20 = vpop.permute.xlu1 %828 }
 0x284   :  { %v4435_v34 = vsel %vm840_vm8, %v827_v26, %v829_v20  ;;  %1261 = vrot.lane.b32.xlu0 %v4284_v28, %s3992_s24  ;;  %v800_v26 = vperm.slane %v4449_v39, 0 }
 0x285   :  { %6284 = vst [vmem:[#allocation4_spill] sm:$0xff] %v4435_v34  ;;  %v871_v35 = vmul.f32 %v855_v19, %v4435_v34 }
 0x286   :  { %v723_v36 = vpop.permute.xlu0 %722 }
 0x287   :  { %936 = vmatpush.msra.mxu2 %v871_v35  ;;  %v4497_v4 = vsel %vm734_vm10, %v723_v36, %v4397_v56 }
 0x288   :  { %1208 = vrot.lane.b32.xlu2 %v4284_v28, %s3993_s25  ;;  %6286 = vst [vmem:[#allocation6_spill] sm:$0xff] %v4497_v4  ;;  %v766_v9 = vmul.f32 %v750_v62, %v4497_v4 }
 0x289   :  { %674 = vrot.lane.b32.xlu1 %v4333_v12, %s3988_s18 }
 0x28a   :  { %v4445_v37 = vpop.permute.xlu2 %779 }
 0x28b   :  { %v774_v38 = vpop.permute.xlu1 %773  ;;  %v4581_v62 = vsel %vm787_vm9, %v4383_v2, %v4445_v37 }
 0x28c   :  { %1318 = vrot.lane.b32.xlu0 %v4296_v57, %s3991_s22 }
 0x28e   :  { %v4454_v40 = vpop.permute.xlu0 %785 }
 0x290   :  { %1265 = vrot.lane.b32.xlu2 %v4296_v57, %s3992_s24 }
 0x291   :  { %623 = vrot.lane.b32.xlu1 %v4316_v5, %s3989_s19  ;;  %s4001_s19 = smov 121  }
 0x292   :  { %v4459_v46 = vpop.permute.xlu2 %668 }
 0x293   :  { %v776_v47 = vpop.permute.xlu1 %775 }
 0x294   :  { %v4464_v49 = vsel %vm787_vm9, %v774_v38, %v776_v47  ;;  %1210 = vrot.lane.b32.xlu0 %v4298_v59, %s3993_s25  ;;  %v4485_v60 = vsel %vm787_vm9, %v776_v47, %v4383_v2 }
 0x295   :  { %6285 = vst [vmem:[#allocation5_spill] sm:$0xff] %v4464_v49  ;;  %v818_v43 = vmul.f32 %v802_v45, %v4464_v49  ;;  %v819_v7 = vmul.f32 %v803_v54, %v4485_v60  ;;  %v4560_v45 = vld [vmem:[%s6218_s4 + $0x8] sm:$0xff] }
 0x296   :  { %v4473_v44 = vpop.permute.xlu0 %732 }
 0x297   :  { %937 = vmatpush.msra.mxu2 %v818_v43  ;;  %v804_v43 = vperm.slane %v4449_v39, 4 }
 0x298   :  { %1212 = vrot.lane.b32.xlu2 %v4296_v57, %s3993_s25 }
 0x299   :  { %569 = vrot.lane.b32.xlu1 %v4316_v5, %s3990_s8  ;;  %v820_v2 = vmul.f32 %v804_v43, %v4581_v62 }
 0x29a   :  { %v4478_v58 = vpop.permute.xlu2 %664 }
 0x29b   :  { %v831_v53 = vpop.permute.xlu1 %830 }
 0x29c   :  { %v4489_v61 = vsel %vm840_vm8, %v829_v20, %v831_v53  ;;  %1273 = vrot.lane.b32.xlu0 %v4294_v51, %s3992_s24  ;;  %v4565_v47 = vsel %vm840_vm8, %v831_v53, %v4430_v32 }
 0x29d   :  { %v872_v63 = vmul.f32 %v856_v48, %v4489_v61  ;;  %v873_v3 = vmul.f32 %v857_v15, %v4565_v47 }
 0x29e   :  { %v4510_v0 = vpop.permute.xlu0 %781 }
 0x29f   :  { %956 = vmatpush.msra.mxu3 %v872_v63 }
 0x2a0   :  { %1324 = vrot.lane.b32.xlu2 %v4316_v5, %s3991_s22 }
 0x2a1   :  { %1314 = vrot.lane.b32.xlu1 %v4284_v28, %s3991_s22  ;;  %957 = vmatpush.msra.mxu3 %v819_v7  ;;  %v751_v7 = vperm.slane %v4471_v52, 4 }
 0x2a2   :  { %v4516_v55 = vpop.permute.xlu2 %559 }
 0x2a3   :  { %v721_v8 = vpop.permute.xlu1 %720  ;;  %958 = vmatpush.msra.mxu3 %v766_v9 }
 0x2a4   :  { %v4520_v13 = vsel %vm734_vm10, %v721_v8, %v723_v36  ;;  %1220 = vrot.lane.b32.xlu0 %v4294_v51, %s3993_s25  ;;  %v747_v36 = vperm.slane %v4471_v52, 0  ;;  %3789 = vmatmul.msk.f32.vlgmr.msra.gmra.mxu3 %vm879_vm11, %v4560_v45 }
 0x2a5   :  { %6288 = vst [vmem:[#allocation8_spill] sm:$0xff] %v4520_v13  ;;  %1036 = vmatpush.msrb.mxu3 %v876_v1  ;;  %v765_v23 = vmul.f32 %v749_v11, %v4520_v13  ;;  %v859_v1 = vperm.slane %v4401_v24, 6 }
 0x2a6   :  { %v4527_v18 = vpop.permute.xlu0 %728 }
 0x2a7   :  { %938 = vmatpush.msra.mxu2 %v765_v23 }
 0x2a8   :  { %1320 = vrot.lane.b32.xlu2 %v4324_v10, %s3991_s22  ;;  %3788 = vmatmul.msk.f32.vlgmr.msra.gmra.mxu2 %vm879_vm11, %v4560_v45 }
 0x2a9   :  { %1263 = vrot.lane.b32.xlu1 %v4298_v59, %s3992_s24 }
 0x2aa   :  { %v4533_v29 = vpop.permute.xlu2 %617 }
 0x2ab   :  { %v772_v30 = vpop.permute.xlu1 %771 }
 0x2ac   :  { %v4537_v19 = vsel %vm787_vm9, %v772_v30, %v774_v38  ;;  %v4542_v33 = vsel %vm787_vm9, %v4454_v40, %v772_v30  ;;  %1269 = vrot.lane.b32.xlu0 %v4333_v12, %s3992_s24  ;;  %v748_v38 = vperm.slane %v4471_v52, 1 }
 0x2ad   :  { %6289 = vst [vmem:[#allocation9_spill] sm:$0xff] %v4537_v19  ;;  %v816_v20 = vmul.f32 %v800_v26, %v4542_v33  ;;  %v817_v35 = vmul.f32 %v801_v27, %v4537_v19  ;;  %v805_v27 = vperm.slane %v4449_v39, 5 }
 0x2ae   :  { %v727_v21 = vpop.permute.xlu0 %726 }
 0x2af   :  { %897 = vmatpush.msra.mxu0 %v816_v20  ;;  %917 = vmatpush.msra.mxu1 %v817_v35  ;;  %v4594_v9 = vsel %vm734_vm10, %v4397_v56, %v727_v21  ;;  %v858_v56 = vperm.slane %v4401_v24, 5  ;;  %v4629_v20 = vsel %vm787_vm9, %v4445_v37, %v4510_v0 }
 0x2b0   :  { %1267 = vrot.lane.b32.xlu2 %v4324_v10, %s3992_s24  ;;  %6294 = vst [vmem:[#allocation14_spill] sm:$0xff] %v4629_v20  ;;  %v821_v37 = vmul.f32 %v805_v27, %v4629_v20 }
 0x2b1   :  { %1326 = vrot.lane.b32.xlu1 %v4294_v51, %s3991_s22 }
 0x2b2   :  { %v4555_v42 = vpop.permute.xlu2 %563 }
 0x2b3   :  { %v719_v50 = vpop.permute.xlu1 %718 }
 0x2b4   :  { %v4570_v48 = vsel %vm734_vm10, %v719_v50, %v721_v8  ;;  %v4575_v54 = vsel %vm734_vm10, %v4473_v44, %v719_v50  ;;  %1216 = vrot.lane.b32.xlu0 %v4333_v12, %s3993_s25  ;;  %v767_v8 = vmul.f32 %v751_v7, %v4594_v9  ;;  %v807_v50 = vperm.slane %v4449_v39, 7 }
 0x2b5   :  { %6290 = vst [vmem:[#allocation10_spill] sm:$0xff] %v4570_v48  ;;  %v763_v53 = vmul.f32 %v747_v36, %v4575_v54  ;;  %v764_v63 = vmul.f32 %v748_v38, %v4570_v48  ;;  %v752_v38 = vperm.slane %v4471_v52, 5 }
 0x2b6   :  { %6291 = vst [vmem:[#allocation11_spill] sm:$0xff] %v4575_v54  ;;  %v4599_v11 = vpop.permute.xlu0 %613 }
 0x2b7   :  { %898 = vmatpush.msra.mxu0 %v763_v53  ;;  %918 = vmatpush.msra.mxu1 %v764_v63 }
 0x2b8   :  { %1648 = vrot.lane.b32.xlu2 %v4298_v59, %s3994_s28  ;;  %3787 = vmatmul.msk.f32.vlgmr.msra.gmra.mxu1 %vm879_vm11, %v4560_v45 }
 0x2b9   :  { %976 = vmatpush.msrb.mxu0 %v873_v3  ;;  %1259 = vrot.lane.b32.xlu1 %v4282_v22, %s3992_s24 }
 0x2ba   :  { %v4608_v23 = vpop.permute.xlu2 %676  ;;  %3786 = vmatmul.msk.f32.vlgmr.msra.gmra.mxu0 %vm879_vm11, %v4560_v45 }
 0x2bb   :  { %977 = vmatpush.msrb.mxu0 %v820_v2  ;;  %v835_v26 = vpop.permute.xlu1 %834 }
 0x2bc   :  { %v4618_v30 = vsel %vm840_vm8, %v835_v26, %v4411_v25  ;;  %v4623_v24 = vsel %vm840_vm8, %v4430_v32, %v835_v26  ;;  %v4637_v25 = vsel %vm734_vm10, %v727_v21, %v4527_v18  ;;  %1214 = vrot.lane.b32.xlu0 %v4324_v10, %s3993_s25  ;;  %v689_v32 = vshra.s32 %v4388_v14, 2 }
 0x2bd   :  { %6292 = vst [vmem:[#allocation12_spill] sm:$0xff] %v4618_v30  ;;  %978 = vmatpush.msrb.mxu0 %v767_v8  ;;  %v874_v35 = vmul.f32 %v858_v56, %v4623_v24  ;;  %v875_v36 = vmul.f32 %v859_v1, %v4618_v30  ;;  %v806_v21 = vperm.slane %v4449_v39, 6  ;;  %v768_v43 = vmul.f32 %v752_v38, %v4637_v25 }
 0x2be   :  { %6293 = vst [vmem:[#allocation13_spill] sm:$0xff] %v4623_v24  ;;  %v4643_v15 = vpop.permute.xlu0 %670  ;;  %v690_v63 = vand.u32 1, %v689_v32  ;;  %v754_v8 = vperm.slane %v4471_v52, 7  ;;  %vm2271_vm8 = vcmp.lt.s32.totalorder %v4399_v16, 119 }
 0x2bf   :  { %6295 = vst [vmem:[#allocation15_spill] sm:$0xff] %v4637_v25  ;;  %996 = vmatpush.msrb.mxu1 %v874_v35  ;;  %1016 = vmatpush.msrb.mxu2 %v875_v36  ;;  %v4688_v36 = vsel %vm680_vm12, %v4459_v46, %v4643_v15 }
 0x2c0   :  { %1644 = vrot.lane.b32.xlu2 %v4282_v22, %s3994_s28  ;;  %v4670_v1 = vcvt.s32.f32 %v690_v63 }
 0x2c1   :  { %1206 = vrot.lane.b32.xlu1 %v4282_v22, %s3993_s25  ;;  %997 = vmatpush.msrb.mxu1 %v821_v37 }
 0x2c2   :  { %v4652_v53 = vpop.permute.xlu2 %672  ;;  %3790 = vmatmul.msk.f32.vlgmr.msrb.gmra.mxu0 %vm879_vm11, %v4560_v45  ;;  %v696_v27 = vperm.slane %v4670_v1, 3 }
 0x2c3   :  { %v784_v3 = vpop.permute.xlu1 %783  ;;  %998 = vmatpush.msrb.mxu1 %v768_v43  ;;  %v695_v43 = vperm.slane %v4670_v1, 2 }
 0x2c4   :  { %v4659_v7 = vsel %vm787_vm9, %v784_v3, %v4454_v40  ;;  %v4664_v2 = vsel %vm787_vm9, %v4510_v0, %v784_v3  ;;  %3791 = vmatmul.msk.f32.vlgmr.msrb.gmra.mxu1 %vm879_vm11, %v4560_v45  ;;  %1593 = vrot.lane.b32.xlu0 %v4284_v28, %s3995_s9  ;;  %v753_v0 = vperm.slane %v4471_v52, 6  ;;  %v584_v3 = vand.u32 1, %v4388_v14 }
 0x2c5   :  { %6296 = vst [vmem:[#allocation16_spill] sm:$0xff] %v4659_v7  ;;  %v822_v39 = vmul.f32 %v806_v21, %v4664_v2  ;;  %v823_v56 = vmul.f32 %v807_v50, %v4659_v7  ;;  %v712_v21 = vmul.f32 %v696_v27, %v4688_v36  ;;  %v636_v50 = vshra.s32 %v4388_v14, 1 }
 0x2c6   :  { %6297 = vst [vmem:[#allocation17_spill] sm:$0xff] %v4664_v2  ;;  %v562_v40 = vpop.permute.xlu0 %561  ;;  %vm2218_vm9 = vcmp.lt.s32.totalorder %v4399_v16, 120 }
 0x2c7   :  { %1017 = vmatpush.msrb.mxu2 %v822_v39  ;;  %1037 = vmatpush.msrb.mxu3 %v823_v56  ;;  %v637_v39 = vand.u32 1, %v636_v50 }
 0x2c8   :  { %1540 = vrot.lane.b32.xlu2 %v4284_v28, %s3996_s10 }
 0x2c9   :  { %1322 = vrot.lane.b32.xlu1 %v4333_v12, %s3991_s22 }
 0x2ca   :  { %v4681_v26 = vpop.permute.xlu2 %619 }
 0x2cb   :  { %v731_v35 = vpop.permute.xlu1 %730 }
 0x2cc   :  { %v4693_v38 = vsel %vm734_vm10, %v731_v35, %v4473_v44  ;;  %v4698_v52 = vsel %vm734_vm10, %v4527_v18, %v731_v35  ;;  %1650 = vrot.lane.b32.xlu0 %v4296_v57, %s3994_s28  ;;  %v694_v18 = vperm.slane %v4670_v1, 1  ;;  %vm2165_vm10 = vcmp.lt.s32.totalorder %v4399_v16, 121 }
 0x2cd   :  { %6298 = vst [vmem:[#allocation18_spill] sm:$0xff] %v4693_v38  ;;  %v769_v32 = vmul.f32 %v753_v0, %v4698_v52  ;;  %v770_v37 = vmul.f32 %v754_v8, %v4693_v38 }
 0x2ce   :  { %6299 = vst [vmem:[#allocation19_spill] sm:$0xff] %v4698_v52  ;;  %v4708_v44 = vpop.permute.xlu0 %625 }
 0x2cf   :  { %1018 = vmatpush.msrb.mxu2 %v769_v32  ;;  %1038 = vmatpush.msrb.mxu3 %v770_v37  ;;  %v4733_v32 = vcvt.s32.f32 %v584_v3 }
 0x2d0   :  { %3792 = vmatmul.msk.f32.vlgmr.msrb.gmra.mxu2 %vm879_vm11, %v4560_v45  ;;  %1597 = vrot.lane.b32.xlu2 %v4296_v57, %s3995_s9 }
 0x2d1   :  { %1119 = vmatpush.msra.mxu3 %v712_v21  ;;  %1271 = vrot.lane.b32.xlu1 %v4316_v5, %s3992_s24  ;;  %v590_v3 = vperm.slane %v4733_v32, 3  ;;  %v588_v48 = vperm.slane %v4733_v32, 1 }
 0x2d2   :  { %v4716_v63 = vpop.permute.xlu2 %1316  ;;  %3793 = vmatmul.msk.f32.vlgmr.msrb.gmra.mxu3 %vm879_vm11, %v4560_v45  ;;  %v4735_v45 = vcvt.s32.f32 %v637_v39  ;;  %v4756_v39 = vsel %vm575_vm13, %v4516_v55, %v562_v40 }
 0x2d3   :  { %v667_v56 = vpop.permute.xlu1 %666  ;;  %6300 = vst [vmem:[#allocation20_spill] sm:$0xff] %v4756_v39 }
 0x2d4   :  { %v4724_v0 = vsel %vm680_vm12, %v667_v56, %v4459_v46  ;;  %v4729_v8 = vsel %vm680_vm12, %v4478_v58, %v667_v56  ;;  %1542 = vrot.lane.b32.xlu0 %v4298_v59, %s3996_s10  ;;  %v642_v37 = vperm.slane %v4735_v45, 2  ;;  %v643_v21 = vperm.slane %v4735_v45, 3 }
 0x2d5   :  { %v710_v27 = vmul.f32 %v694_v18, %v4729_v8  ;;  %v711_v35 = vmul.f32 %v695_v43, %v4724_v0  ;;  %v589_v18 = vperm.slane %v4733_v32, 2  ;;  %v640_v20 = vperm.slane %v4735_v45, 0 }
 0x2d6   :  { %v4740_v46 = vpop.permute.xlu0 %571  ;;  %v641_v30 = vperm.slane %v4735_v45, 1  ;;  %v644_v13 = vperm.slane %v4735_v45, 4 }
 0x2d7   :  { %1079 = vmatpush.msra.mxu1 %v710_v27  ;;  %1099 = vmatpush.msra.mxu2 %v711_v35  ;;  %v4771_v35 = vsel %vm575_vm13, %v562_v40, %v4555_v42  ;;  %v605_v25 = vmul.f32 %v589_v18, %v4756_v39  ;;  %v693_v40 = vperm.slane %v4670_v1, 0 }
 0x2d8   :  { %1544 = vrot.lane.b32.xlu2 %v4296_v57, %s3996_s10  ;;  %v606_v2 = vmul.f32 %v590_v3, %v4771_v35 }
 0x2d9   :  { %1218 = vrot.lane.b32.xlu1 %v4316_v5, %s3993_s25 }
 0x2da   :  { %v4748_v50 = vpop.permute.xlu2 %1312 }
 0x2db   :  { %v616_v43 = vpop.permute.xlu1 %615 }
 0x2dc   :  { %v4761_v56 = vsel %vm627_vm14, %v616_v43, %v4533_v29  ;;  %v4766_v27 = vsel %vm627_vm14, %v4599_v11, %v616_v43  ;;  %1605 = vrot.lane.b32.xlu0 %v4294_v51, %s3995_s9 }
 0x2dd   :  { %6301 = vst [vmem:[#allocation21_spill] sm:$0xff] %v4766_v27  ;;  %v658_v41 = vmul.f32 %v642_v37, %v4766_v27  ;;  %v659_v52 = vmul.f32 %v643_v21, %v4761_v56  ;;  %v700_v37 = vperm.slane %v4670_v1, 7 }
 0x2de   :  { %v4779_v43 = vpop.permute.xlu0 %621 }
 0x2df   :  { %1100 = vmatpush.msra.mxu2 %v658_v41  ;;  %1120 = vmatpush.msra.mxu3 %v659_v52 }
 0x2e0   :  { %1656 = vrot.lane.b32.xlu2 %v4316_v5, %s3994_s28 }
 0x2e1   :  { %1646 = vrot.lane.b32.xlu1 %v4284_v28, %s3994_s28  ;;  %1101 = vmatpush.msra.mxu2 %v605_v25 }
 0x2e2   :  { %1121 = vmatpush.msra.mxu3 %v606_v2  ;;  %v4787_v21 = vpop.permute.xlu2 %1208 }
 0x2e3   :  { %v679_v41 = vpop.permute.xlu1 %678 }
 0x2e4   :  { %v4792_v52 = vsel %vm680_vm12, %v4608_v23, %v679_v41  ;;  %v4797_v25 = vsel %vm680_vm12, %v679_v41, %v4478_v58  ;;  %1552 = vrot.lane.b32.xlu0 %v4294_v51, %s3996_s10 }
 0x2e5   :  { %v709_v18 = vmul.f32 %v693_v40, %v4797_v25  ;;  %v716_v3 = vmul.f32 %v700_v37, %v4792_v52 }
 0x2e6   :  { %v4803_v2 = vpop.permute.xlu0 %567 }
 0x2e7   :  { %1059 = vmatpush.msra.mxu0 %v709_v18  ;;  %1199 = vmatpush.msrb.mxu3 %v716_v3 }
 0x2e8   :  { %1652 = vrot.lane.b32.xlu2 %v4324_v10, %s3994_s28 }
 0x2e9   :  { %1595 = vrot.lane.b32.xlu1 %v4298_v59, %s3995_s9 }
 0x2ea   :  { %v4811_v58 = vpop.permute.xlu2 %1265 }
 0x2eb   :  { %v612_v40 = vpop.permute.xlu1 %611 }
 0x2ec   :  { %v4816_v37 = vsel %vm627_vm14, %v612_v40, %v4599_v11  ;;  %v4821_v41 = vsel %vm627_vm14, %v4708_v44, %v612_v40  ;;  %1601 = vrot.lane.b32.xlu0 %v4333_v12, %s3995_s9  ;;  %v587_v11 = vperm.slane %v4733_v32, 0  ;;  %v4834_v40 = vld [vmem:[%s6218_s4] sm:$0xff] }
 0x2ed   :  { %v656_v18 = vmul.f32 %v640_v20, %v4821_v41  ;;  %v657_v3 = vmul.f32 %v641_v30, %v4816_v37  ;;  %v697_v30 = vperm.slane %v4670_v1, 4  ;;  %3797 = vmatmul.msk.f32.vlgmr.msra.gmra.mxu3 %vm879_vm11, %v4834_v40  ;;  %3796 = vmatmul.msk.f32.vlgmr.msra.gmra.mxu2 %vm879_vm11, %v4834_v40 }
 0x2ee   :  { %v566_v24 = vpop.permute.xlu0 %565 }
 0x2ef   :  { %1060 = vmatpush.msra.mxu0 %v656_v18  ;;  %1080 = vmatpush.msra.mxu1 %v657_v3  ;;  %v4847_v18 = vsel %vm680_vm12, %v4643_v15, %v4652_v53  ;;  %v4866_v15 = vsel %vm627_vm14, %v4533_v29, %v4681_v26  ;;  %v4875_v6 = vsel %vm575_vm13, %v4555_v42, %v566_v24 }
 0x2f0   :  { %1599 = vrot.lane.b32.xlu2 %v4324_v10, %s3995_s9  ;;  %v713_v34 = vmul.f32 %v697_v30, %v4847_v18  ;;  %v660_v29 = vmul.f32 %v644_v13, %v4866_v15  ;;  %v699_v30 = vperm.slane %v4670_v1, 6 }
 0x2f1   :  { %1658 = vrot.lane.b32.xlu1 %v4294_v51, %s3994_s28 }
 0x2f2   :  { %v4839_v20 = vpop.permute.xlu2 %1212 }
 0x2f3   :  { %v558_v3 = vpop.permute.xlu1 %557 }
 0x2f4   :  { %v4855_v38 = vsel %vm575_vm13, %v558_v3, %v4516_v55  ;;  %v4860_v19 = vsel %vm575_vm13, %v4740_v46, %v558_v3  ;;  %v591_v55 = vperm.slane %v4733_v32, 4  ;;  %1548 = vrot.lane.b32.xlu0 %v4333_v12, %s3996_s10 }
 0x2f5   :  { %6302 = vst [vmem:[#allocation22_spill] sm:$0xff] %v4855_v38  ;;  %v603_v49 = vmul.f32 %v587_v11, %v4860_v19  ;;  %v604_v7 = vmul.f32 %v588_v48, %v4855_v38  ;;  %v698_v48 = vperm.slane %v4670_v1, 5 }
 0x2f6   :  { %v4880_v11 = vpop.permute.xlu0 %1261  ;;  %v607_v42 = vmul.f32 %v591_v55, %v4875_v6  ;;  %v592_v55 = vperm.slane %v4733_v32, 5 }
 0x2f7   :  { %1061 = vmatpush.msra.mxu0 %v603_v49  ;;  %1081 = vmatpush.msra.mxu1 %v604_v7  ;;  %v645_v49 = vperm.slane %v4735_v45, 5  ;;  %v4900_v7 = vsel %vm627_vm14, %v4681_v26, %v4779_v43  ;;  %v4918_v26 = vsel %vm575_vm13, %v566_v24, %v4803_v2  ;;  %v646_v24 = vperm.slane %v4735_v45, 6 }
 0x2f8   :  { %3795 = vmatmul.msk.f32.vlgmr.msra.gmra.mxu1 %vm879_vm11, %v4834_v40  ;;  %1929 = vrot.lane.b32.xlu2 %v4296_v57, %s3997_s3  ;;  %6303 = vst [vmem:[#allocation23_spill] sm:$0xff] %v4900_v7 }
 0x2f9   :  { %1139 = vmatpush.msrb.mxu0 %v713_v34  ;;  %1591 = vrot.lane.b32.xlu1 %v4282_v22, %s3995_s9  ;;  %6306 = vst [vmem:[#allocation26_spill] sm:$0xff] %v4918_v26 }
 0x2fa   :  { %v4891_v34 = vpop.permute.xlu2 %1324  ;;  %3794 = vmatmul.msk.f32.vlgmr.msra.gmra.mxu0 %vm879_vm11, %v4834_v40 }
 0x2fb   :  { %1140 = vmatpush.msrb.mxu0 %v660_v29  ;;  %v675_v13 = vpop.permute.xlu1 %674 }
 0x2fc   :  { %v4905_v1 = vsel %vm680_vm12, %v675_v13, %v4608_v23  ;;  %v4910_v3 = vsel %vm680_vm12, %v4652_v53, %v675_v13  ;;  %v661_v23 = vmul.f32 %v645_v49, %v4900_v7  ;;  %1546 = vrot.lane.b32.xlu0 %v4324_v10, %s3996_s10  ;;  %v1337_v53 = vshra.s32 %v4388_v14, 8 }
 0x2fd   :  { %6304 = vst [vmem:[#allocation24_spill] sm:$0xff] %v4905_v1  ;;  %1141 = vmatpush.msrb.mxu0 %v607_v42  ;;  %v714_v29 = vmul.f32 %v698_v48, %v4910_v3  ;;  %v715_v17 = vmul.f32 %v699_v30, %v4905_v1  ;;  %v608_v42 = vmul.f32 %v592_v55, %v4918_v26  ;;  %v647_v48 = vperm.slane %v4735_v45, 7 }
 0x2fe   :  { %6305 = vst [vmem:[#allocation25_spill] sm:$0xff] %v4910_v3  ;;  %v4925_v13 = vpop.permute.xlu0 %1318  ;;  %v1338_v49 = vand.u32 1, %v1337_v53  ;;  %v1231_v7 = vshra.s32 %v4388_v14, 6  ;;  %v1284_v1 = vshra.s32 %v4388_v14, 7 }
 0x2ff   :  { %1159 = vmatpush.msrb.mxu1 %v714_v29  ;;  %1179 = vmatpush.msrb.mxu2 %v715_v17 }
 0x300   :  { %1931 = vrot.lane.b32.xlu2 %v4324_v10, %s3997_s3  ;;  %v4951_v53 = vcvt.s32.f32 %v1338_v49 }
 0x301   :  { %1538 = vrot.lane.b32.xlu1 %v4282_v22, %s3996_s10  ;;  %1160 = vmatpush.msrb.mxu1 %v661_v23 }
 0x302   :  { %v4933_v30 = vpop.permute.xlu2 %1320  ;;  %3798 = vmatmul.msk.f32.vlgmr.msrb.gmra.mxu0 %vm879_vm11, %v4834_v40 }
 0x303   :  { %v624_v29 = vpop.permute.xlu1 %623  ;;  %1161 = vmatpush.msrb.mxu1 %v608_v42  ;;  %v594_v42 = vperm.slane %v4733_v32, 7 }
 0x304   :  { %v4940_v17 = vsel %vm627_vm14, %v624_v29, %v4708_v44  ;;  %v4945_v45 = vsel %vm627_vm14, %v4779_v43, %v624_v29  ;;  %3799 = vmatmul.msk.f32.vlgmr.msrb.gmra.mxu1 %vm879_vm11, %v4834_v40  ;;  %1923 = vrot.lane.b32.xlu0 %v4282_v22, %s3997_s3  ;;  %v593_v43 = vperm.slane %v4733_v32, 6  ;;  %v4969_v29 = vsel %vm1328_vm15, %v4716_v63, %v4925_v13 }
 0x305   :  { %6307 = vst [vmem:[#allocation27_spill] sm:$0xff] %v4945_v45  ;;  %v662_v55 = vmul.f32 %v646_v24, %v4945_v45  ;;  %v663_v23 = vmul.f32 %v647_v48, %v4940_v17  ;;  %v1344_v48 = vperm.slane %v4951_v53, 3 }
 0x306   :  { %v1211_v44 = vpop.permute.xlu0 %1210  ;;  %6308 = vst [vmem:[#allocation28_spill] sm:$0xff] %v4969_v29 }
 0x307   :  { %1180 = vmatpush.msrb.mxu2 %v662_v55  ;;  %1200 = vmatpush.msrb.mxu3 %v663_v23  ;;  %v1360_v45 = vmul.f32 %v1344_v48, %v4969_v29 }
 0x308   :  { %1870 = vrot.lane.b32.xlu2 %v4282_v22, %s3998_s11 }
 0x309   :  { %1654 = vrot.lane.b32.xlu1 %v4333_v12, %s3994_s28 }
 0x30a   :  { %v4962_v24 = vpop.permute.xlu2 %1267 }
 0x30b   :  { %v570_v49 = vpop.permute.xlu1 %569 }
 0x30c   :  { %v4974_v55 = vsel %vm575_vm13, %v570_v49, %v4740_v46  ;;  %v4979_v32 = vsel %vm575_vm13, %v4803_v2, %v570_v49  ;;  %1872 = vrot.lane.b32.xlu0 %v4284_v28, %s3998_s11  ;;  %v1342_v2 = vperm.slane %v4951_v53, 1 }
 0x30d   :  { %6309 = vst [vmem:[#allocation29_spill] sm:$0xff] %v4979_v32  ;;  %v609_v23 = vmul.f32 %v593_v43, %v4979_v32  ;;  %v610_v26 = vmul.f32 %v594_v42, %v4974_v55  ;;  %v1343_v43 = vperm.slane %v4951_v53, 2  ;;  %v1285_v42 = vand.u32 1, %v1284_v1 }
 0x30e   :  { %v4990_v46 = vpop.permute.xlu0 %1273 }
 0x30f   :  { %1181 = vmatpush.msrb.mxu2 %v609_v23  ;;  %1201 = vmatpush.msrb.mxu3 %v610_v26  ;;  %v1232_v26 = vand.u32 1, %v1231_v7  ;;  %v5016_v7 = vcvt.s32.f32 %v1285_v42 }
 0x310   :  { %3800 = vmatmul.msk.f32.vlgmr.msrb.gmra.mxu2 %vm879_vm11, %v4834_v40  ;;  %1935 = vrot.lane.b32.xlu2 %v4316_v5, %s3997_s3 }
 0x311   :  { %1443 = vmatpush.msra.mxu3 %v1360_v45  ;;  %1603 = vrot.lane.b32.xlu1 %v4316_v5, %s3995_s9  ;;  %v1290_v1 = vperm.slane %v5016_v7, 2 }
 0x312   :  { %3801 = vmatmul.msk.f32.vlgmr.msrb.gmra.mxu3 %vm879_vm11, %v4834_v40  ;;  %v5010_v23 = vpop.permute.xlu2 %1648  ;;  %v5014_v40 = vcvt.s32.f32 %v1232_v26  ;;  %v5035_v26 = vsel %vm1222_vm0, %v4787_v21, %v1211_v44 }
 0x313   :  { %v1315_v48 = vpop.permute.xlu1 %1314  ;;  %6312 = vst [vmem:[#allocation32_spill] sm:$0xff] %v5035_v26 }
 0x314   :  { %v5003_v45 = vsel %vm1328_vm15, %v1315_v48, %v4716_v63  ;;  %v5008_v49 = vsel %vm1328_vm15, %v4748_v50, %v1315_v48  ;;  %1876 = vrot.lane.b32.xlu0 %v4296_v57, %s3998_s11 }
 0x315   :  { %6310 = vst [vmem:[#allocation30_spill] sm:$0xff] %v5003_v45  ;;  %v1358_v29 = vmul.f32 %v1342_v2, %v5008_v49  ;;  %v1359_v32 = vmul.f32 %v1343_v43, %v5003_v45  ;;  %v1291_v2 = vperm.slane %v5016_v7, 3  ;;  %v1237_v43 = vperm.slane %v5014_v40, 2 }
 0x316   :  { %6311 = vst [vmem:[#allocation31_spill] sm:$0xff] %v5008_v49  ;;  %v5021_v63 = vpop.permute.xlu0 %1220  ;;  %v5050_v45 = vsel %vm1222_vm0, %v1211_v44, %v4839_v20  ;;  %v1341_v44 = vperm.slane %v4951_v53, 0 }
 0x317   :  { %1403 = vmatpush.msra.mxu1 %v1358_v29  ;;  %1423 = vmatpush.msra.mxu2 %v1359_v32  ;;  %v1238_v32 = vperm.slane %v5014_v40, 3  ;;  %6315 = vst [vmem:[#allocation35_spill] sm:$0xff] %v5050_v45  ;;  %v1253_v54 = vmul.f32 %v1237_v43, %v5035_v26  ;;  %v1288_v26 = vperm.slane %v5016_v7, 0 }
 0x318   :  { %1880 = vrot.lane.b32.xlu2 %v4333_v12, %s3998_s11 }
 0x319   :  { %1550 = vrot.lane.b32.xlu1 %v4316_v5, %s3996_s10 }
 0x31a   :  { %v5054_v3 = vpop.permute.xlu2 %1644 }
 0x31b   :  { %v1264_v29 = vpop.permute.xlu1 %1263 }
 0x31c   :  { %v5040_v42 = vsel %vm1275_vm1, %v1264_v29, %v4811_v58  ;;  %v5045_v48 = vsel %vm1275_vm1, %v4880_v11, %v1264_v29  ;;  %1937 = vrot.lane.b32.xlu0 %v4294_v51, %s3997_s3  ;;  %v1254_v29 = vmul.f32 %v1238_v32, %v5050_v45 }
 0x31d   :  { %6313 = vst [vmem:[#allocation33_spill] sm:$0xff] %v5040_v42  ;;  %v1306_v49 = vmul.f32 %v1290_v1, %v5045_v48  ;;  %v1307_v4 = vmul.f32 %v1291_v2, %v5040_v42  ;;  %v1348_v1 = vperm.slane %v4951_v53, 7 }
 0x31e   :  { %6314 = vst [vmem:[#allocation34_spill] sm:$0xff] %v5045_v48  ;;  %v5060_v38 = vpop.permute.xlu0 %1269 }
 0x31f   :  { %1424 = vmatpush.msra.mxu2 %v1306_v49  ;;  %1444 = vmatpush.msra.mxu3 %v1307_v4 }
 0x320   :  { %2259 = vrot.lane.b32.xlu2 %v4298_v59, %s3999_s2 }
 0x321   :  { %1927 = vrot.lane.b32.xlu1 %v4298_v59, %s3997_s3  ;;  %1425 = vmatpush.msra.mxu2 %v1253_v54 }
 0x322   :  { %1445 = vmatpush.msra.mxu3 %v1254_v29  ;;  %v5082_v32 = vpop.permute.xlu2 %1540 }
 0x323   :  { %v1327_v2 = vpop.permute.xlu1 %1326 }
 0x324   :  { %v5071_v4 = vsel %vm1328_vm15, %v4891_v34, %v1327_v2  ;;  %v5076_v49 = vsel %vm1328_vm15, %v1327_v2, %v4748_v50  ;;  %1882 = vrot.lane.b32.xlu0 %v4316_v5, %s3998_s11  ;;  %v1289_v50 = vperm.slane %v5016_v7, 1 }
 0x325   :  { %6316 = vst [vmem:[#allocation36_spill] sm:$0xff] %v5071_v4  ;;  %v1357_v54 = vmul.f32 %v1341_v44, %v5076_v49  ;;  %v1364_v43 = vmul.f32 %v1348_v1, %v5071_v4  ;;  %v1236_v4 = vperm.slane %v5014_v40, 1 }
 0x326   :  { %6317 = vst [vmem:[#allocation37_spill] sm:$0xff] %v5076_v49  ;;  %v5084_v29 = vpop.permute.xlu0 %1216 }
 0x327   :  { %1383 = vmatpush.msra.mxu0 %v1357_v54  ;;  %1523 = vmatpush.msrb.mxu3 %v1364_v43 }
 0x328   :  { %2208 = vrot.lane.b32.xlu2 %v4296_v57, %s4000_s0 }
 0x329   :  { %1925 = vrot.lane.b32.xlu1 %v4284_v28, %s3997_s3 }
 0x32b   :  { %v1260_v44 = vpop.permute.xlu1 %1259 }
 0x32c   :  { %v5095_v1 = vsel %vm1275_vm1, %v1260_v44, %v4880_v11  ;;  %v5100_v2 = vsel %vm1275_vm1, %v4990_v46, %v1260_v44  ;;  %2261 = vrot.lane.b32.xlu0 %v4296_v57, %s3999_s2  ;;  %v1235_v11 = vperm.slane %v5014_v40, 0  ;;  %v5113_v44 = vld [vmem:[%s6218_s4 + $0x10] sm:$0xff] }
 0x32d   :  { %6318 = vst [vmem:[#allocation38_spill] sm:$0xff] %v5095_v1  ;;  %v1304_v54 = vmul.f32 %v1288_v26, %v5100_v2  ;;  %v1305_v43 = vmul.f32 %v1289_v50, %v5095_v1  ;;  %v1345_v26 = vperm.slane %v4951_v53, 4  ;;  %v5116_v50 = vpop.permute.xlu2 %1597  ;;  %3806 = vmatmul.msk.f32.vlgmr.msra.gmra.mxu3 %vm879_vm11, %v5113_v44  ;;  %3805 = vmatmul.msk.f32.vlgmr.msra.gmra.mxu2 %vm879_vm11, %v5113_v44  ;;  %v1292_v1 = vperm.slane %v5016_v7, 4 }
 0x32e   :  { %6319 = vst [vmem:[#allocation39_spill] sm:$0xff] %v5100_v2  ;;  %v1215_v48 = vpop.permute.xlu0 %1214 }
 0x32f   :  { %1384 = vmatpush.msra.mxu0 %v1304_v54  ;;  %1404 = vmatpush.msra.mxu1 %v1305_v43  ;;  %v5126_v54 = vsel %vm1328_vm15, %v4925_v13, %v4933_v30  ;;  %v5145_v13 = vsel %vm1275_vm1, %v4811_v58, %v4962_v24  ;;  %v5154_v27 = vsel %vm1222_vm0, %v4839_v20, %v1215_v48 }
 0x330   :  { %2263 = vrot.lane.b32.xlu2 %v4324_v10, %s3999_s2  ;;  %6320 = vst [vmem:[#allocation40_spill] sm:$0xff] %v5126_v54  ;;  %v1361_v39 = vmul.f32 %v1345_v26, %v5126_v54  ;;  %v1308_v58 = vmul.f32 %v1292_v1, %v5145_v13  ;;  %v1347_v26 = vperm.slane %v4951_v53, 6 }
 0x331   :  { %1874 = vrot.lane.b32.xlu1 %v4298_v59, %s3998_s11  ;;  %6323 = vst [vmem:[#allocation43_spill] sm:$0xff] %v5145_v13 }
 0x332   :  { %6324 = vst [vmem:[#allocation44_spill] sm:$0xff] %v5154_v27 }
 0x333   :  { %v1207_v43 = vpop.permute.xlu1 %1206 }
 0x334   :  { %v5134_v45 = vsel %vm1222_vm0, %v1207_v43, %v4787_v21  ;;  %v5139_v2 = vsel %vm1222_vm0, %v5021_v63, %v1207_v43  ;;  %v1239_v21 = vperm.slane %v5014_v40, 4  ;;  %2255 = vrot.lane.b32.xlu0 %v4282_v22, %s3999_s2 }
 0x335   :  { %6321 = vst [vmem:[#allocation41_spill] sm:$0xff] %v5134_v45  ;;  %v1251_v42 = vmul.f32 %v1235_v11, %v5139_v2  ;;  %v1252_v49 = vmul.f32 %v1236_v4, %v5134_v45  ;;  %v1346_v4 = vperm.slane %v4951_v53, 5  ;;  %v5177_v53 = vsel %vm1275_vm1, %v4962_v24, %v5060_v38 }
 0x336   :  { %6322 = vst [vmem:[#allocation42_spill] sm:$0xff] %v5139_v2  ;;  %v5159_v11 = vpop.permute.xlu0 %1593  ;;  %v1255_v20 = vmul.f32 %v1239_v21, %v5154_v27  ;;  %v1240_v21 = vperm.slane %v5014_v40, 5  ;;  %v5197_v45 = vsel %vm1222_vm0, %v1215_v48, %v5084_v29  ;;  %v1294_v48 = vperm.slane %v5016_v7, 6 }
 0x337   :  { %1385 = vmatpush.msra.mxu0 %v1251_v42  ;;  %1405 = vmatpush.msra.mxu1 %v1252_v49  ;;  %6325 = vst [vmem:[#allocation45_spill] sm:$0xff] %v5177_v53  ;;  %v5179_v49 = vpop.permute.xlu2 %1544 }
 0x338   :  { %3804 = vmatmul.msk.f32.vlgmr.msra.gmra.mxu1 %vm879_vm11, %v5113_v44  ;;  %2202 = vrot.lane.b32.xlu2 %v4282_v22, %s4000_s0  ;;  %6328 = vst [vmem:[#allocation48_spill] sm:$0xff] %v5197_v45 }
 0x339   :  { %1463 = vmatpush.msrb.mxu0 %v1361_v39  ;;  %1884 = vrot.lane.b32.xlu1 %v4294_v51, %s3998_s11  ;;  %v1293_v39 = vperm.slane %v5016_v7, 5 }
 0x33a   :  { %3803 = vmatmul.msk.f32.vlgmr.msra.gmra.mxu0 %vm879_vm11, %v5113_v44 }
 0x33b   :  { %1464 = vmatpush.msrb.mxu0 %v1308_v58  ;;  %v1323_v42 = vpop.permute.xlu1 %1322 }
 0x33c   :  { %v5184_v1 = vsel %vm1328_vm15, %v1323_v42, %v4891_v34  ;;  %v5189_v43 = vsel %vm1328_vm15, %v4933_v30, %v1323_v42  ;;  %v1309_v34 = vmul.f32 %v1293_v39, %v5177_v53  ;;  %2153 = vrot.lane.b32.xlu0 %v4298_v59, %s4001_s19  ;;  %v1669_v30 = vshra.s32 %v4388_v14, 11 }
 0x33d   :  { %6326 = vst [vmem:[#allocation46_spill] sm:$0xff] %v5184_v1  ;;  %1465 = vmatpush.msrb.mxu0 %v1255_v20  ;;  %v1362_v58 = vmul.f32 %v1346_v4, %v5189_v43  ;;  %v1363_v24 = vmul.f32 %v1347_v26, %v5184_v1  ;;  %v1256_v20 = vmul.f32 %v1240_v21, %v5197_v45  ;;  %v1295_v26 = vperm.slane %v5016_v7, 7  ;;  %v5261_v45 = vld [vmem:[%s6217_s1] sm:$0xff] }
 0x33e   :  { %6327 = vst [vmem:[#allocation47_spill] sm:$0xff] %v5189_v43  ;;  %v5204_v4 = vpop.permute.xlu0 %1650  ;;  %v1670_v39 = vand.u32 1, %v1669_v30  ;;  %v1242_v30 = vperm.slane %v5014_v40, 7 }
 0x33f   :  { %1483 = vmatpush.msrb.mxu1 %v1362_v58  ;;  %1503 = vmatpush.msrb.mxu2 %v1363_v24  ;;  %v5228_v24 = vpop.permute.xlu2 %1656 }
 0x340   :  { %2149 = vrot.lane.b32.xlu2 %v4282_v22, %s4001_s19 }
 0x341   :  { %1933 = vrot.lane.b32.xlu1 %v4333_v12, %s3997_s3  ;;  %1484 = vmatpush.msrb.mxu1 %v1309_v34  ;;  %v5230_v34 = vcvt.s32.f32 %v1670_v39 }
 0x342   :  { %3807 = vmatmul.msk.f32.vlgmr.msrb.gmra.mxu0 %vm879_vm11, %v5113_v44 }
 0x343   :  { %v1272_v42 = vpop.permute.xlu1 %1271  ;;  %1485 = vmatpush.msrb.mxu1 %v1256_v20  ;;  %v1676_v20 = vperm.slane %v5230_v34, 3 }
 0x344   :  { %v5217_v14 = vsel %vm1275_vm1, %v1272_v42, %v4990_v46  ;;  %v5222_v21 = vsel %vm1275_vm1, %v5060_v38, %v1272_v42  ;;  %3808 = vmatmul.msk.f32.vlgmr.msrb.gmra.mxu1 %vm879_vm11, %v5113_v44  ;;  %2204 = vrot.lane.b32.xlu0 %v4284_v28, %s4000_s0  ;;  %v1241_v46 = vperm.slane %v5014_v40, 6 }
 0x345   :  { %6329 = vst [vmem:[#allocation49_spill] sm:$0xff] %v5217_v14  ;;  %v1310_v7 = vmul.f32 %v1294_v48, %v5222_v21  ;;  %v1311_v58 = vmul.f32 %v1295_v26, %v5217_v14  ;;  %v1665_v26 = vsel %vm1660_vm2, %v5010_v23, %v5204_v4  ;;  %v3252_v14 = vld [vmem:[%s6219_s5] sm:$0xff] }
 0x346   :  { %6330 = vst [vmem:[#allocation50_spill] sm:$0xff] %v5222_v21  ;;  %v1543_v38 = vpop.permute.xlu0 %1542  ;;  %v1563_v21 = vshra.s32 %v5261_v45, 9 }
 0x347   :  { %1504 = vmatpush.msrb.mxu2 %v1310_v7  ;;  %1524 = vmatpush.msrb.mxu3 %v1311_v58  ;;  %v1692_v58 = vmul.f32 %v1676_v20, %v1665_v26  ;;  %v1675_v20 = vperm.slane %v5230_v34, 2 }
 0x348   :  { %2267 = vrot.lane.b32.xlu2 %v4316_v5, %s3999_s2 }
 0x349   :  { %1878 = vrot.lane.b32.xlu1 %v4324_v10, %s3998_s11 }
 0x34b   :  { %v1219_v48 = vpop.permute.xlu1 %1218 }
 0x34c   :  { %v5249_v39 = vsel %vm1222_vm0, %v1219_v48, %v5021_v63  ;;  %v5254_v40 = vsel %vm1222_vm0, %v5084_v29, %v1219_v48  ;;  %2151 = vrot.lane.b32.xlu0 %v4284_v28, %s4001_s19  ;;  %v1616_v63 = vshra.s32 %v5261_v45, 10  ;;  %v5267_v29 = vpop.permute.xlu2 %1652  ;;  %v1564_v48 = vand.u32 1, %v1563_v21 }
 0x34d   :  { %6331 = vst [vmem:[#allocation51_spill] sm:$0xff] %v5249_v39  ;;  %v1257_v42 = vmul.f32 %v1241_v46, %v5254_v40  ;;  %v1258_v7 = vmul.f32 %v1242_v30, %v5249_v39  ;;  %v1674_v30 = vperm.slane %v5230_v34, 1 }
 0x34e   :  { %6332 = vst [vmem:[#allocation52_spill] sm:$0xff] %v5254_v40  ;;  %v5271_v46 = vpop.permute.xlu0 %1605  ;;  %v1617_v26 = vand.u32 1, %v1616_v63  ;;  %v5287_v1 = vcvt.s32.f32 %v1564_v48 }
 0x34f   :  { %1505 = vmatpush.msrb.mxu2 %v1257_v42  ;;  %1525 = vmatpush.msrb.mxu3 %v1258_v7 }
 0x350   :  { %3809 = vmatmul.msk.f32.vlgmr.msrb.gmra.mxu2 %vm879_vm11, %v5113_v44  ;;  %2216 = vrot.lane.b32.xlu2 %v4294_v51, %s4000_s0  ;;  %v5289_v43 = vcvt.s32.f32 %v1617_v26 }
 0x351   :  { %1775 = vmatpush.msra.mxu3 %v1692_v58  ;;  %2206 = vrot.lane.b32.xlu1 %v4298_v59, %s4000_s0 }
 0x352   :  { %3810 = vmatmul.msk.f32.vlgmr.msrb.gmra.mxu3 %vm879_vm11, %v5113_v44  ;;  %v1623_v21 = vperm.slane %v5289_v43, 3 }
 0x353   :  { %v1647_v42 = vpop.permute.xlu1 %1646 }
 0x354   :  { %v1666_v7 = vsel %vm1660_vm2, %v1647_v42, %v5010_v23  ;;  %v1667_v58 = vsel %vm1660_vm2, %v5054_v3, %v1647_v42  ;;  %2269 = vrot.lane.b32.xlu0 %v4294_v51, %s3999_s2  ;;  %v1622_v23 = vperm.slane %v5289_v43, 2  ;;  %v5300_v63 = vpop.permute.xlu2 %1599  ;;  %v1559_v42 = vsel %vm1554_vm3, %v1543_v38, %v5179_v49 }
 0x355   :  { %v1690_v40 = vmul.f32 %v1674_v30, %v1667_v58  ;;  %v1691_v53 = vmul.f32 %v1675_v20, %v1666_v7  ;;  %v1569_v30 = vperm.slane %v5287_v1, 2  ;;  %v1560_v20 = vsel %vm1554_vm3, %v5082_v32, %v1543_v38 }
 0x356   :  { %v5294_v44 = vpop.permute.xlu0 %1552  ;;  %v1673_v38 = vperm.slane %v5230_v34, 0 }
 0x357   :  { %1735 = vmatpush.msra.mxu1 %v1690_v40  ;;  %1755 = vmatpush.msra.mxu2 %v1691_v53  ;;  %v1570_v40 = vperm.slane %v5287_v1, 3  ;;  %v1585_v39 = vmul.f32 %v1569_v30, %v1560_v20 }
 0x358   :  { %2163 = vrot.lane.b32.xlu2 %v4294_v51, %s4001_s19 }
 0x359   :  { %2257 = vrot.lane.b32.xlu1 %v4284_v28, %s3999_s2  ;;  %v1586_v2 = vmul.f32 %v1570_v40, %v1559_v42 }
 0x35b   :  { %v1596_v53 = vpop.permute.xlu1 %1595 }
 0x35c   :  { %v1612_v48 = vsel %vm1607_vm5, %v1596_v53, %v5116_v50  ;;  %v1613_v26 = vsel %vm1607_vm5, %v5159_v11, %v1596_v53  ;;  %2265 = vrot.lane.b32.xlu0 %v4333_v12, %s3999_s2  ;;  %v5330_v30 = vpop.permute.xlu2 %1929 }
 0x35d   :  { %v1638_v7 = vmul.f32 %v1622_v23, %v1613_v26  ;;  %v1639_v58 = vmul.f32 %v1623_v21, %v1612_v48  ;;  %v1680_v23 = vperm.slane %v5230_v34, 7 }
 0x35e   :  { %v5324_v27 = vpop.permute.xlu0 %1601 }
 0x35f   :  { %1756 = vmatpush.msra.mxu2 %v1638_v7  ;;  %1776 = vmatpush.msra.mxu3 %v1639_v58 }
 0x360   :  { %3255 = vperm.xlu2 %3897, %v3252_v14  }
 0x361   :  { %2155 = vrot.lane.b32.xlu1 %v4296_v57, %s4001_s19  ;;  %1757 = vmatpush.msra.mxu2 %v1585_v39  ;;  %v1620_v39 = vperm.slane %v5289_v43, 0 }
 0x362   :  { %1777 = vmatpush.msra.mxu3 %v1586_v2  ;;  %v3266_v2 = vld [vmem:[%s6220_s12] sm:$0xff] }
 0x363   :  { %v1659_v21 = vpop.permute.xlu1 %1658 }
 0x364   :  { %v1661_v53 = vsel %vm1660_vm2, %v5228_v24, %v1659_v21  ;;  %v1668_v40 = vsel %vm1660_vm2, %v1659_v21, %v5054_v3  ;;  %2212 = vrot.lane.b32.xlu0 %v4333_v12, %s4000_s0  ;;  %v1621_v3 = vperm.slane %v5289_v43, 1  ;;  %v3267_v21 = vld [vmem:[%s6221_s13] sm:$0xff] }
 0x365   :  { %v1689_v20 = vmul.f32 %v1673_v38, %v1668_v40  ;;  %v1696_v48 = vmul.f32 %v1680_v23, %v1661_v53  ;;  %v5355_v23 = vpop.permute.xlu2 %1931  ;;  %v1568_v40 = vperm.slane %v5287_v1, 1 }
 0x366   :  { %v5343_v14 = vpop.permute.xlu0 %1548 }
 0x367   :  { %1715 = vmatpush.msra.mxu0 %v1689_v20  ;;  %1855 = vmatpush.msrb.mxu3 %v1696_v48  ;;  %v1677_v20 = vperm.slane %v5230_v34, 4  ;;  %v1664_v48 = vsel %vm1660_vm2, %v5204_v4, %v5267_v29  ;;  %v1611_v4 = vsel %vm1607_vm5, %v5116_v50, %v5300_v63 }
 0x368   :  { %3328 = vperm.xlu2 %3897, %v3266_v2  }
 0x369   :  { %2210 = vrot.lane.b32.xlu1 %v4324_v10, %s4000_s0 }
 0x36b   :  { %v1592_v26 = vpop.permute.xlu1 %1591 }
 0x36c   :  { %v1614_v42 = vsel %vm1607_vm5, %v1592_v26, %v5159_v11  ;;  %v1615_v7 = vsel %vm1607_vm5, %v5271_v46, %v1592_v26  ;;  %v1567_v11 = vperm.slane %v5287_v1, 0 }
 0x36d   :  { %v1636_v58 = vmul.f32 %v1620_v39, %v1615_v7  ;;  %v1637_v38 = vmul.f32 %v1621_v3, %v1614_v42  ;;  %v5372_v39 = vld [vmem:[%s6218_s4 + $0x18] sm:$0xff]  ;;  %v1624_v3 = vperm.slane %v5289_v43, 4  ;;  %v5396_v54 = vpop.permute.xlu2 %1870 }
 0x36e   :  { %v1547_v53 = vpop.permute.xlu0 %1546  ;;  %3815 = vmatmul.msk.f32.vlgmr.msra.gmra.mxu3 %vm879_vm11, %v5372_v39  ;;  %3814 = vmatmul.msk.f32.vlgmr.msra.gmra.mxu2 %vm879_vm11, %v5372_v39 }
 0x36f   :  { %1716 = vmatpush.msra.mxu0 %v1636_v58  ;;  %1736 = vmatpush.msra.mxu1 %v1637_v38  ;;  %v1693_v38 = vmul.f32 %v1677_v20, %v1664_v48  ;;  %v1640_v13 = vmul.f32 %v1624_v3, %v1611_v4  ;;  %v1625_v20 = vperm.slane %v5289_v43, 5  ;;  %v1610_v3 = vsel %vm1607_vm5, %v5300_v63, %v5324_v27 }
 0x370   :  { %3341 = vperm.xlu2 %3897, %v3267_v21   ;;  %v1558_v21 = vsel %vm1554_vm3, %v5179_v49, %v1547_v53  ;;  %v1678_v49 = vperm.slane %v5230_v34, 5 }
 0x371   :  { %2157 = vrot.lane.b32.xlu1 %v4324_v10, %s4001_s19  ;;  %v1641_v63 = vmul.f32 %v1625_v20, %v1610_v3 }
 0x373   :  { %v1539_v2 = vpop.permute.xlu1 %1538 }
 0x374   :  { %v1561_v26 = vsel %vm1554_vm3, %v1539_v2, %v5082_v32  ;;  %v1562_v42 = vsel %vm1554_vm3, %v5294_v44, %v1539_v2  ;;  %v1571_v32 = vperm.slane %v5287_v1, 4  ;;  %v3425_v2 = vld [vmem:[%s6222_s7] sm:$0xff] }
 0x375   :  { %v1583_v7 = vmul.f32 %v1567_v11, %v1562_v42  ;;  %v1584_v58 = vmul.f32 %v1568_v40, %v1561_v26  ;;  %v1679_v11 = vperm.slane %v5230_v34, 6  ;;  %v1572_v42 = vperm.slane %v5287_v1, 5 }
 0x376   :  { %v5400_v50 = vpop.permute.xlu0 %1923  ;;  %v1587_v40 = vmul.f32 %v1571_v32, %v1558_v21  ;;  %v1627_v32 = vperm.slane %v5289_v43, 7 }
 0x377   :  { %1717 = vmatpush.msra.mxu0 %v1583_v7  ;;  %1737 = vmatpush.msra.mxu1 %v1584_v58  ;;  %v1948_v7 = vshra.s32 %v5261_v45, 14  ;;  %v1557_v58 = vsel %vm1554_vm3, %v1547_v53, %v5343_v14 }
 0x378   :  { %3813 = vmatmul.msk.f32.vlgmr.msra.gmra.mxu1 %vm879_vm11, %v5372_v39  ;;  %3812 = vmatmul.msk.f32.vlgmr.msra.gmra.mxu0 %vm879_vm11, %v5372_v39 }
 0x379   :  { %1795 = vmatpush.msrb.mxu0 %v1693_v38  ;;  %2214 = vrot.lane.b32.xlu1 %v4316_v5, %s4000_s0  ;;  %v1588_v38 = vmul.f32 %v1572_v42, %v1557_v58  ;;  %v1949_v21 = vand.u32 1, %v1948_v7 }
 0x37a   :  { %3428 = vperm.xlu2 %3897, %v3425_v2   ;;  %v5430_v2 = vpop.permute.xlu2 %1935 }
 0x37b   :  { %1796 = vmatpush.msrb.mxu0 %v1640_v13  ;;  %v1655_v48 = vpop.permute.xlu1 %1654  ;;  %v5442_v20 = vcvt.s32.f32 %v1949_v21 }
 0x37c   :  { %v1662_v26 = vsel %vm1660_vm2, %v1655_v48, %v5228_v24  ;;  %v1663_v34 = vsel %vm1660_vm2, %v5267_v29, %v1655_v48  ;;  %v1626_v29 = vperm.slane %v5289_v43, 6 }
 0x37d   :  { %1797 = vmatpush.msrb.mxu0 %v1587_v40  ;;  %v1694_v13 = vmul.f32 %v1678_v49, %v1663_v34  ;;  %v1695_v4 = vmul.f32 %v1679_v11, %v1662_v26  ;;  %v1955_v3 = vperm.slane %v5442_v20, 3  ;;  %v1943_v26 = vsel %vm1939_vm6, %v5330_v30, %v5355_v23 }
 0x37e   :  { %v5424_v24 = vpop.permute.xlu0 %1872 }
 0x37f   :  { %1815 = vmatpush.msrb.mxu1 %v1694_v13  ;;  %1835 = vmatpush.msrb.mxu2 %v1695_v4  ;;  %v1971_v58 = vmul.f32 %v1955_v3, %v1943_v26  ;;  %v1893_v26 = vsel %vm1886_vm7, %v5396_v54, %v5424_v24 }
 0x380   :  { %3816 = vmatmul.msk.f32.vlgmr.msrb.gmra.mxu0 %vm879_vm11, %v5372_v39 }
 0x381   :  { %2161 = vrot.lane.b32.xlu1 %v4316_v5, %s4001_s19  ;;  %1816 = vmatpush.msrb.mxu1 %v1641_v63  ;;  %v1895_v63 = vshra.s32 %v5261_v45, 12 }
 0x382   :  { %v5456_v42 = vpop.permute.xlu2 %1880 }
 0x383   :  { %v1604_v53 = vpop.permute.xlu1 %1603  ;;  %1817 = vmatpush.msrb.mxu1 %v1588_v38 }
 0x384   :  { %v1608_v49 = vsel %vm1607_vm5, %v1604_v53, %v5271_v46  ;;  %v1609_v11 = vsel %vm1607_vm5, %v5324_v27, %v1604_v53  ;;  %3817 = vmatmul.msk.f32.vlgmr.msrb.gmra.mxu1 %vm879_vm11, %v5372_v39  ;;  %v1573_v46 = vperm.slane %v5287_v1, 6  ;;  %v1574_v27 = vperm.slane %v5287_v1, 7 }
 0x385   :  { %v1642_v43 = vmul.f32 %v1626_v29, %v1609_v11  ;;  %v1643_v40 = vmul.f32 %v1627_v32, %v1608_v49  ;;  %v1954_v29 = vperm.slane %v5442_v20, 2  ;;  %v1896_v32 = vand.u32 1, %v1895_v63 }
 0x386   :  { %v5445_v48 = vpop.permute.xlu0 %1876  ;;  %v1958_v63 = vperm.slane %v5442_v20, 6 }
 0x387   :  { %1836 = vmatpush.msrb.mxu2 %v1642_v43  ;;  %1856 = vmatpush.msrb.mxu3 %v1643_v40  ;;  %v5476_v49 = vcvt.s32.f32 %v1896_v32  ;;  %v1952_v43 = vperm.slane %v5442_v20, 0 }
 0x389   :  { %2159 = vrot.lane.b32.xlu1 %v4333_v12, %s4001_s19 }
 0x38a   :  { %v5474_v53 = vpop.permute.xlu2 %2259 }
 0x38b   :  { %v1551_v34 = vpop.permute.xlu1 %1550 }
 0x38c   :  { %v1555_v13 = vsel %vm1554_vm3, %v1551_v34, %v5294_v44  ;;  %v1556_v4 = vsel %vm1554_vm3, %v5343_v14, %v1551_v34 }
 0x38d   :  { %v1589_v7 = vmul.f32 %v1573_v46, %v1556_v4  ;;  %v1590_v1 = vmul.f32 %v1574_v27, %v1555_v13  ;;  %v1900_v27 = vperm.slane %v5476_v49, 1 }
 0x38e   :  { %v1938_v38 = vpop.permute.xlu0 %1937 }
 0x38f   :  { %1837 = vmatpush.msrb.mxu2 %v1589_v7  ;;  %1857 = vmatpush.msrb.mxu3 %v1590_v1  ;;  %v1916_v4 = vmul.f32 %v1900_v27, %v1893_v26  ;;  %v1901_v1 = vperm.slane %v5476_v49, 2 }
 0x390   :  { %3818 = vmatmul.msk.f32.vlgmr.msrb.gmra.mxu2 %vm879_vm11, %v5372_v39  ;;  %3819 = vmatmul.msk.f32.vlgmr.msrb.gmra.mxu3 %vm879_vm11, %v5372_v39  ;;  %v1953_v39 = vperm.slane %v5442_v20, 1 }
 0x391   :  { %2054 = vmatpush.msra.mxu3 %v1971_v58  ;;  %v1902_v58 = vperm.slane %v5476_v49, 3 }
 0x392   :  { %v5493_v13 = vpop.permute.xlu2 %2208 }
 0x393   :  { %2055 = vmatpush.msra.mxu3 %v4296_v57  ;;  %v1928_v44 = vpop.permute.xlu1 %1927  ;;  %v2280_v57 = vshra.s32 %v5261_v45, 17 }
 0x394   :  { %v1944_v14 = vsel %vm1939_vm6, %v1928_v44, %v5330_v30 }
 0x395   :  { %v1970_v21 = vmul.f32 %v1954_v29, %v1944_v14  ;;  %v2281_v34 = vand.u32 1, %v2280_v57  ;;  %v1959_v29 = vperm.slane %v5442_v20, 7  ;;  %v1947_v14 = vsel %vm1939_vm6, %v1938_v38, %v5400_v50 }
 0x396   :  { %v1883_v11 = vpop.permute.xlu0 %1882 }
 0x397   :  { %2034 = vmatpush.msra.mxu2 %v1970_v21  ;;  %v5507_v32 = vcvt.s32.f32 %v2281_v34  ;;  %v1975_v57 = vmul.f32 %v1959_v29, %v1947_v14 }
 0x399   :  { %2035 = vmatpush.msra.mxu2 %v4298_v59 }
 0x39a   :  { %v5539_v26 = vpop.permute.xlu2 %2263 }
 0x39b   :  { %v1926_v40 = vpop.permute.xlu1 %1925 }
 0x39c   :  { %v1945_v30 = vsel %vm1939_vm6, %v1926_v40, %v1928_v44  ;;  %v1946_v46 = vsel %vm1939_vm6, %v5400_v50, %v1926_v40  ;;  %v1940_v44 = vsel %vm1939_vm6, %v5430_v2, %v1938_v38  ;;  %v1905_v40 = vperm.slane %v5476_v49, 6 }
 0x39d   :  { %v1968_v3 = vmul.f32 %v1952_v43, %v1946_v46  ;;  %v1969_v59 = vmul.f32 %v1953_v39, %v1945_v30  ;;  %v1974_v39 = vmul.f32 %v1958_v63, %v1940_v44  ;;  %v1888_v30 = vsel %vm1886_vm7, %v5456_v42, %v1883_v11 }
 0x39e   :  { %v2262_v7 = vpop.permute.xlu0 %2261  ;;  %v2286_v46 = vperm.slane %v5507_v32, 2  ;;  %v1921_v34 = vmul.f32 %v1905_v40, %v1888_v30  ;;  %v1904_v40 = vperm.slane %v5476_v49, 5 }
 0x39f   :  { %1994 = vmatpush.msra.mxu0 %v1968_v3  ;;  %2014 = vmatpush.msra.mxu1 %v1969_v59  ;;  %v1899_v3 = vperm.slane %v5476_v49, 0  ;;  %v1906_v59 = vperm.slane %v5476_v49, 7 }
 0x3a1   :  { %1995 = vmatpush.msra.mxu0 %v4282_v22  ;;  %2015 = vmatpush.msra.mxu1 %v4284_v28  ;;  %v5512_v28 = vld [vmem:[%s6218_s4 + $0x20] sm:$0xff] }
 0x3a3   :  { %v1875_v22 = vpop.permute.xlu1 %1874  ;;  %2016 = vmatpush.msra.mxu1 %v1916_v4  ;;  %v2287_v4 = vperm.slane %v5507_v32, 3 }
 0x3a4   :  { %v1891_v21 = vsel %vm1886_vm7, %v1875_v22, %v5445_v48  ;;  %v1892_v43 = vsel %vm1886_vm7, %v5424_v24, %v1875_v22  ;;  %3822 = vmatmul.msk.f32.vlgmr.msra.gmra.mxu1 %vm879_vm11, %v5512_v28  ;;  %v2276_v24 = vsel %vm2271_vm8, %v5474_v53, %v2262_v7 }
 0x3a5   :  { %v1917_v50 = vmul.f32 %v1901_v1, %v1892_v43  ;;  %v1918_v38 = vmul.f32 %v1902_v58, %v1891_v21  ;;  %v2275_v1 = vsel %vm2271_vm8, %v2262_v7, %v5539_v26  ;;  %v2302_v58 = vmul.f32 %v2286_v46, %v2276_v24  ;;  %v5573_v46 = vpop.permute.xlu2 %2202 }
 0x3a6   :  { %v5531_v27 = vpop.permute.xlu0 %2255  ;;  %v1956_v7 = vperm.slane %v5442_v20, 4 }
 0x3a7   :  { %2036 = vmatpush.msra.mxu2 %v1917_v50  ;;  %2056 = vmatpush.msra.mxu3 %v1918_v38 }
 0x3a8   :  { %3823 = vmatmul.msk.f32.vlgmr.msra.gmra.mxu2 %vm879_vm11, %v5512_v28  ;;  %3824 = vmatmul.msk.f32.vlgmr.msra.gmra.mxu3 %vm879_vm11, %v5512_v28 }
 0x3a9   :  { %2114 = vmatpush.msrb.mxu2 %v1974_v39  ;;  %2134 = vmatpush.msrb.mxu3 %v1975_v57  ;;  %v2227_v39 = vshra.s32 %v5261_v45, 16  ;;  %v1903_v57 = vperm.slane %v5476_v49, 4 }
 0x3ab   :  { %2115 = vmatpush.msrb.mxu2 %v4316_v5  ;;  %2135 = vmatpush.msrb.mxu3 %v4294_v51  ;;  %v1885_v63 = vpop.permute.xlu1 %1884  ;;  %v2303_v5 = vmul.f32 %v2287_v4, %v2275_v1 }
 0x3ac   :  { %v1887_v29 = vsel %vm1886_vm7, %v1883_v11, %v1885_v63  ;;  %v1894_v44 = vsel %vm1886_vm7, %v1885_v63, %v5396_v54  ;;  %v1957_v11 = vperm.slane %v5442_v20, 5 }
 0x3ad   :  { %2116 = vmatpush.msrb.mxu2 %v1921_v34  ;;  %v1915_v14 = vmul.f32 %v1899_v3, %v1894_v44  ;;  %v1922_v22 = vmul.f32 %v1906_v59, %v1887_v29  ;;  %v5593_v1 = vpop.permute.xlu2 %2149  ;;  %v2285_v29 = vperm.slane %v5507_v32, 1 }
 0x3ae   :  { %v5554_v51 = vpop.permute.xlu0 %2153 }
 0x3af   :  { %2366 = vmatpush.msra.mxu2 %v2302_v58  ;;  %1996 = vmatpush.msra.mxu0 %v1915_v14 }
 0x3b0   :  { %2136 = vmatpush.msrb.mxu3 %v1922_v22  ;;  %3821 = vmatmul.msk.f32.vlgmr.msra.gmra.mxu0 %vm879_vm11, %v5512_v28 }
 0x3b1   :  { %3827 = vmatmul.msk.f32.vlgmr.msrb.gmra.mxu2 %vm879_vm11, %v5512_v28  ;;  %3828 = vmatmul.msk.f32.vlgmr.msrb.gmra.mxu3 %vm879_vm11, %v5512_v28 }
 0x3b2   :  { %2386 = vmatpush.msra.mxu3 %v2303_v5 }
 0x3b3   :  { %v1934_v54 = vpop.permute.xlu1 %1933 }
 0x3b4   :  { %v1941_v21 = vsel %vm1939_vm6, %v1934_v54, %v5430_v2  ;;  %v1942_v43 = vsel %vm1939_vm6, %v5355_v23, %v1934_v54  ;;  %v2228_v2 = vand.u32 1, %v2227_v39 }
 0x3b5   :  { %v1972_v50 = vmul.f32 %v1956_v7, %v1942_v43  ;;  %v1973_v38 = vmul.f32 %v1957_v11, %v1941_v21 }
 0x3b6   :  { %v2205_v20 = vpop.permute.xlu0 %2204  ;;  %v5581_v59 = vcvt.s32.f32 %v2228_v2  ;;  %v940_v2 = vpop.f32.mrf.mxu2 }
 0x3b7   :  { %2074 = vmatpush.msrb.mxu0 %v1972_v50  ;;  %2094 = vmatpush.msrb.mxu1 %v1973_v38  ;;  %v2225_v7 = vsel %vm2218_vm9, %v5573_v46, %v2205_v20 }
 0x3b8   :  { %v2233_v49 = vperm.slane %v5581_v59, 2  ;;  %v2231_v44 = vperm.slane %v5581_v59, 0  ;;  %v2232_v22 = vperm.slane %v5581_v59, 1 }
 0x3b9   :  { %2075 = vmatpush.msrb.mxu0 %v4324_v10  ;;  %2095 = vmatpush.msrb.mxu1 %v4333_v12 }
 0x3bb   :  { %v1879_v30 = vpop.permute.xlu1 %1878 }
 0x3bc   :  { %v1889_v23 = vsel %vm1886_vm7, %v1879_v30, %v5456_v42  ;;  %v1890_v24 = vsel %vm1886_vm7, %v5445_v48, %v1879_v30  ;;  %v2174_v42 = vshra.s32 %v5261_v45, 15  ;;  %v2247_v30 = vmul.f32 %v2231_v44, %v2225_v7 }
 0x3bd   :  { %v1919_v3 = vmul.f32 %v1903_v57, %v1890_v24  ;;  %v1920_v10 = vmul.f32 %v1904_v40, %v1889_v23  ;;  %v900_v57 = vpop.f32.mrf.mxu0  ;;  %v920_v40 = vpop.f32.mrf.mxu1  ;;  %v2288_v24 = vperm.slane %v5507_v32, 4 }
 0x3be   :  { %v2152_v12 = vpop.permute.xlu0 %2151  ;;  %v2175_v58 = vand.u32 1, %v2174_v42 }
 0x3bf   :  { %2076 = vmatpush.msrb.mxu0 %v1919_v3  ;;  %2096 = vmatpush.msrb.mxu1 %v1920_v10  ;;  %v2289_v3 = vperm.slane %v5507_v32, 5  ;;  %v2268_v10 = vpop.permute.xlu2 %2267 }
 0x3c0   :  { %3825 = vmatmul.msk.f32.vlgmr.msrb.gmra.mxu0 %vm879_vm11, %v5512_v28  ;;  %3826 = vmatmul.msk.f32.vlgmr.msrb.gmra.mxu1 %vm879_vm11, %v5512_v28  ;;  %v2284_v28 = vperm.slane %v5507_v32, 0  ;;  %v5601_v14 = vcvt.s32.f32 %v2175_v58 }
 0x3c2   :  { %v2178_v43 = vperm.slane %v5601_v14, 0  ;;  %v2179_v50 = vperm.slane %v5601_v14, 1 }
 0x3c3   :  { %v2207_v48 = vpop.permute.xlu1 %2206 }
 0x3c4   :  { %v2223_v34 = vsel %vm2218_vm9, %v2207_v48, %v5493_v13  ;;  %v2224_v11 = vsel %vm2218_vm9, %v2205_v20, %v2207_v48  ;;  %v2171_v20 = vsel %vm2165_vm10, %v2152_v12, %v5554_v51 }
 0x3c5   :  { %v2249_v4 = vmul.f32 %v2233_v49, %v2223_v34  ;;  %v2248_v23 = vmul.f32 %v2232_v22, %v2224_v11  ;;  %v2195_v42 = vmul.f32 %v2179_v50, %v2171_v20  ;;  %v2180_v34 = vperm.slane %v5601_v14, 2  ;;  %v1020_v50 = vpop.f32.mrf.mxu2 }
 0x3c6   :  { %v5595_v63 = vpop.permute.xlu0 %2269 }
 0x3c7   :  { %2367 = vmatpush.msra.mxu2 %v2249_v4  ;;  %v960_v4 = vpop.f32.mrf.mxu3  ;;  %v2272_v7 = vsel %vm2271_vm8, %v2268_v10, %v5595_v63 }
 0x3cb   :  { %v2258_v5 = vpop.permute.xlu1 %2257 }
 0x3cc   :  { %v2277_v54 = vsel %vm2271_vm8, %v2258_v5, %v5474_v53  ;;  %v2278_v21 = vsel %vm2271_vm8, %v5531_v27, %v2258_v5  ;;  %v2172_v53 = vsel %vm2165_vm10, %v5593_v1, %v2152_v12  ;;  %v5629_v12 = vld [vmem:[%s6218_s4 + $0x28] sm:$0xff] }
 0x3cd   :  { %v2300_v38 = vmul.f32 %v2284_v28, %v2278_v21  ;;  %v2301_v39 = vmul.f32 %v2285_v29, %v2277_v54  ;;  %v2194_v49 = vmul.f32 %v2178_v43, %v2172_v53  ;;  %v2290_v29 = vperm.slane %v5507_v32, 6  ;;  %v980_v54 = vpop.f32.mrf.mxu0  ;;  %v1000_v21 = vpop.f32.mrf.mxu1 }
 0x3ce   :  { %v2266_v48 = vpop.permute.xlu0 %2265 }
 0x3cf   :  { %2326 = vmatpush.msra.mxu0 %v2300_v38  ;;  %2346 = vmatpush.msra.mxu1 %v2301_v39  ;;  %v2273_v58 = vsel %vm2271_vm8, %v2266_v48, %v2268_v10  ;;  %v2274_v28 = vsel %vm2271_vm8, %v5539_v26, %v2266_v48  ;;  %v2306_v43 = vmul.f32 %v2290_v29, %v2272_v7  ;;  %v2235_v38 = vperm.slane %v5581_v59, 4  ;;  %v2217_v39 = vpop.permute.xlu2 %2216  ;;  %v5651_v20 = vpop.f32.mrf.mxu3 }
 0x3d0   :  { %v2304_v44 = vmul.f32 %v2288_v24, %v2274_v28  ;;  %v2305_v22 = vmul.f32 %v2289_v3, %v2273_v58  ;;  %v1103_v29 = vpop.f32.mrf.mxu2  ;;  %v2481_v7 = vshra.s32 %v5261_v45, 18 }
 0x3d1   :  { %2327 = vmatpush.msra.mxu0 %v2247_v30  ;;  %2347 = vmatpush.msra.mxu1 %v2248_v23 }
 0x3d3   :  { %v2156_v5 = vpop.permute.xlu1 %2155  ;;  %2328 = vmatpush.msra.mxu0 %v2194_v49  ;;  %2348 = vmatpush.msra.mxu1 %v2195_v42  ;;  %v2537_v49 = vshra.s32 %v5261_v45, 20  ;;  %v2509_v42 = vshra.s32 %v5261_v45, 19 }
 0x3d4   :  { %v2170_v11 = vsel %vm2165_vm10, %v5554_v51, %v2156_v5  ;;  %3830 = vmatmul.msk.f32.vlgmr.msra.gmra.mxu0 %vm879_vm11, %v5629_v12  ;;  %3831 = vmatmul.msk.f32.vlgmr.msra.gmra.mxu1 %vm879_vm11, %v5629_v12  ;;  %v2234_v51 = vperm.slane %v5581_v59, 3 }
 0x3d5   :  { %v2196_v26 = vmul.f32 %v2180_v34, %v2170_v11  ;;  %2406 = vmatpush.msrb.mxu0 %v2304_v44  ;;  %2426 = vmatpush.msrb.mxu1 %v2305_v22  ;;  %v1063_v48 = vpop.f32.mrf.mxu0  ;;  %v1083_v34 = vpop.f32.mrf.mxu1  ;;  %v5664_v44 = vadd.f32 %v1103_v29, %v940_v2  ;;  %v2181_v22 = vperm.slane %v5601_v14, 3  ;;  %v2510_v11 = vand.u32 1, %v2509_v42 }
 0x3d6   :  { %v2213_v53 = vpop.permute.xlu0 %2212  ;;  %v5660_v58 = vadd.f32 %v1063_v48, %v900_v57  ;;  %v5662_v28 = vadd.f32 %v1083_v34, %v920_v40  ;;  %v2279_v57 = vsel %vm2271_vm8, %v5595_v63, %v5531_v27  ;;  %v2185_v27 = vperm.slane %v5601_v14, 7 }
 0x3d7   :  { %2368 = vmatpush.msra.mxu2 %v2196_v26  ;;  %v2291_v26 = vperm.slane %v5507_v32, 7  ;;  %v1123_v2 = vpop.f32.mrf.mxu3  ;;  %v2236_v34 = vperm.slane %v5581_v59, 5  ;;  %v2237_v29 = vperm.slane %v5581_v59, 6 }
 0x3d8   :  { %3832 = vmatmul.msk.f32.vlgmr.msra.gmra.mxu2 %vm879_vm11, %v5629_v12 }
 0x3d9   :  { %2446 = vmatpush.msrb.mxu2 %v2306_v43  ;;  %v2307_v63 = vmul.f32 %v2291_v26, %v2279_v57  ;;  %v2738_v57 = vshra.s32 %v5261_v45, 21 }
 0x3db   :  { %v2211_v30 = vpop.permute.xlu1 %2210 }
 0x3dc   :  { %v2221_v23 = vsel %vm2218_vm9, %v2211_v30, %v2213_v53  ;;  %v2222_v24 = vsel %vm2218_vm9, %v5493_v13, %v2211_v30  ;;  %v2538_v13 = vand.u32 1, %v2537_v49  ;;  %v5682_v30 = vpop.permute.xlu2 %2163 }
 0x3dd   :  { %v2250_v3 = vmul.f32 %v2234_v51, %v2222_v24  ;;  %v2251_v10 = vmul.f32 %v2235_v38, %v2221_v23  ;;  %v2238_v51 = vperm.slane %v5581_v59, 7  ;;  %v2226_v38 = vsel %vm2218_vm9, %v2217_v39, %v5573_v46  ;;  %v1163_v48 = vpop.f32.mrf.mxu1 }
 0x3de   :  { %v5684_v23 = vadd.f32 %v1123_v2, %v960_v4  ;;  %v5686_v24 = vcvt.s32.f32 %v2538_v13  ;;  %v2173_v46 = vsel %vm2165_vm10, %v5682_v30, %v5593_v1  ;;  %v1143_v4 = vpop.f32.mrf.mxu0  ;;  %v5703_v13 = vadd.f32 %v1163_v48, %v1000_v21 }
 0x3df   :  { %2387 = vmatpush.msra.mxu3 %v2250_v3  ;;  %2407 = vmatpush.msrb.mxu0 %v2251_v10  ;;  %v2482_v3 = vand.u32 1, %v2481_v7  ;;  %v5688_v10 = vcvt.s32.f32 %v2510_v11  ;;  %v2254_v42 = vmul.f32 %v2238_v51, %v2226_v38  ;;  %v1183_v7 = vpop.f32.mrf.mxu2  ;;  %v2766_v11 = vshra.s32 %v5261_v45, 22 }
 0x3e0   :  { %v2544_v49 = vperm.slane %v5686_v24, 3  ;;  %v5709_v51 = vadd.f32 %v1183_v7, %v1020_v50  ;;  %v2543_v7 = vperm.slane %v5686_v24, 2 }
 0x3e1   :  { %v5706_v26 = vcvt.s32.f32 %v2482_v3  ;;  %v2516_v1 = vperm.slane %v5688_v10, 3 }
 0x3e2   :  { %v2560_v59 = vmul.f32 %v2544_v49, %v4847_v18  ;;  %v2520_v49 = vperm.slane %v5688_v10, 7 }
 0x3e3   :  { %v5669_v43 = vpop.permute.xlu1 %2157  ;;  %v2492_v48 = vperm.slane %v5706_v26, 7 }
 0x3e4   :  { %v2169_v40 = vsel %vm2165_vm10, %v2156_v5, %v5669_v43  ;;  %v2794_v5 = vshra.s32 %v5261_v45, 23 }
 0x3e5   :  { %v2197_v32 = vmul.f32 %v2181_v22, %v2169_v40  ;;  %v5701_v22 = vadd.f32 %v1143_v4, %v980_v54  ;;  %v2201_v40 = vmul.f32 %v2185_v27, %v2173_v46  ;;  %v2488_v54 = vperm.slane %v5706_v26, 3 }
 0x3e6   :  { %v2795_v4 = vand.u32 1, %v2794_v5  ;;  %v2767_v27 = vand.u32 1, %v2766_v11 }
 0x3e7   :  { %2388 = vmatpush.msra.mxu3 %v2197_v32  ;;  %v2548_v32 = vperm.slane %v5686_v24, 7 }
 0x3e8   :  { %3833 = vmatmul.msk.f32.vlgmr.msra.gmra.mxu3 %vm879_vm11, %v5629_v12  ;;  %v5730_v5 = vcvt.s32.f32 %v2795_v4 }
 0x3e9   :  { %2466 = vmatpush.msrb.mxu3 %v2307_v63  ;;  %v1203_v63 = vpop.f32.mrf.mxu3  ;;  %v2564_v46 = vmul.f32 %v2548_v32, %v4797_v25  ;;  %v5758_v32 = vld [vmem:[%s6218_s4 + $0x30] sm:$0xff] }
 0x3ea   :  { %v5721_v18 = vadd.f32 %v1203_v63, %v5651_v20  ;;  %v5732_v20 = vcvt.s32.f32 %v2767_v27  ;;  %v2798_v63 = vperm.slane %v5730_v5, 0 }
 0x3eb   :  { %2467 = vmatpush.msrb.mxu3 %v2254_v42  ;;  %v2215_v2 = vpop.permute.xlu1 %2214  ;;  %v2532_v42 = vmul.f32 %v2516_v1, %v4866_v15  ;;  %v2184_v15 = vperm.slane %v5601_v14, 6 }
 0x3ec   :  { %v2219_v21 = vsel %vm2218_vm9, %v2215_v2, %v2217_v39  ;;  %v2220_v38 = vsel %vm2218_vm9, %v2213_v53, %v2215_v2  ;;  %v2739_v39 = vand.u32 1, %v2738_v57  ;;  %v2504_v53 = vmul.f32 %v2488_v54, %v4875_v6  ;;  %v1427_v57 = vpop.f32.mrf.mxu2 }
 0x3ed   :  { %v2252_v3 = vmul.f32 %v2236_v34, %v2220_v38  ;;  %v2253_v50 = vmul.f32 %v2237_v29, %v2219_v21  ;;  %2468 = vmatpush.msrb.mxu3 %v2201_v40  ;;  %v1387_v34 = vpop.f32.mrf.mxu0  ;;  %v1407_v29 = vpop.f32.mrf.mxu1  ;;  %v2536_v6 = vmul.f32 %v2520_v49, %v4821_v41  ;;  %v2801_v2 = vperm.slane %v5730_v5, 3 }
 0x3ee   :  { %v5737_v11 = vadd.f32 %v1387_v34, %v5660_v58  ;;  %v5740_v1 = vadd.f32 %v1407_v29, %v5662_v28  ;;  %v5742_v40 = vcvt.s32.f32 %v2739_v39  ;;  %v5749_v54 = vadd.f32 %v1427_v57, %v5664_v44 }
 0x3ef   :  { %2643 = vmatpush.msra.mxu3 %v2560_v59  ;;  %2427 = vmatpush.msrb.mxu1 %v2252_v3  ;;  %v2515_v41 = vperm.slane %v5688_v10, 2  ;;  %v2508_v58 = vmul.f32 %v2492_v48, %v4860_v19  ;;  %v2773_v28 = vperm.slane %v5732_v20, 3  ;;  %v2559_v44 = vmul.f32 %v2543_v7, %v4688_v36 }
 0x3f0   :  { %2447 = vmatpush.msrb.mxu2 %v2253_v50  ;;  %3837 = vmatmul.msk.f32.vlgmr.msrb.gmra.mxu3 %vm879_vm11, %v5629_v12  ;;  %v2745_v38 = vperm.slane %v5742_v40, 3  ;;  %v2487_v3 = vperm.slane %v5706_v26, 2  ;;  %v2547_v50 = vperm.slane %v5686_v24, 6  ;;  %v2744_v4 = vperm.slane %v5742_v40, 2 }
 0x3f1   :  { %2644 = vmatpush.msra.mxu3 %v2532_v42  ;;  %v1447_v19 = vpop.f32.mrf.mxu3  ;;  %v2817_v27 = vmul.f32 %v2801_v2, %v4565_v47  ;;  %v2772_v36 = vperm.slane %v5732_v20, 2  ;;  %v2531_v49 = vmul.f32 %v2515_v41, %v4761_v56  ;;  %v2182_v39 = vperm.slane %v5601_v14, 4 }
 0x3f2   :  { %v5770_v42 = vadd.f32 %v1447_v19, %v5684_v23  ;;  %v2789_v47 = vmul.f32 %v2773_v28, %v4581_v62  ;;  %v2541_v48 = vperm.slane %v5686_v24, 0  ;;  %v2519_v23 = vperm.slane %v5688_v10, 6 }
 0x3f3   :  { %2645 = vmatpush.msra.mxu3 %v2504_v53  ;;  %v2162_v25 = vpop.permute.xlu1 %2161  ;;  %v2183_v53 = vperm.slane %v5601_v14, 5  ;;  %v2542_v56 = vperm.slane %v5686_v24, 1  ;;  %v2563_v34 = vmul.f32 %v2547_v50, %v4792_v52  ;;  %v3051_v29 = vshra.s32 %v5261_v45, 26 }
 0x3f4   :  { %v2166_v59 = vsel %vm2165_vm10, %v2162_v25, %v5682_v30  ;;  %v2805_v30 = vperm.slane %v5730_v5, 7  ;;  %v2491_v62 = vperm.slane %v5706_v26, 6  ;;  %v1507_v52 = vpop.f32.mrf.mxu2  ;;  %v2535_v16 = vmul.f32 %v2519_v23, %v4940_v17 }
 0x3f5   :  { %2723 = vmatpush.msrb.mxu3 %v2564_v46  ;;  %v2200_v21 = vmul.f32 %v2184_v15, %v2166_v59  ;;  %v2761_v46 = vmul.f32 %v2745_v38, %v4594_v9  ;;  %v2503_v15 = vmul.f32 %v2487_v3, %v4771_v35  ;;  %v1467_v14 = vpop.f32.mrf.mxu0  ;;  %v1487_v57 = vpop.f32.mrf.mxu1  ;;  %v2777_v28 = vperm.slane %v5732_v20, 7 }
 0x3f6   :  { %v5793_v35 = vadd.f32 %v1467_v14, %v5701_v22  ;;  %v5796_v41 = vadd.f32 %v1487_v57, %v5703_v13  ;;  %v2821_v22 = vmul.f32 %v2805_v30, %v4428_v31  ;;  %v2557_v13 = vmul.f32 %v2541_v48, %v4729_v8  ;;  %v6335_v48 = vld [vmem:[#allocation22_spill] sm:$0xff] }
 0x3f7   :  { %2724 = vmatpush.msrb.mxu3 %v2536_v6  ;;  %2448 = vmatpush.msrb.mxu2 %v2200_v21  ;;  %v2513_v21 = vperm.slane %v5688_v10, 0  ;;  %v2514_v38 = vperm.slane %v5688_v10, 1  ;;  %v2558_v3 = vmul.f32 %v2542_v56, %v4724_v0  ;;  %v2485_v17 = vperm.slane %v5706_v26, 0 }
 0x3f8   :  { %3836 = vmatmul.msk.f32.vlgmr.msrb.gmra.mxu2 %vm879_vm11, %v5629_v12  ;;  %3842 = vmatmul.msk.f32.vlgmr.msra.gmra.mxu3 %vm879_vm11, %v5758_v32  ;;  %v2788_v8 = vmul.f32 %v2772_v36, %v4485_v60  ;;  %v3052_v30 = vand.u32 1, %v3051_v29  ;;  %v2507_v50 = vmul.f32 %v2491_v62, %v4974_v55  ;;  %v2545_v19 = vperm.slane %v5686_v24, 4  ;;  %v6337_v62 = vld [vmem:[#allocation25_spill] sm:$0xff] }
 0x3f9   :  { %2725 = vmatpush.msrb.mxu3 %v2508_v58  ;;  %2623 = vmatpush.msra.mxu2 %v2559_v44  ;;  %v5799_v58 = vadd.f32 %v1507_v52, %v5709_v51  ;;  %v1527_v51 = vpop.f32.mrf.mxu3  ;;  %v2486_v44 = vperm.slane %v5706_v26, 1  ;;  %v2529_v0 = vmul.f32 %v2513_v21, %v4816_v37  ;;  %v2793_v55 = vmul.f32 %v2777_v28, %v4542_v33 }
 0x3fa   :  { %v5815_v31 = vadd.f32 %v1527_v51, %v5721_v18  ;;  %v3974_v18 = vld [vmem:[%s6217_s1] sm:$0xff]  ;;  %v2546_v37 = vperm.slane %v5686_v24, 5  ;;  %v2501_v23 = vmul.f32 %v2485_v17, %v6335_v48  ;;  %v5841_v56 = vcvt.s32.f32 %v3052_v30  ;;  %v5872_v51 = vld [vmem:[%s6218_s4 + $0x38] sm:$0xff]  ;;  %v6348_v48 = vld [vmem:[#allocation16_spill] sm:$0xff] }
 0x3fb   :  { %2900 = vmatpush.msra.mxu3 %v2817_v27  ;;  %2624 = vmatpush.msra.mxu2 %v2531_v49  ;;  %v2160_v7 = vpop.permute.xlu1 %2159  ;;  %v2995_v27 = vshra.s32 %v3974_v18, 24  ;;  %v2518_v24 = vperm.slane %v5688_v10, 5  ;;  %v2804_v57 = vperm.slane %v5730_v5, 6  ;;  %v2771_v28 = vperm.slane %v5732_v20, 1  ;;  %v6345_v18 = vld [vmem:[#allocation26_spill] sm:$0xff] }
 0x3fc   :  { %v2167_v9 = vsel %vm2165_vm10, %v2160_v7, %v2162_v25  ;;  %v2168_v6 = vsel %vm2165_vm10, %v5669_v43, %v2160_v7  ;;  %v2800_v25 = vperm.slane %v5730_v5, 2  ;;  %v3023_v43 = vshra.s32 %v5261_v45, 25  ;;  %v6336_v7 = vld [vmem:[#allocation11_spill] sm:$0xff] }
 0x3fd   :  { %2901 = vmatpush.msra.mxu3 %v2789_v47  ;;  %v2198_v2 = vmul.f32 %v2182_v39, %v2168_v6  ;;  %v2199_v59 = vmul.f32 %v2183_v53, %v2167_v9  ;;  %2625 = vmatpush.msra.mxu2 %v2503_v15  ;;  %v2749_v45 = vperm.slane %v5742_v40, 7  ;;  %v1719_v39 = vpop.f32.mrf.mxu0  ;;  %v6334_v53 = vld [vmem:[#allocation20_spill] sm:$0xff]  ;;  %v1739_v33 = vpop.f32.mrf.mxu1  ;;  %v2561_v9 = vmul.f32 %v2545_v19, %v6337_v62 }
 0x3fe   :  { %v3024_v49 = vand.u32 1, %v3023_v43  ;;  %v2816_v60 = vmul.f32 %v2800_v25, %v4489_v61  ;;  %v2502_v47 = vmul.f32 %v2486_v44, %v6334_v53  ;;  %v5839_v61 = vadd.f32 %v1719_v39, %v5737_v11  ;;  %v1759_v15 = vpop.f32.mrf.mxu2  ;;  %v6340_v25 = vld [vmem:[#allocation23_spill] sm:$0xff] }
 0x3ff   :  { %2902 = vmatpush.msra.mxu3 %v2761_v46  ;;  %2703 = vmatpush.msrb.mxu2 %v2563_v34  ;;  %v2517_v46 = vperm.slane %v5688_v10, 4  ;;  %v5845_v34 = vadd.f32 %v1739_v33, %v5740_v1  ;;  %v5848_v29 = vadd.f32 %v1759_v15, %v5749_v54  ;;  %v2765_v14 = vmul.f32 %v2749_v45, %v6336_v7  ;;  %v6338_v10 = vld [vmem:[#allocation6_spill] sm:$0xff]  ;;  %v6339_v1 = vld [vmem:[#allocation24_spill] sm:$0xff]  ;;  %v6342_v44 = vld [vmem:[#allocation3_spill] sm:$0xff] }
 0x400   :  { %2408 = vmatpush.msrb.mxu0 %v2198_v2  ;;  %2428 = vmatpush.msrb.mxu1 %v2199_v59  ;;  %v2996_v11 = vand.u32 1, %v2995_v27  ;;  %v5852_v6 = vcvt.s32.f32 %v3024_v49  ;;  %v2760_v52 = vmul.f32 %v2744_v4, %v6338_v10  ;;  %v2562_v2 = vmul.f32 %v2546_v37, %v6339_v1  ;;  %v6346_v49 = vld [vmem:[#allocation29_spill] sm:$0xff]  ;;  %v6347_v37 = vld [vmem:[#allocation4_spill] sm:$0xff]  ;;  %v6349_v33 = vld [vmem:[#allocation43_spill] sm:$0xff] }
 0x401   :  { %2704 = vmatpush.msrb.mxu2 %v2535_v16  ;;  %3834 = vmatmul.msk.f32.vlgmr.msrb.gmra.mxu0 %vm879_vm11, %v5629_v12  ;;  %v3058_v54 = vperm.slane %v5841_v56, 3  ;;  %v1779_v59 = vpop.f32.mrf.mxu3  ;;  %v2533_v21 = vmul.f32 %v2517_v46, %v6340_v25  ;;  %v2489_v16 = vperm.slane %v5706_v26, 4  ;;  %v2490_v43 = vperm.slane %v5706_v26, 5  ;;  %v6351_v7 = vld [vmem:[#allocation9_spill] sm:$0xff] }
 0x402   :  { %3835 = vmatmul.msk.f32.vlgmr.msrb.gmra.mxu1 %vm879_vm11, %v5629_v12  ;;  %2583 = vmatpush.msra.mxu0 %v2557_v13  ;;  %v6333_v12 = vld [vmem:[#allocation21_spill] sm:$0xff]  ;;  %v2799_v4 = vperm.slane %v5730_v5, 1  ;;  %v6341_v13 = vld [vmem:[#allocation27_spill] sm:$0xff]  ;;  %v2814_v26 = vmul.f32 %v2798_v63, %v6342_v44  ;;  %v3030_v17 = vperm.slane %v5852_v6, 3  ;;  %v2770_v30 = vperm.slane %v5732_v20, 0  ;;  %v6357_v44 = vld [vmem:[#allocation12_spill] sm:$0xff] }
 0x403   :  { %2603 = vmatpush.msra.mxu1 %v2558_v3  ;;  %3841 = vmatmul.msk.f32.vlgmr.msra.gmra.mxu2 %vm879_vm11, %v5758_v32  ;;  %v2530_v36 = vmul.f32 %v2514_v38, %v6333_v12  ;;  %v2534_v38 = vmul.f32 %v2518_v24, %v6341_v13  ;;  %v5878_v3 = vcvt.s32.f32 %v2996_v11  ;;  %v2505_v27 = vmul.f32 %v2489_v16, %v6345_v18  ;;  %v6352_v11 = vld [vmem:[#allocation18_spill] sm:$0xff] }
 0x404   :  { %3846 = vmatmul.msk.f32.vlgmr.msrb.gmra.mxu3 %vm879_vm11, %v5758_v32  ;;  %2705 = vmatpush.msrb.mxu2 %v2507_v50  ;;  %v2748_v50 = vperm.slane %v5742_v40, 6  ;;  %v2815_v39 = vmul.f32 %v2799_v4, %v6347_v37  ;;  %v2743_v53 = vperm.slane %v5742_v40, 1  ;;  %v3046_v15 = vmul.f32 %v3030_v17, %v6349_v33  ;;  %v6364_v37 = vld [vmem:[#allocation15_spill] sm:$0xff] }
 0x405   :  { %2980 = vmatpush.msrb.mxu3 %v2821_v22  ;;  %2584 = vmatpush.msra.mxu0 %v2529_v0  ;;  %v5864_v22 = vadd.f32 %v1779_v59, %v5770_v42  ;;  %v2776_v42 = vperm.slane %v5732_v20, 6  ;;  %v6344_v0 = vld [vmem:[#allocation40_spill] sm:$0xff]  ;;  %v1799_v63 = vpop.f32.mrf.mxu0  ;;  %v2802_v62 = vperm.slane %v5730_v5, 4  ;;  %v3057_v59 = vperm.slane %v5841_v56, 2 }
 0x406   :  { %2604 = vmatpush.msra.mxu1 %v2530_v36  ;;  %2880 = vmatpush.msra.mxu2 %v2816_v60  ;;  %v3074_v19 = vmul.f32 %v3058_v54, %v6344_v0  ;;  %v2506_v60 = vmul.f32 %v2490_v43, %v6346_v49  ;;  %v5897_v12 = vadd.f32 %v1799_v63, %v5793_v35  ;;  %v1819_v36 = vpop.f32.mrf.mxu1  ;;  %v6350_v35 = vld [vmem:[#allocation5_spill] sm:$0xff]  ;;  %v3062_v25 = vperm.slane %v5841_v56, 7  ;;  %v6360_v63 = vld [vmem:[#allocation14_spill] sm:$0xff] }
 0x407   :  { %2981 = vmatpush.msrb.mxu3 %v2793_v55  ;;  %2585 = vmatpush.msra.mxu0 %v2501_v23  ;;  %v3002_v55 = vperm.slane %v5878_v3, 3  ;;  %v5903_v46 = vadd.f32 %v1819_v36, %v5796_v41  ;;  %v2792_v23 = vmul.f32 %v2776_v42, %v6348_v48  ;;  %v2787_v24 = vmul.f32 %v2771_v28, %v6350_v35  ;;  %v6353_v41 = vld [vmem:[#allocation44_spill] sm:$0xff]  ;;  %v6356_v43 = vld [vmem:[#allocation13_spill] sm:$0xff]  ;;  %v6366_v48 = vld [vmem:[#allocation35_spill] sm:$0xff] }
 0x408   :  { %2605 = vmatpush.msra.mxu1 %v2502_v47  ;;  %2881 = vmatpush.msra.mxu2 %v2788_v8  ;;  %v6343_v8 = vld [vmem:[#allocation7_spill] sm:$0xff]  ;;  %v2742_v47 = vperm.slane %v5742_v40, 0  ;;  %v2746_v16 = vperm.slane %v5742_v40, 4  ;;  %v2818_v4 = vmul.f32 %v2802_v62, %v6356_v43  ;;  %v3029_v28 = vperm.slane %v5852_v6, 2  ;;  %v6362_v49 = vld [vmem:[#allocation33_spill] sm:$0xff]  ;;  %v6367_v35 = vld [vmem:[#allocation42_spill] sm:$0xff] }
 0x409   :  { %2982 = vmatpush.msrb.mxu3 %v2765_v14  ;;  %2663 = vmatpush.msrb.mxu0 %v2561_v9  ;;  %v2820_v45 = vmul.f32 %v2804_v57, %v6343_v8  ;;  %v2786_v14 = vmul.f32 %v2770_v30, %v6351_v7  ;;  %v2803_v9 = vperm.slane %v5730_v5, 5  ;;  %v2764_v57 = vmul.f32 %v2748_v50, %v6352_v11  ;;  %v6359_v50 = vld [vmem:[#allocation37_spill] sm:$0xff] }
 0x40a   :  { %2683 = vmatpush.msrb.mxu1 %v2562_v2  ;;  %2882 = vmatpush.msra.mxu2 %v2760_v52  ;;  %v3018_v10 = vmul.f32 %v3002_v55, %v6353_v41  ;;  %v6354_v52 = vld [vmem:[#allocation8_spill] sm:$0xff]  ;;  %v6355_v2 = vld [vmem:[#allocation10_spill] sm:$0xff]  ;;  %v2775_v5 = vperm.slane %v5732_v20, 5  ;;  %v3034_v13 = vperm.slane %v5852_v6, 7  ;;  %v2747_v42 = vperm.slane %v5742_v40, 5  ;;  %v6363_v55 = vld [vmem:[#allocation39_spill] sm:$0xff] }
 0x40b   :  { %2664 = vmatpush.msrb.mxu0 %v2533_v21  ;;  %3840 = vmatmul.msk.f32.vlgmr.msra.gmra.mxu1 %vm879_vm11, %v5758_v32  ;;  %v2759_v1 = vmul.f32 %v2743_v53, %v6354_v52  ;;  %v2758_v54 = vmul.f32 %v2742_v47, %v6355_v2  ;;  %v2774_v21 = vperm.slane %v5732_v20, 4  ;;  %v3001_v17 = vperm.slane %v5878_v3, 2 }
 0x40c   :  { %2684 = vmatpush.msrb.mxu1 %v2534_v38  ;;  %3839 = vmatmul.msk.f32.vlgmr.msra.gmra.mxu0 %vm879_vm11, %v5758_v32  ;;  %v3078_v0 = vmul.f32 %v3062_v25, %v6359_v50  ;;  %v3050_v36 = vmul.f32 %v3034_v13, %v6363_v55  ;;  %v3056_v47 = vperm.slane %v5841_v56, 1  ;;  %v3061_v33 = vperm.slane %v5841_v56, 6  ;;  %v6377_v50 = vld [vmem:[#allocation47_spill] sm:$0xff] }
 0x40d   :  { %3845 = vmatmul.msk.f32.vlgmr.msrb.gmra.mxu2 %vm879_vm11, %v5758_v32  ;;  %3851 = vmatmul.msk.f32.vlgmr.msra.gmra.mxu3 %vm879_vm11, %v5872_v51  ;;  %v2790_v18 = vmul.f32 %v2774_v21, %v6360_v63  ;;  %v3028_v7 = vperm.slane %v5852_v6, 1  ;;  %v3033_v11 = vperm.slane %v5852_v6, 6  ;;  %v3000_v41 = vperm.slane %v5878_v3, 1  ;;  %v6372_v21 = vld [vmem:[#allocation34_spill] sm:$0xff] }
 0x40e   :  { %2960 = vmatpush.msrb.mxu2 %v2820_v45  ;;  %3157 = vmatpush.msra.mxu3 %v3074_v19  ;;  %v6358_v45 = vld [vmem:[#allocation28_spill] sm:$0xff]  ;;  %v3006_v19 = vperm.slane %v5878_v3, 7  ;;  %v3005_v25 = vperm.slane %v5878_v3, 6 }
 0x40f   :  { %2665 = vmatpush.msrb.mxu0 %v2505_v27  ;;  %2685 = vmatpush.msrb.mxu1 %v2506_v60  ;;  %v3073_v30 = vmul.f32 %v3057_v59, %v6358_v45  ;;  %v3045_v60 = vmul.f32 %v3029_v28, %v6362_v49  ;;  %v6374_v28 = vld [vmem:[#allocation49_spill] sm:$0xff]  ;;  %v3032_v45 = vperm.slane %v5852_v6, 5 }
 0x410   :  { %2961 = vmatpush.msrb.mxu2 %v2792_v23  ;;  %3158 = vmatpush.msra.mxu3 %v3046_v15  ;;  %v3017_v23 = vmul.f32 %v3001_v17, %v6366_v48  ;;  %v3027_v15 = vperm.slane %v5852_v6, 0  ;;  %v3049_v13 = vmul.f32 %v3033_v11, %v6374_v28  ;;  %v6376_v17 = vld [vmem:[#allocation51_spill] sm:$0xff] }
 0x411   :  { %2840 = vmatpush.msra.mxu0 %v2814_v26  ;;  %2860 = vmatpush.msra.mxu1 %v2815_v39  ;;  %v2819_v26 = vmul.f32 %v2803_v9, %v6357_v44  ;;  %v2762_v39 = vmul.f32 %v2746_v16, %v6364_v37  ;;  %v2999_v9 = vperm.slane %v5878_v3, 0  ;;  %v6373_v16 = vld [vmem:[#allocation41_spill] sm:$0xff] }
 0x412   :  { %2962 = vmatpush.msrb.mxu2 %v2764_v57  ;;  %3159 = vmatpush.msra.mxu3 %v3018_v10  ;;  %v3856_v57 = vld [vmem:[%s6218_s4 + $0x40] sm:$0xff] }
 0x413   :  { %2841 = vmatpush.msra.mxu0 %v2786_v14  ;;  %2861 = vmatpush.msra.mxu1 %v2787_v24  ;;  %v1839_v38 = vpop.f32.mrf.mxu2  ;;  %v1859_v8 = vpop.f32.mrf.mxu3  ;;  %v3022_v24 = vmul.f32 %v3006_v19, %v6367_v35  ;;  %v6368_v14 = vld [vmem:[#allocation31_spill] sm:$0xff]  ;;  %v6369_v10 = vld [vmem:[#allocation30_spill] sm:$0xff]  ;;  %v3015_v43 = vmul.f32 %v2999_v9, %v6373_v16 }
 0x414   :  { %3843 = vmatmul.msk.f32.vlgmr.msrb.gmra.mxu0 %vm879_vm11, %v5758_v32  ;;  %3844 = vmatmul.msk.f32.vlgmr.msrb.gmra.mxu1 %vm879_vm11, %v5758_v32  ;;  %v5931_v20 = vadd.f32 %v1839_v38, %v5799_v58  ;;  %v5939_v40 = vadd.f32 %v1859_v8, %v5815_v31  ;;  %v6361_v32 = vld [vmem:[#allocation17_spill] sm:$0xff]  ;;  %v3055_v58 = vperm.slane %v5841_v56, 0  ;;  %v6365_v31 = vld [vmem:[#allocation19_spill] sm:$0xff]  ;;  %v3072_v52 = vmul.f32 %v3056_v47, %v6369_v10  ;;  %v6375_v38 = vld [vmem:[#allocation32_spill] sm:$0xff] }
 0x415   :  { %2842 = vmatpush.msra.mxu0 %v2758_v54  ;;  %2862 = vmatpush.msra.mxu1 %v2759_v1  ;;  %v2791_v27 = vmul.f32 %v2775_v5, %v6361_v32  ;;  %v2763_v53 = vmul.f32 %v2747_v42, %v6365_v31  ;;  %v6370_v1 = vld [vmem:[#allocation36_spill] sm:$0xff]  ;;  %v6371_v54 = vld [vmem:[#allocation38_spill] sm:$0xff]  ;;  %v3044_v5 = vmul.f32 %v3028_v7, %v6372_v21  ;;  %v3031_v42 = vperm.slane %v5852_v6, 4 }
 0x416   :  { %3850 = vmatmul.msk.f32.vlgmr.msra.gmra.mxu2 %vm879_vm11, %v5872_v51  ;;  %3855 = vmatmul.msk.f32.vlgmr.msrb.gmra.mxu3 %vm879_vm11, %v5872_v51  ;;  %v3071_v62 = vmul.f32 %v3055_v58, %v6368_v14  ;;  %v3077_v2 = vmul.f32 %v3061_v33, %v6370_v1  ;;  %v3043_v59 = vmul.f32 %v3027_v15, %v6371_v54  ;;  %v6378_v19 = vld [vmem:[#allocation46_spill] sm:$0xff]  ;;  %v6381_v58 = vld [vmem:[#allocation48_spill] sm:$0xff] }
 0x417   :  { %2920 = vmatpush.msrb.mxu0 %v2818_v4  ;;  %2940 = vmatpush.msrb.mxu1 %v2819_v26  ;;  %v3059_v4 = vperm.slane %v5841_v56, 4  ;;  %v3016_v44 = vmul.f32 %v3000_v41, %v6375_v38  ;;  %v3060_v26 = vperm.slane %v5841_v56, 5  ;;  %v3021_v8 = vmul.f32 %v3005_v25, %v6376_v17  ;;  %v6379_v56 = vld [vmem:[#allocation45_spill] sm:$0xff]  ;;  %v6380_v6 = vld [vmem:[#allocation50_spill] sm:$0xff] }
 0x418   :  { %3137 = vmatpush.msra.mxu2 %v3073_v30  ;;  %3237 = vmatpush.msrb.mxu3 %v3078_v0  ;;  %v3003_v30 = vperm.slane %v5878_v3, 4  ;;  %v3047_v32 = vmul.f32 %v3031_v42, %v6379_v56 }
 0x419   :  { %2921 = vmatpush.msrb.mxu0 %v2790_v18  ;;  %2941 = vmatpush.msrb.mxu1 %v2791_v27  ;;  %v3075_v0 = vmul.f32 %v3059_v4, %v6377_v50  ;;  %v3076_v63 = vmul.f32 %v3060_v26, %v6378_v19  ;;  %v3004_v18 = vperm.slane %v5878_v3, 5  ;;  %v3048_v27 = vmul.f32 %v3032_v45, %v6380_v6  ;;  %v6382_v3 = vld [vmem:[#allocation52_spill] sm:$0xff] }
 0x41a   :  { %3138 = vmatpush.msra.mxu2 %v3045_v60  ;;  %3238 = vmatpush.msrb.mxu3 %v3050_v36  ;;  %v3019_v49 = vmul.f32 %v3003_v30, %v6381_v58  ;;  %v3256_v58 = vpop.permute.xlu2 %3255 }
 0x41b   :  { %2922 = vmatpush.msrb.mxu0 %v2762_v39  ;;  %2942 = vmatpush.msrb.mxu1 %v2763_v53  ;;  %v3020_v60 = vmul.f32 %v3004_v18, %v6382_v3 }
 0x41c   :  { %3139 = vmatpush.msra.mxu2 %v3017_v23  ;;  %3239 = vmatpush.msrb.mxu3 %v3022_v24 }
 0x41d   :  { %3848 = vmatmul.msk.f32.vlgmr.msra.gmra.mxu0 %vm879_vm11, %v5872_v51  ;;  %3849 = vmatmul.msk.f32.vlgmr.msra.gmra.mxu1 %vm879_vm11, %v5872_v51 }
 0x41e   :  { %3854 = vmatmul.msk.f32.vlgmr.msrb.gmra.mxu2 %vm879_vm11, %v5872_v51  ;;  %3097 = vmatpush.msra.mxu0 %v3071_v62 }
 0x41f   :  { %3117 = vmatpush.msra.mxu1 %v3072_v52  ;;  %3860 = vmatmul.msk.f32.vlgmr.msra.gmra.mxu3 %vm879_vm11, %v3856_v57 }
 0x420   :  { %3217 = vmatpush.msrb.mxu2 %v3077_v2  ;;  %3098 = vmatpush.msra.mxu0 %v3043_v59 }
 0x421   :  { %3118 = vmatpush.msra.mxu1 %v3044_v5  ;;  %v2018_v39 = vpop.f32.mrf.mxu1 }
 0x422   :  { %3218 = vmatpush.msrb.mxu2 %v3049_v13  ;;  %3099 = vmatpush.msra.mxu0 %v3015_v43  ;;  %v2142_v13 = vadd.f32 %v2018_v39, %v5845_v34 }
 0x423   :  { %3119 = vmatpush.msra.mxu1 %v3016_v44 }
 0x424   :  { %3219 = vmatpush.msrb.mxu2 %v3021_v8 }
 0x425   :  { %3852 = vmatmul.msk.f32.vlgmr.msrb.gmra.mxu0 %vm879_vm11, %v5872_v51  ;;  %3853 = vmatmul.msk.f32.vlgmr.msrb.gmra.mxu1 %vm879_vm11, %v5872_v51 }
 0x426   :  { %3859 = vmatmul.msk.f32.vlgmr.msra.gmra.mxu2 %vm879_vm11, %v3856_v57  ;;  %3177 = vmatpush.msrb.mxu0 %v3075_v0 }
 0x427   :  { %3197 = vmatpush.msrb.mxu1 %v3076_v63  ;;  %3864 = vmatmul.msk.f32.vlgmr.msrb.gmra.mxu3 %vm879_vm11, %v3856_v57 }
 0x428   :  { %3178 = vmatpush.msrb.mxu0 %v3047_v32 }
 0x429   :  { %3198 = vmatpush.msrb.mxu1 %v3048_v27 }
 0x42a   :  { %3179 = vmatpush.msrb.mxu0 %v3019_v49 }
 0x42b   :  { %3199 = vmatpush.msrb.mxu1 %v3020_v60  ;;  %v2058_v51 = vpop.f32.mrf.mxu3  ;;  %v2038_v55 = vpop.f32.mrf.mxu2 }
 0x42c   :  { %v2143_v16 = vadd.f32 %v2038_v55, %v5848_v29  ;;  %v2144_v44 = vadd.f32 %v2058_v51, %v5864_v22 }
 0x42d   :  { %3857 = vmatmul.msk.f32.vlgmr.msra.gmra.mxu0 %vm879_vm11, %v3856_v57  ;;  %3858 = vmatmul.msk.f32.vlgmr.msra.gmra.mxu1 %vm879_vm11, %v3856_v57  ;;  %v1998_v37 = vpop.f32.mrf.mxu0 }
 0x42e   :  { %3863 = vmatmul.msk.f32.vlgmr.msrb.gmra.mxu2 %vm879_vm11, %v3856_v57  ;;  %v2141_v4 = vadd.f32 %v1998_v37, %v5839_v61 }
 0x434   :  { %v2138_v36 = vpop.f32.mrf.mxu3  ;;  %v2118_v31 = vpop.f32.mrf.mxu2 }
 0x435   :  { %3861 = vmatmul.msk.f32.vlgmr.msrb.gmra.mxu0 %vm879_vm11, %v3856_v57  ;;  %3862 = vmatmul.msk.f32.vlgmr.msrb.gmra.mxu1 %vm879_vm11, %v3856_v57  ;;  %v2147_v32 = vadd.f32 %v2118_v31, %v5931_v20  ;;  %v2148_v49 = vadd.f32 %v2138_v36, %v5939_v40 }
 0x43d   :  { %v2078_v47 = vpop.f32.mrf.mxu0  ;;  %v2098_v48 = vpop.f32.mrf.mxu1 }
 0x43e   :  { %v2145_v34 = vadd.f32 %v2078_v47, %v5897_v12  ;;  %v2146_v3 = vadd.f32 %v2098_v48, %v5903_v46 }
 0x451   :  { %v2330_v15 = vpop.f32.mrf.mxu0  ;;  %v2350_v35 = vpop.f32.mrf.mxu1 }
 0x452   :  { %v2473_v26 = vadd.f32 %v2330_v15, %v2141_v4  ;;  %v2474_v42 = vadd.f32 %v2350_v35, %v2142_v13 }
 0x45b   :  { %v2370_v23 = vpop.f32.mrf.mxu2 }
 0x45c   :  { %v2475_v38 = vadd.f32 %v2370_v23, %v2143_v16 }
 0x46b   :  { %v2390_v53 = vpop.f32.mrf.mxu3 }
 0x46c   :  { %v2476_v8 = vadd.f32 %v2390_v53, %v2144_v44 }
 0x473   :  { %v2470_v33 = vpop.f32.mrf.mxu3 }
 0x474   :  { %v2480_v12 = vadd.f32 %v2470_v33, %v2148_v49 }
 0x47b   :  { %v2450_v24 = vpop.f32.mrf.mxu2  ;;  %v2647_v62 = vpop.f32.mrf.mxu3 }
 0x47c   :  { %v2733_v19 = vadd.f32 %v2647_v62, %v2476_v8  ;;  %v2479_v51 = vadd.f32 %v2450_v24, %v2147_v32 }
 0x47e   :  { %v2410_v7 = vpop.f32.mrf.mxu0 }
 0x47f   :  { %v2430_v14 = vpop.f32.mrf.mxu1  ;;  %v2477_v55 = vadd.f32 %v2410_v7, %v2145_v34 }
 0x480   :  { %v2478_v53 = vadd.f32 %v2430_v14, %v2146_v3 }
 0x486   :  { %v2627_v9 = vpop.f32.mrf.mxu2 }
 0x487   :  { %v2727_v41 = vpop.f32.mrf.mxu3  ;;  %v2732_v17 = vadd.f32 %v2627_v9, %v2475_v38 }
 0x488   :  { %v2607_v11 = vpop.f32.mrf.mxu1  ;;  %v2737_v48 = vadd.f32 %v2727_v41, %v2480_v12 }
 0x489   :  { %v2587_v57 = vpop.f32.mrf.mxu0  ;;  %v2731_v30 = vadd.f32 %v2607_v11, %v2474_v42 }
 0x48a   :  { %v2730_v45 = vadd.f32 %v2587_v57, %v2473_v26 }
 0x490   :  { %v2707_v10 = vpop.f32.mrf.mxu2  ;;  %v2904_v2 = vpop.f32.mrf.mxu3 }
 0x491   :  { %v2667_v52 = vpop.f32.mrf.mxu0  ;;  %v2687_v1 = vpop.f32.mrf.mxu1  ;;  %v2990_v6 = vadd.f32 %v2904_v2, %v2733_v19  ;;  %v2736_v31 = vadd.f32 %v2707_v10, %v2479_v51 }
 0x492   :  { %v2734_v47 = vadd.f32 %v2667_v52, %v2477_v55  ;;  %v2735_v40 = vadd.f32 %v2687_v1, %v2478_v53  ;;  %v3329_v51 = vpop.permute.xlu2 %3328 }
 0x499   :  { %v2884_v54 = vpop.f32.mrf.mxu2  ;;  %v2984_v21 = vpop.f32.mrf.mxu3 }
 0x49a   :  { %v2844_v59 = vpop.f32.mrf.mxu0  ;;  %v2864_v25 = vpop.f32.mrf.mxu1  ;;  %v2989_v50 = vadd.f32 %v2884_v54, %v2732_v17  ;;  %v2994_v52 = vadd.f32 %v2984_v21, %v2737_v48 }
 0x49b   :  { %v2987_v63 = vadd.f32 %v2844_v59, %v2730_v45  ;;  %v2988_v18 = vadd.f32 %v2864_v25, %v2731_v30 }
 0x4a1   :  { %v2964_v5 = vpop.f32.mrf.mxu2 }
 0x4a2   :  { %v2924_v43 = vpop.f32.mrf.mxu0  ;;  %v2944_v28 = vpop.f32.mrf.mxu1  ;;  %v2993_v35 = vadd.f32 %v2964_v5, %v2736_v31 }
 0x4a3   :  { %v3161_v0 = vpop.f32.mrf.mxu3  ;;  %v2991_v7 = vadd.f32 %v2924_v43, %v2734_v47  ;;  %v2992_v62 = vadd.f32 %v2944_v28, %v2735_v40 }
 0x4a4   :  { %v3247_v37 = vadd.f32 %v3161_v0, %v2990_v6 }
 0x4a6   :  { %v6022_v24 = vadd.f32 %v3256_v58, %v3247_v37 }
 0x4a8   :  { %v3281_v25 = vmul.f32 %v6022_v24, %v6022_v24 }
 0x4a9   :  { %v3141_v29 = vpop.f32.mrf.mxu2 }
 0x4aa   :  { %v3246_v56 = vadd.f32 %v3141_v29, %v2989_v50  ;;  %v3101_v61 = vpop.f32.mrf.mxu0  ;;  %v3121_v27 = vpop.f32.mrf.mxu1  ;;  %v3602_v29 = vld [vmem:[%s6223_s14] sm:$0xff] }
 0x4ab   :  { %v3244_v22 = vadd.f32 %v3101_v61, %v2987_v63  ;;  %v3245_v60 = vadd.f32 %v3121_v27, %v2988_v18  ;;  %v3241_v9 = vpop.f32.mrf.mxu3 }
 0x4ac   :  { %v6012_v23 = vadd.f32 %v3256_v58, %v3246_v56  ;;  %v3251_v5 = vadd.f32 %v3241_v9, %v2994_v52  ;;  %v6383_v56 = vld [vmem:[#allocation2_spill] sm:$0xff] }
 0x4ad   :  { %v6010_v39 = vadd.f32 %v3256_v58, %v3244_v22  ;;  %v6014_v20 = vadd.f32 %v3256_v58, %v3245_v60 }
 0x4ae   :  { %v3280_v33 = vmul.f32 %v6012_v23, %v6012_v23  ;;  %v3265_v26 = vadd.f32 %v3256_v58, %v3251_v5 }
 0x4af   :  { %v3278_v15 = vmul.f32 %v6010_v39, %v6010_v39  ;;  %v3268_v46 = vadd.f32 %v6014_v20, %v6010_v39  ;;  %v3279_v36 = vmul.f32 %v6014_v20, %v6014_v20 }
 0x4b0   :  { %v3285_v0 = vmul.f32 %v3265_v26, %v3265_v26 }
 0x4b1   :  { %v3221_v14 = vpop.f32.mrf.mxu2  ;;  %v3269_v11 = vadd.f32 %v3268_v46, %v6012_v23  ;;  %v3286_v57 = vadd.f32 %v3279_v36, %v3278_v15 }
 0x4b2   :  { %v3181_v10 = vpop.f32.mrf.mxu0  ;;  %v3250_v1 = vadd.f32 %v3221_v14, %v2993_v35  ;;  %v3201_v54 = vpop.f32.mrf.mxu1 }
 0x4b3   :  { %v3248_v2 = vadd.f32 %v3181_v10, %v2991_v7  ;;  %v3287_v59 = vadd.f32 %v3286_v57, %v3280_v33  ;;  %v3249_v41 = vadd.f32 %v3201_v54, %v2992_v62  ;;  %v3270_v43 = vadd.f32 %v3269_v11, %v6022_v24 }
 0x4b4   :  { %v3264_v28 = vadd.f32 %v3256_v58, %v3250_v1 }
 0x4b5   :  { %v3262_v16 = vadd.f32 %v3256_v58, %v3248_v2  ;;  %v3263_v4 = vadd.f32 %v3256_v58, %v3249_v41  ;;  %v3288_v44 = vadd.f32 %v3287_v59, %v3281_v25 }
 0x4b6   :  { %v3284_v8 = vmul.f32 %v3264_v28, %v3264_v28 }
 0x4b7   :  { %v3271_v13 = vadd.f32 %v3270_v43, %v3262_v16  ;;  %v3282_v38 = vmul.f32 %v3262_v16, %v3262_v16  ;;  %v3283_v21 = vmul.f32 %v3263_v4, %v3263_v4 }
 0x4b9   :  { %v3289_v42 = vadd.f32 %v3288_v44, %v3282_v38  ;;  %v3272_v17 = vadd.f32 %v3271_v13, %v3263_v4 }
 0x4bb   :  { %v3273_v45 = vadd.f32 %v3272_v17, %v3264_v28  ;;  %v3290_v30 = vadd.f32 %v3289_v42, %v3283_v21 }
 0x4bd   :  { %v3274_v50 = vadd.f32 %v3273_v45, %v3265_v26  ;;  %v3291_v19 = vadd.f32 %v3290_v30, %v3284_v8 }
 0x4bf   :  { %3275 = vadd.xlane.f32.xlu0 %v3274_v50  ;;  %v3292_v63 = vadd.f32 %v3291_v19, %v3285_v0 }
 0x4c1   :  { %3293 = vadd.xlane.f32.xlu1 %v3292_v63 }
 0x4da   :  { %3664 = vperm.xlu1 %3896, %v3602_v29  }
 0x532   :  { %v3276_v18 = vpop.xlane.xlu0 %3275 }
 0x533   :  { %v3277_v61 = vmul.f32 %v3276_v18, %v6383_v56 }
 0x534   :  { %v3294_v32 = vpop.xlane.xlu1 %3293 }
 0x535   :  { %v3295_v34 = vmul.f32 %v3294_v32, %v6383_v56  ;;  %v3296_v6 = vmul.f32 %v3277_v61, %v3277_v61  ;;  %v3299_v12 = vsub.f32 %v6010_v39, %v3277_v61  ;;  %v3300_v31 = vsub.f32 %v6014_v20, %v3277_v61 }
 0x536   :  { %v3301_v47 = vsub.f32 %v6012_v23, %v3277_v61  ;;  %v3302_v15 = vsub.f32 %v6022_v24, %v3277_v61  ;;  %v3303_v40 = vsub.f32 %v3262_v16, %v3277_v61  ;;  %v3304_v36 = vsub.f32 %v3263_v4, %v3277_v61  ;;  %v3342_v23 = vpop.permute.xlu2 %3341 }
 0x537   :  { %v3297_v22 = vsub.f32 %v3295_v34, %v3296_v6  ;;  %v3305_v48 = vsub.f32 %v3264_v28, %v3277_v61  ;;  %v3306_v35 = vsub.f32 %v3265_v26, %v3277_v61 }
 0x539   :  { %v3298_v27 = vmax.f32 %v3297_v22, 0.0 }
 0x53b   :  { %v3307_v58 = vadd.f32 1e-05, %v3298_v27 }
 0x53d   :  { %3937 = vrsqrt.f32 %v3307_v58  ;;  %vm3314_vm12 = vweird.f32 %v3307_v58 }
 0x543   :  { %v3938_v49 = vpop.eup %3937 }
 0x544   :  { %v3309_v3 = vmul.f32 %v3938_v49, %v3307_v58  ;;  %vm3315_vm11 = vweird.f32 %v3938_v49 }
 0x545   :  { %vm3316_vm13 = vmor %vm3314_vm12, %vm3315_vm11 }
 0x546   :  { %v3310_v60 = vmul.f32 %v3938_v49, %v3309_v3 }
 0x548   :  { %v3311_v55 = vmul.f32 0.5, %v3310_v60 }
 0x54a   :  { %v3312_v37 = vsub.f32 1.5, %v3311_v55 }
 0x54c   :  { %v3313_v53 = vmul.f32 %v3938_v49, %v3312_v37 }
 0x54e   :  { %v3317_v46 = vsel %vm3316_vm13, %v3938_v49, %v3313_v53 }
 0x54f   :  { %v3318_v7 = vmul.f32 %v3317_v46, %v3299_v12  ;;  %v3319_v14 = vmul.f32 %v3317_v46, %v3300_v31  ;;  %v3320_v62 = vmul.f32 %v3317_v46, %v3301_v47  ;;  %v3321_v33 = vmul.f32 %v3317_v46, %v3302_v15 }
 0x550   :  { %v3322_v9 = vmul.f32 %v3317_v46, %v3303_v40  ;;  %v3323_v11 = vmul.f32 %v3317_v46, %v3304_v36  ;;  %v3324_v57 = vmul.f32 %v3317_v46, %v3305_v48  ;;  %v3325_v39 = vmul.f32 %v3317_v46, %v3306_v35 }
 0x551   :  { %v3331_v10 = vmul.f32 %v3329_v51, %v3318_v7  ;;  %v3332_v52 = vmul.f32 %v3329_v51, %v3319_v14  ;;  %v3333_v20 = vmul.f32 %v3329_v51, %v3320_v62  ;;  %v3334_v1 = vmul.f32 %v3329_v51, %v3321_v33 }
 0x552   :  { %v3335_v2 = vmul.f32 %v3329_v51, %v3322_v9  ;;  %v3336_v24 = vmul.f32 %v3329_v51, %v3323_v11  ;;  %v3337_v54 = vmul.f32 %v3329_v51, %v3324_v57  ;;  %v3338_v13 = vmul.f32 %v3329_v51, %v3325_v39 }
 0x553   :  { %v3344_v59 = vadd.f32 %v3342_v23, %v3331_v10  ;;  %v3345_v41 = vadd.f32 %v3342_v23, %v3332_v52  ;;  %v6039_v25 = vadd.f32 %v3342_v23, %v3333_v20  ;;  %v6041_v5 = vadd.f32 %v3342_v23, %v3334_v1 }
 0x554   :  { %v6043_v16 = vadd.f32 %v3342_v23, %v3335_v2  ;;  %v6045_v43 = vadd.f32 %v3342_v23, %v3336_v24  ;;  %v6049_v26 = vadd.f32 %v3342_v23, %v3337_v54  ;;  %v6056_v63 = vadd.f32 %v3342_v23, %v3338_v13  ;;  %v3424_v2 = vld [vmem:[%s6224_s6] sm:$0xff] }
 0x555   :  { %v3360_v4 = vmul.f32 0.044715, %v3344_v59  ;;  %v3361_v28 = vmul.f32 0.044715, %v3345_v41  ;;  %v3362_v38 = vmul.f32 0.044715, %v6039_v25 }
 0x556   :  { %v3363_v44 = vmul.f32 0.044715, %v6041_v5  ;;  %v3364_v17 = vmul.f32 0.044715, %v6043_v16  ;;  %v3365_v30 = vmul.f32 0.044715, %v6045_v43 }
 0x557   :  { %v3368_v42 = vmul.f32 %v3360_v4, %v3344_v59  ;;  %v3369_v21 = vmul.f32 %v3361_v28, %v3345_v41  ;;  %v3370_v8 = vmul.f32 %v3362_v38, %v6039_v25  ;;  %v3366_v32 = vmul.f32 0.044715, %v6049_v26 }
 0x558   :  { %v3371_v45 = vmul.f32 %v3363_v44, %v6041_v5  ;;  %v3372_v19 = vmul.f32 %v3364_v17, %v6043_v16  ;;  %v3373_v61 = vmul.f32 %v3365_v30, %v6045_v43  ;;  %v3367_v37 = vmul.f32 0.044715, %v6056_v63 }
 0x559   :  { %v3376_v50 = vmul.f32 %v3368_v42, %v3344_v59  ;;  %v3377_v0 = vmul.f32 %v3369_v21, %v3345_v41  ;;  %v3378_v29 = vmul.f32 %v3370_v8, %v6039_v25  ;;  %v3374_v3 = vmul.f32 %v3366_v32, %v6049_v26 }
 0x55a   :  { %v3379_v18 = vmul.f32 %v3371_v45, %v6041_v5  ;;  %v3380_v22 = vmul.f32 %v3372_v19, %v6043_v16  ;;  %v3381_v49 = vmul.f32 %v3373_v61, %v6045_v43  ;;  %v3375_v40 = vmul.f32 %v3367_v37, %v6056_v63 }
 0x55b   :  { %v3384_v34 = vadd.f32 %v3376_v50, %v3344_v59  ;;  %v3385_v6 = vadd.f32 %v3377_v0, %v3345_v41  ;;  %v3386_v27 = vadd.f32 %v3378_v29, %v6039_v25  ;;  %v3382_v47 = vmul.f32 %v3374_v3, %v6049_v26 }
 0x55c   :  { %v3387_v58 = vadd.f32 %v3379_v18, %v6041_v5  ;;  %v3388_v55 = vadd.f32 %v3380_v22, %v6043_v16  ;;  %v3389_v31 = vadd.f32 %v3381_v49, %v6045_v43  ;;  %v3383_v48 = vmul.f32 %v3375_v40, %v6056_v63 }
 0x55d   :  { %v3392_v60 = vmul.f32 0.7978846, %v3384_v34  ;;  %v3393_v51 = vmul.f32 0.7978846, %v3385_v6  ;;  %v3394_v53 = vmul.f32 0.7978846, %v3386_v27  ;;  %v3390_v36 = vadd.f32 %v3382_v47, %v6049_v26 }
 0x55e   :  { %v3395_v12 = vmul.f32 0.7978846, %v3387_v58  ;;  %v3396_v15 = vmul.f32 0.7978846, %v3388_v55  ;;  %v3397_v46 = vmul.f32 0.7978846, %v3389_v31  ;;  %v3391_v7 = vadd.f32 %v3383_v48, %v6056_v63 }
 0x55f   :  { %3939 = vtanh.f32 %v3392_v60  ;;  %v3398_v35 = vmul.f32 0.7978846, %v3390_v36  ;;  %v3352_v9 = vmul.f32 0.5, %v3344_v59  ;;  %v3353_v39 = vmul.f32 0.5, %v3345_v41  ;;  %v3976_v34 = vld [vmem:[%s6281_s23 + $0x8] sm:$0xff] }
 0x560   :  { %3941 = vtanh.f32 %v3393_v51  ;;  %v3399_v62 = vmul.f32 0.7978846, %v3391_v7  ;;  %v3354_v1 = vmul.f32 0.5, %v6039_v25  ;;  %v3355_v4 = vmul.f32 0.5, %v6041_v5 }
 0x561   :  { %3943 = vtanh.f32 %v3394_v53  ;;  %v3356_v41 = vmul.f32 0.5, %v6043_v16  ;;  %v3357_v25 = vmul.f32 0.5, %v6045_v43  ;;  %v3358_v5 = vmul.f32 0.5, %v6049_v26  ;;  %v3429_v26 = vpop.permute.xlu2 %3428 }
 0x562   :  { %3945 = vtanh.f32 %v3395_v12  ;;  %v3359_v50 = vmul.f32 0.5, %v6056_v63  ;;  %v3975_v63 = vld [vmem:[%s6281_s23] sm:$0xff]  ;;  %v3977_v12 = vld [vmem:[%s6281_s23 + $0x10] sm:$0xff] }
 0x563   :  { %3947 = vtanh.f32 %v3396_v15  ;;  %v3978_v15 = vld [vmem:[%s6281_s23 + $0x18] sm:$0xff] }
 0x564   :  { %3949 = vtanh.f32 %v3397_v46 }
 0x565   :  { %v3940_v14 = vpop.eup %3939  ;;  %3951 = vtanh.f32 %v3398_v35  ;;  %v3979_v35 = vld [vmem:[%s6281_s23 + $0x20] sm:$0xff] }
 0x566   :  { %v3942_v33 = vpop.eup %3941  ;;  %v3408_v11 = vadd.f32 1.0, %v3940_v14  ;;  %3953 = vtanh.f32 %v3399_v62 }
 0x567   :  { %v3944_v57 = vpop.eup %3943  ;;  %v3409_v10 = vadd.f32 1.0, %v3942_v33 }
 0x568   :  { %v3946_v52 = vpop.eup %3945  ;;  %v3416_v20 = vmul.f32 %v3408_v11, %v3352_v9  ;;  %v3410_v23 = vadd.f32 1.0, %v3944_v57  ;;  %v3980_v9 = vld [vmem:[%s6281_s23 + $0x28] sm:$0xff] }
 0x569   :  { %v3948_v24 = vpop.eup %3947  ;;  %v3417_v54 = vmul.f32 %v3409_v10, %v3353_v39  ;;  %v3411_v28 = vadd.f32 1.0, %v3946_v52 }
 0x56a   :  { %v3950_v59 = vpop.eup %3949  ;;  %3449 = vmatpush.msra.mxu0 %v3416_v20  ;;  %v3418_v13 = vmul.f32 %v3410_v23, %v3354_v1  ;;  %v3412_v38 = vadd.f32 1.0, %v3948_v24 }
 0x56b   :  { %v3952_v44 = vpop.eup %3951  ;;  %3469 = vmatpush.msra.mxu1 %v3417_v54  ;;  %v3419_v42 = vmul.f32 %v3411_v28, %v3355_v4  ;;  %3865 = vmatmul.msk.f32.vlgmr.msra.gmra.mxu0 %vm234_vm4, %v3424_v2  ;;  %v3413_v21 = vadd.f32 1.0, %v3950_v59  ;;  %v3981_v4 = vld [vmem:[%s6281_s23 + $0x30] sm:$0xff]  ;;  %v3982_v59 = vld [vmem:[%s6281_s23 + $0x38] sm:$0xff] }
 0x56c   :  { %3489 = vmatpush.msra.mxu2 %v3418_v13  ;;  %3866 = vmatmul.msk.f32.vlgmr.msra.gmra.mxu1 %vm234_vm4, %v3424_v2  ;;  %v3420_v17 = vmul.f32 %v3412_v38, %v3356_v41  ;;  %v3414_v8 = vadd.f32 1.0, %v3952_v44  ;;  %v3954_v45 = vpop.eup %3953 }
 0x56d   :  { %3509 = vmatpush.msra.mxu3 %v3419_v42  ;;  %3867 = vmatmul.msk.f32.vlgmr.msra.gmra.mxu2 %vm234_vm4, %v3424_v2  ;;  %v3421_v16 = vmul.f32 %v3413_v21, %v3357_v25  ;;  %v3415_v43 = vadd.f32 1.0, %v3954_v45 }
 0x56e   :  { %3868 = vmatmul.msk.f32.vlgmr.msra.gmra.mxu3 %vm234_vm4, %v3424_v2  ;;  %3529 = vmatpush.msrb.mxu0 %v3420_v17  ;;  %v3422_v30 = vmul.f32 %v3414_v8, %v3358_v5  ;;  %v3603_v5 = vld [vmem:[%s6225_s15] sm:$0xff] }
 0x56f   :  { %3549 = vmatpush.msrb.mxu1 %v3421_v16  ;;  %v3423_v0 = vmul.f32 %v3415_v43, %v3359_v50 }
 0x570   :  { %3569 = vmatpush.msrb.mxu2 %v3422_v30 }
 0x571   :  { %3589 = vmatpush.msrb.mxu3 %v3423_v0 }
 0x573   :  { %3869 = vmatmul.msk.f32.vlgmr.msrb.gmra.mxu0 %vm234_vm4, %v3424_v2 }
 0x574   :  { %3870 = vmatmul.msk.f32.vlgmr.msrb.gmra.mxu1 %vm234_vm4, %v3424_v2 }
 0x575   :  { %3871 = vmatmul.msk.f32.vlgmr.msrb.gmra.mxu2 %vm234_vm4, %v3424_v2 }
 0x576   :  { %3872 = vmatmul.msk.f32.vlgmr.msrb.gmra.mxu3 %vm234_vm4, %v3424_v2 }
 0x5e8   :  { %v3451_v19 = vpop.f32.mrf.mxu0 }
 0x5e9   :  { %v3452_v29 = vadd.f32 %v3451_v19, %v3429_v26  ;;  %v3471_v18 = vpop.f32.mrf.mxu1 }
 0x5ea   :  { %v3472_v61 = vadd.f32 %v3471_v18, %v3429_v26 }
 0x5eb   :  { %v6095_v32 = vadd.f32 %v3975_v63, %v3452_v29 }
 0x5ec   :  { %v6100_v6 = vadd.f32 %v3976_v34, %v3472_v61 }
 0x5ed   :  { %v3614_v58 = vmul.f32 %v6095_v32, %v6095_v32 }
 0x5ee   :  { %v3615_v49 = vmul.f32 %v6100_v6, %v6100_v6  ;;  %v3604_v53 = vadd.f32 %v6100_v6, %v6095_v32 }
 0x5f0   :  { %v3491_v22 = vpop.f32.mrf.mxu2  ;;  %v3531_v27 = vpop.f32.mrf.mxu0  ;;  %v3622_v46 = vadd.f32 %v3615_v49, %v3614_v58 }
 0x5f1   :  { %v3492_v3 = vadd.f32 %v3491_v22, %v3429_v26  ;;  %v3511_v60 = vpop.f32.mrf.mxu3  ;;  %v3532_v51 = vadd.f32 %v3531_v27, %v3429_v26  ;;  %v3551_v55 = vpop.f32.mrf.mxu1 }
 0x5f2   :  { %v3512_v37 = vadd.f32 %v3511_v60, %v3429_v26  ;;  %v3552_v47 = vadd.f32 %v3551_v55, %v3429_v26 }
 0x5f3   :  { %v6111_v31 = vadd.f32 %v3977_v12, %v3492_v3  ;;  %v6124_v7 = vadd.f32 %v3979_v35, %v3532_v51 }
 0x5f4   :  { %v6116_v40 = vadd.f32 %v3978_v15, %v3512_v37  ;;  %v3599_v11 = vadd.f32 %v3980_v9, %v3552_v47  ;;  %v3665_v15 = vpop.permute.xlu1 %3664 }
 0x5f5   :  { %v3605_v36 = vadd.f32 %v3604_v53, %v6111_v31  ;;  %v3616_v48 = vmul.f32 %v6111_v31, %v6111_v31  ;;  %v3618_v52 = vmul.f32 %v6124_v7, %v6124_v7 }
 0x5f6   :  { %v3617_v33 = vmul.f32 %v6116_v40, %v6116_v40  ;;  %v3619_v54 = vmul.f32 %v3599_v11, %v3599_v11 }
 0x5f7   :  { %v3623_v14 = vadd.f32 %v3622_v46, %v3616_v48  ;;  %v3606_v62 = vadd.f32 %v3605_v36, %v6116_v40 }
 0x5f8   :  { %v3571_v57 = vpop.f32.mrf.mxu2 }
 0x5f9   :  { %v3624_v39 = vadd.f32 %v3623_v14, %v3617_v33  ;;  %v3607_v10 = vadd.f32 %v3606_v62, %v6124_v7  ;;  %v3572_v20 = vadd.f32 %v3571_v57, %v3429_v26  ;;  %v3591_v1 = vpop.f32.mrf.mxu3 }
 0x5fa   :  { %v3592_v23 = vadd.f32 %v3591_v1, %v3429_v26 }
 0x5fb   :  { %v3625_v2 = vadd.f32 %v3624_v39, %v3618_v52  ;;  %v3608_v24 = vadd.f32 %v3607_v10, %v3599_v11  ;;  %v3600_v28 = vadd.f32 %v3981_v4, %v3572_v20 }
 0x5fc   :  { %v3601_v13 = vadd.f32 %v3982_v59, %v3592_v23 }
 0x5fd   :  { %v3620_v41 = vmul.f32 %v3600_v28, %v3600_v28  ;;  %v3609_v38 = vadd.f32 %v3608_v24, %v3600_v28  ;;  %v3626_v44 = vadd.f32 %v3625_v2, %v3619_v54 }
 0x5fe   :  { %v3621_v25 = vmul.f32 %v3601_v13, %v3601_v13 }
 0x5ff   :  { %v3610_v42 = vadd.f32 %v3609_v38, %v3601_v13  ;;  %v3627_v21 = vadd.f32 %v3626_v44, %v3620_v41 }
 0x601   :  { %3611 = vadd.xlane.f32.xlu2 %v3610_v42  ;;  %v3628_v17 = vadd.f32 %v3627_v21, %v3621_v25 }
 0x603   :  { %3629 = vadd.xlane.f32.xlu0 %v3628_v17 }
 0x617   :  { %3677 = vperm.xlu0 %3898, %v3603_v5  }
 0x674   :  { %v3612_v8 = vpop.xlane.xlu2 %3611 }
 0x675   :  { %v3613_v45 = vmul.f32 %v3612_v8, %v6383_v56 }
 0x676   :  { %v3630_v16 = vpop.xlane.xlu0 %3629 }
 0x677   :  { %v3631_v30 = vmul.f32 %v3630_v16, %v6383_v56  ;;  %v3632_v50 = vmul.f32 %v3613_v45, %v3613_v45  ;;  %v3635_v22 = vsub.f32 %v6095_v32, %v3613_v45  ;;  %v3636_v27 = vsub.f32 %v6100_v6, %v3613_v45 }
 0x678   :  { %v3637_v56 = vsub.f32 %v6111_v31, %v3613_v45  ;;  %v3638_v58 = vsub.f32 %v6116_v40, %v3613_v45  ;;  %v3639_v49 = vsub.f32 %v6124_v7, %v3613_v45  ;;  %v3640_v60 = vsub.f32 %v3599_v11, %v3613_v45 }
 0x679   :  { %v3633_v43 = vsub.f32 %v3631_v30, %v3632_v50  ;;  %v3641_v51 = vsub.f32 %v3600_v28, %v3613_v45  ;;  %v3642_v55 = vsub.f32 %v3601_v13, %v3613_v45 }
 0x67b   :  { %v3634_v0 = vmax.f32 %v3633_v43, 0.0 }
 0x67d   :  { %v3643_v26 = vadd.f32 1e-05, %v3634_v0 }
 0x67f   :  { %3955 = vrsqrt.f32 %v3643_v26  ;;  %vm3650_vm14 = vweird.f32 %v3643_v26 }
 0x685   :  { %v3956_v19 = vpop.eup %3955 }
 0x686   :  { %v3645_v29 = vmul.f32 %v3956_v19, %v3643_v26  ;;  %vm3651_vm4 = vweird.f32 %v3956_v19 }
 0x687   :  { %vm3652_vm15 = vmor %vm3650_vm14, %vm3651_vm4 }
 0x688   :  { %v3646_v18 = vmul.f32 %v3956_v19, %v3645_v29 }
 0x689   :  { %v3678_v40 = vpop.permute.xlu0 %3677 }
 0x68a   :  { %v3647_v61 = vmul.f32 0.5, %v3646_v18 }
 0x68c   :  { %v3648_v63 = vsub.f32 1.5, %v3647_v61 }
 0x68e   :  { %v3649_v34 = vmul.f32 %v3956_v19, %v3648_v63 }
 0x690   :  { %v3653_v3 = vsel %vm3652_vm15, %v3956_v19, %v3649_v34 }
 0x691   :  { %v3654_v37 = vmul.f32 %v3653_v3, %v3635_v22  ;;  %v3655_v53 = vmul.f32 %v3653_v3, %v3636_v27  ;;  %v3656_v12 = vmul.f32 %v3653_v3, %v3637_v56  ;;  %v3657_v47 = vmul.f32 %v3653_v3, %v3638_v58 }
 0x692   :  { %v3658_v46 = vmul.f32 %v3653_v3, %v3639_v49  ;;  %v3659_v32 = vmul.f32 %v3653_v3, %v3640_v60  ;;  %v3660_v36 = vmul.f32 %v3653_v3, %v3641_v51  ;;  %v3661_v48 = vmul.f32 %v3653_v3, %v3642_v55 }
 0x693   :  { %v3667_v6 = vmul.f32 %v3665_v15, %v3654_v37  ;;  %v3668_v35 = vmul.f32 %v3665_v15, %v3655_v53  ;;  %v3669_v31 = vmul.f32 %v3665_v15, %v3656_v12  ;;  %v3670_v14 = vmul.f32 %v3665_v15, %v3657_v47 }
 0x694   :  { %v3671_v62 = vmul.f32 %v3665_v15, %v3658_v46  ;;  %v3672_v7 = vmul.f32 %v3665_v15, %v3659_v32  ;;  %v3673_v33 = vmul.f32 %v3665_v15, %v3660_v36  ;;  %v3674_v9 = vmul.f32 %v3665_v15, %v3661_v48 }
 0x695   :  { %v3680_v11 = vadd.f32 %v3678_v40, %v3667_v6  ;;  %v3681_v57 = vadd.f32 %v3678_v40, %v3668_v35  ;;  %v3682_v39 = vadd.f32 %v3678_v40, %v3669_v31  ;;  %v6151_v10 = vadd.f32 %v3678_v40, %v3670_v14 }
 0x696   :  { %v6153_v52 = vadd.f32 %v3678_v40, %v3671_v62  ;;  %v6155_v20 = vadd.f32 %v3678_v40, %v3672_v7  ;;  %v6157_v1 = vadd.f32 %v3678_v40, %v3673_v33  ;;  %v6159_v23 = vadd.f32 %v3678_v40, %v3674_v9 }
 0x697   :  { %v3696_v2 = vmul.f32 0.044715, %v3680_v11  ;;  %v3697_v24 = vmul.f32 0.044715, %v3681_v57  ;;  %v3698_v54 = vmul.f32 0.044715, %v3682_v39 }
 0x698   :  { %v3699_v4 = vmul.f32 0.044715, %v6151_v10  ;;  %v3700_v28 = vmul.f32 0.044715, %v6153_v52  ;;  %v3701_v59 = vmul.f32 0.044715, %v6155_v20 }
 0x699   :  { %v3702_v13 = vmul.f32 0.044715, %v6157_v1  ;;  %v3703_v41 = vmul.f32 0.044715, %v6159_v23  ;;  %v3704_v38 = vmul.f32 %v3696_v2, %v3680_v11  ;;  %v3705_v44 = vmul.f32 %v3697_v24, %v3681_v57 }
 0x69a   :  { %v3706_v42 = vmul.f32 %v3698_v54, %v3682_v39  ;;  %v3707_v25 = vmul.f32 %v3699_v4, %v6151_v10  ;;  %v3708_v21 = vmul.f32 %v3700_v28, %v6153_v52  ;;  %v3709_v17 = vmul.f32 %v3701_v59, %v6155_v20 }
 0x69b   :  { %v3710_v5 = vmul.f32 %v3702_v13, %v6157_v1  ;;  %v3711_v8 = vmul.f32 %v3703_v41, %v6159_v23  ;;  %v3712_v45 = vmul.f32 %v3704_v38, %v3680_v11  ;;  %v3713_v16 = vmul.f32 %v3705_v44, %v3681_v57 }
 0x69c   :  { %v3714_v30 = vmul.f32 %v3706_v42, %v3682_v39  ;;  %v3715_v50 = vmul.f32 %v3707_v25, %v6151_v10  ;;  %v3716_v43 = vmul.f32 %v3708_v21, %v6153_v52  ;;  %v3717_v0 = vmul.f32 %v3709_v17, %v6155_v20 }
 0x69d   :  { %v3718_v26 = vmul.f32 %v3710_v5, %v6157_v1  ;;  %v3719_v19 = vmul.f32 %v3711_v8, %v6159_v23  ;;  %v3720_v29 = vadd.f32 %v3712_v45, %v3680_v11  ;;  %v3721_v18 = vadd.f32 %v3713_v16, %v3681_v57 }
 0x69e   :  { %v3722_v61 = vadd.f32 %v3714_v30, %v3682_v39  ;;  %v3723_v63 = vadd.f32 %v3715_v50, %v6151_v10  ;;  %v3724_v34 = vadd.f32 %v3716_v43, %v6153_v52  ;;  %v3725_v22 = vadd.f32 %v3717_v0, %v6155_v20 }
 0x69f   :  { %v3726_v27 = vadd.f32 %v3718_v26, %v6157_v1  ;;  %v3728_v56 = vmul.f32 0.7978846, %v3720_v29  ;;  %v3729_v58 = vmul.f32 0.7978846, %v3721_v18  ;;  %v3727_v49 = vadd.f32 %v3719_v19, %v6159_v23 }
 0x6a0   :  { %v3730_v3 = vmul.f32 0.7978846, %v3722_v61  ;;  %v3731_v60 = vmul.f32 0.7978846, %v3723_v63  ;;  %v3732_v51 = vmul.f32 0.7978846, %v3724_v34 }
 0x6a1   :  { %3957 = vtanh.f32 %v3728_v56  ;;  %v3733_v55 = vmul.f32 0.7978846, %v3725_v22  ;;  %v3734_v37 = vmul.f32 0.7978846, %v3726_v27  ;;  %v3735_v53 = vmul.f32 0.7978846, %v3727_v49 }
 0x6a2   :  { %3959 = vtanh.f32 %v3729_v58  ;;  %v3688_v15 = vmul.f32 0.5, %v3680_v11  ;;  %v3689_v36 = vmul.f32 0.5, %v3681_v57  ;;  %v3690_v35 = vmul.f32 0.5, %v3682_v39 }
 0x6a3   :  { %3961 = vtanh.f32 %v3730_v3  ;;  %v3691_v62 = vmul.f32 0.5, %v6151_v10  ;;  %v3692_v2 = vmul.f32 0.5, %v6153_v52  ;;  %v3693_v57 = vmul.f32 0.5, %v6155_v20 }
 0x6a4   :  { %3963 = vtanh.f32 %v3731_v60  ;;  %v3694_v28 = vmul.f32 0.5, %v6157_v1  ;;  %v3695_v13 = vmul.f32 0.5, %v6159_v23 }
 0x6a5   :  { %3965 = vtanh.f32 %v3732_v51 }
 0x6a6   :  { %3967 = vtanh.f32 %v3733_v55 }
 0x6a7   :  { %v3958_v12 = vpop.eup %3957  ;;  %3969 = vtanh.f32 %v3734_v37 }
 0x6a8   :  { %v3960_v47 = vpop.eup %3959  ;;  %3971 = vtanh.f32 %v3735_v53  ;;  %v3744_v46 = vadd.f32 1.0, %v3958_v12 }
 0x6a9   :  { %v3962_v32 = vpop.eup %3961  ;;  %v3745_v48 = vadd.f32 1.0, %v3960_v47 }
 0x6aa   :  { %v3964_v6 = vpop.eup %3963  ;;  %v3746_v31 = vadd.f32 1.0, %v3962_v32  ;;  %v3752_v14 = vmul.f32 %v3744_v46, %v3688_v15 }
 0x6ab   :  { %v3966_v40 = vpop.eup %3965  ;;  %v3747_v7 = vadd.f32 1.0, %v3964_v6  ;;  %v3753_v33 = vmul.f32 %v3745_v48, %v3689_v36 }
 0x6ac   :  { %v3968_v9 = vpop.eup %3967  ;;  %v3748_v24 = vadd.f32 1.0, %v3966_v40  ;;  %v3754_v54 = vmul.f32 %v3746_v31, %v3690_v35  ;;  %3760 = vst [vmem:[%s6226_s16] sm:$0xff] %v3752_v14 }
 0x6ad   :  { %v3970_v11 = vpop.eup %3969  ;;  %v3749_v39 = vadd.f32 1.0, %v3968_v9  ;;  %v3755_v4 = vmul.f32 %v3747_v7, %v3691_v62  ;;  %3761 = vst [vmem:[%s6226_s16 + $0x8] sm:$0xff] %v3753_v33 }
 0x6ae   :  { %v3972_v10 = vpop.eup %3971  ;;  %v3750_v59 = vadd.f32 1.0, %v3970_v11  ;;  %v3756_v52 = vmul.f32 %v3748_v24, %v3692_v2  ;;  %3762 = vst [vmem:[%s6226_s16 + $0x10] sm:$0xff] %v3754_v54 }
 0x6af   :  { %v3751_v41 = vadd.f32 1.0, %v3972_v10  ;;  %v3757_v38 = vmul.f32 %v3749_v39, %v3693_v57  ;;  %3763 = vst [vmem:[%s6226_s16 + $0x18] sm:$0xff] %v3755_v4 }
 0x6b0   :  { %v3758_v20 = vmul.f32 %v3750_v59, %v3694_v28  ;;  %3873 = vst [vmem:[%s6226_s16 + $0x20] sm:$0xff] %v3756_v52 }
 0x6b1   :  { %v3759_v1 = vmul.f32 %v3751_v41, %v3695_v13  ;;  %3874 = vst [vmem:[%s6226_s16 + $0x28] sm:$0xff] %v3757_v38 }
 0x6b2   :  { %3875 = vst [vmem:[%s6226_s16 + $0x30] sm:$0xff] %v3758_v20 }
 0x6b3   :  { %3876 = vst [vmem:[%s6226_s16 + $0x38] sm:$0xff] %v3759_v1 }

</bundles_post_ra>
